<compile_context>
chip_gen: v7x
topology: tpu7x:2x2x1
jax: 0.10.0
libtpu: 0.0.40
codegen_flags: <defaults>
</compile_context>

<pallas_src>
import functools

import jax
import jax.numpy as jnp
from jax.experimental import pallas as pl
from jax.experimental.pallas import tpu as pltpu


def _round_up(x, m):
    return (x + m - 1) // m * m


def _pack_gates_last(w, H, Hp):
    """Reorder torch gate blocks [i,f,g,o] -> [i,f,o,g] along the last axis and
    zero-pad each gate block from H to Hp lanes."""
    parts = (w[..., 0:H], w[..., H:2 * H], w[..., 3 * H:4 * H], w[..., 2 * H:3 * H])
    pad_width = [(0, 0)] * (w.ndim - 1) + [(0, Hp - H)]
    return jnp.concatenate([jnp.pad(p, pad_width) for p in parts], axis=-1)


def _make_encoder_kernel(n_layers, chunk_len, batch_tile, hid_pad,
                         seq_len_true, mm_dtype):
    """Kernel refs (in order):
        src_ref                 : (Tc*Bt, Dp)        mm_dtype  (time-major chunk)
        per layer l: wih_ref    : (Din_l, 4Hp)       mm_dtype  (W_ih^T, gates i,f,o,g)
                     whh_ref    : (Hp,    4Hp)       mm_dtype  (W_hh^T)
                     b_ref      : (1,     4Hp)       f32       (b_ih + b_hh)
        hidden_ref (output)     : (n_layers, Bt, Hp) f32
        xg_scr   (scratch)      : (Tc*Bt, 4Hp)       f32   input-gate pre-activations
        seq_scr  (scratch)      : (Tc*Bt, Hp)        f32   inter-layer activations
        h_state, c_state        : (n_layers, Bt, Hp) f32   carried across chunks
    """
    Tc, Bt, Hp = chunk_len, batch_tile, hid_pad
    need_mask = False  # set below by closure builder if S was padded
    unroll = Tc if Tc <= 8 else 8

    def build(need_mask_):
        def kernel(*refs):
            src_ref = refs[0]
            layer_refs = refs[1:1 + 3 * n_layers]
            hidden_ref = refs[1 + 3 * n_layers]
            xg_scr, seq_scr, h_state, c_state = refs[2 + 3 * n_layers:]

            t = pl.program_id(1)

            @pl.when(t == 0)
            def _init():
                h_state[...] = jnp.zeros_like(h_state)
                c_state[...] = jnp.zeros_like(c_state)

            for l in range(n_layers):
                wih_ref, whh_ref, b_ref = layer_refs[3 * l:3 * l + 3]

                # One lane-dense MXU GEMM for the input contribution of the whole
                # chunk, bias folded in.  f32 accumulate; operands may be bf16.
                lhs = src_ref[...] if l == 0 else seq_scr[...]
                xg_scr[...] = (jnp.dot(lhs.astype(mm_dtype), wih_ref[...],
                                       preferred_element_type=jnp.float32)
                               + b_ref[...])

                last_layer = (l == n_layers - 1)

                def step(s, carry, _whh_ref=whh_ref, _last=last_layer):
                    h, c = carry
                    row = pl.multiple_of(s * Bt, Bt)  # Bt is a multiple of 8
                    gates = xg_scr[pl.ds(row, Bt), :] + jnp.dot(
                        h.astype(mm_dtype), _whh_ref[...],
                        preferred_element_type=jnp.float32)        # (Bt, 4Hp) f32
                    # gate order [i, f, o, g]: 2 EUP activations instead of 4,
                    # all slices at 128-lane boundaries.
                    ifo = jax.nn.sigmoid(gates[:, :3 * Hp])
                    g_g = jnp.tanh(gates[:, 3 * Hp:])
                    i_g = ifo[:, 0 * Hp:1 * Hp]
                    f_g = ifo[:, 1 * Hp:2 * Hp]
                    o_g = ifo[:, 2 * Hp:3 * Hp]
                    c_new = f_g * c + i_g * g_g
                    h_new = o_g * jnp.tanh(c_new)
                    if need_mask_:
                        valid = (t * Tc + s) < seq_len_true
                        h_new = jnp.where(valid, h_new, h)
                        c_new = jnp.where(valid, c_new, c)
                    if not _last:
                        seq_scr[pl.ds(row, Bt), :] = h_new
                    return (h_new, c_new)

                h_fin, c_fin = jax.lax.fori_loop(
                    0, Tc, step, (h_state[l], c_state[l]), unroll=unroll)
                h_state[l] = h_fin
                c_state[l] = c_fin

            @pl.when(t == pl.num_programs(1) - 1)
            def _finalize():
                hidden_ref[...] = h_state[...]

        return kernel

    return build


def encoder_forward(src, params, *, matmul_dtype=jnp.float32,
                    time_chunk=16, batch_tile=8):
    """Encoder.forward: src (S, B, D_in) -> hidden (n_layers, B, H)."""
    S, B, D_in = src.shape
    n_layers = len(params)
    H = params[0]["w_hh"].shape[1]           # torch w_hh is (4H, H)

    f32 = jnp.float32
    mm = matmul_dtype
    mm_size = jnp.dtype(mm).itemsize

    assert batch_tile % 8 == 0
    Hp = _round_up(H, 128)                   # lane-dense gate blocks
    Dp = _round_up(D_in, 128)
    Bt = batch_tile
    Bp = _round_up(max(B, Bt), Bt)
    nb = Bp // Bt
    Tc = min(S, time_chunk)
    nt = (S + Tc - 1) // Tc
    Sp = nt * Tc
    need_mask = (Sp != S)

    # --- input layout: (nb, Sp*Bt, Dp), time-major within each batch tile ---
    x = src.astype(f32)
    x = jnp.pad(x, ((0, Sp - S), (0, Bp - B), (0, Dp - D_in)))
    x = x.reshape(Sp, nb, Bt, Dp).transpose(1, 0, 2, 3).reshape(nb, Sp * Bt, Dp)
    x = x.astype(mm)

    # --- weights: transpose, reorder gates to [i,f,o,g], zero-pad to lanes ---
    in_dims = [Dp] + [Hp] * (n_layers - 1)
    raw_in = [D_in] + [H] * (n_layers - 1)
    inputs = [x]
    for l, p in enumerate(params):
        w_ih = jnp.asarray(p["w_ih"], f32).T          # (d_in, 4H)
        w_hh = jnp.asarray(p["w_hh"], f32).T          # (H, 4H)
        bias = jnp.asarray(p["b_ih"], f32) + jnp.asarray(p["b_hh"], f32)
        w_ih = _pack_gates_last(w_ih, H, Hp)          # (d_in, 4Hp)
        w_hh = _pack_gates_last(w_hh, H, Hp)          # (H, 4Hp)
        bias = _pack_gates_last(bias, H, Hp)          # (4Hp,)
        w_ih = jnp.pad(w_ih, ((0, in_dims[l] - raw_in[l]), (0, 0))).astype(mm)
        w_hh = jnp.pad(w_hh, ((0, Hp - H), (0, 0))).astype(mm)
        inputs += [w_ih, w_hh, bias.reshape(1, 4 * Hp)]

    kernel = _make_encoder_kernel(n_layers, Tc, Bt, Hp, S, mm)(need_mask)

    # --- specs ---
    in_specs = [pl.BlockSpec((None, Tc * Bt, Dp), lambda b, t: (b, t, 0))]
    for _ in range(n_layers):
        in_specs += [pl.BlockSpec(memory_space=pltpu.MemorySpace.VMEM)] * 3
    out_spec = pl.BlockSpec((n_layers, Bt, Hp), lambda b, t: (0, b, 0))
    scratch = [
        pltpu.VMEM((Tc * Bt, 4 * Hp), f32),          # chunk input-gate pre-acts
        pltpu.VMEM((Tc * Bt, Hp), f32),              # inter-layer chunk activations
        pltpu.VMEM((n_layers, Bt, Hp), f32),         # h state (across chunks)
        pltpu.VMEM((n_layers, Bt, Hp), f32),         # c state (across chunks)
    ]

    # --- VMEM budget & cost estimate ---
    vmem_bytes = 2 * Tc * Bt * Dp * mm_size                     # src double buffer
    vmem_bytes += 2 * n_layers * Bt * Hp * 4                    # output block
    for l in range(n_layers):
        vmem_bytes += (in_dims[l] * 4 * Hp + Hp * 4 * Hp) * mm_size + 4 * Hp * 4
    vmem_bytes += (Tc * Bt * 4 * Hp + Tc * Bt * Hp + 2 * n_layers * Bt * Hp) * 4
    vmem_limit = min(max(int(vmem_bytes * 1.5) + (8 << 20), 32 << 20), 128 << 20)

    flops = 0
    for l in range(n_layers):
        flops += 2 * S * Bp * in_dims[l] * 4 * Hp        # input GEMM
        flops += 2 * S * Bp * Hp * 4 * Hp                # recurrence matmul
    transcendentals = S * Bp * 5 * Hp * n_layers         # 3 sigmoid + 2 tanh per step
    bytes_accessed = int(sum(a.size * a.dtype.itemsize for a in inputs)
                         + n_layers * Bp * Hp * 4)

    hidden_p = pl.pallas_call(
        kernel,
        out_shape=jax.ShapeDtypeStruct((n_layers, Bp, Hp), f32),
        grid=(nb, nt),
        in_specs=in_specs,
        out_specs=out_spec,
        scratch_shapes=scratch,
        compiler_params=pltpu.CompilerParams(
            dimension_semantics=("parallel", "arbitrary"),
            vmem_limit_bytes=vmem_limit),
        cost_estimate=pl.CostEstimate(flops=flops,
                                      transcendentals=transcendentals,
                                      bytes_accessed=bytes_accessed),
    )(*inputs)

    return hidden_p[:, :B, :H]


def init_encoder_params(key, input_dim, hid_dim, n_layers):
    """Deterministic init mimicking PyTorch LSTM uniform(-1/sqrt(H), 1/sqrt(H))."""
    params = []
    bound = 1.0 / jnp.sqrt(jnp.float32(hid_dim))
    for l in range(n_layers):
        d_in = input_dim if l == 0 else hid_dim
        key, k1, k2, k3, k4 = jax.random.split(key, 5)
        params.append({
            "w_ih": jax.random.uniform(k1, (4 * hid_dim, d_in),
                                       jnp.float32, -bound, bound),
            "w_hh": jax.random.uniform(k2, (4 * hid_dim, hid_dim),
                                       jnp.float32, -bound, bound),
            "b_ih": jax.random.uniform(k3, (4 * hid_dim,),
                                       jnp.float32, -bound, bound),
            "b_hh": jax.random.uniform(k4, (4 * hid_dim,),
                                       jnp.float32, -bound, bound),
        })
    return params


def _encoder_reference(src, params):
    """Pure-JAX reference (lax.scan) for correctness checking."""
    def one_layer(x, p):
        H = p["w_hh"].shape[1]
        B = x.shape[1]
        wih_t, whh_t = p["w_ih"].T, p["w_hh"].T
        b = p["b_ih"] + p["b_hh"]

        def step(carry, x_t):
            h, c = carry
            gates = x_t @ wih_t + h @ whh_t + b
            i = jax.nn.sigmoid(gates[:, 0 * H:1 * H])
            f = jax.nn.sigmoid(gates[:, 1 * H:2 * H])
            g = jnp.tanh(gates[:, 2 * H:3 * H])
            o = jax.nn.sigmoid(gates[:, 3 * H:4 * H])
            c_new = f * c + i * g
            h_new = o * jnp.tanh(c_new)
            return (h_new, c_new), h_new

        init = (jnp.zeros((B, H), jnp.float32), jnp.zeros((B, H), jnp.float32))
        (_, _), outs = jax.lax.scan(step, init, x)
        return outs

    layer_in = src
    finals = []
    for p in params:
        outs = one_layer(layer_in, p)
        finals.append(outs[-1])
        layer_in = outs
    return jnp.stack(finals, axis=0)


if __name__ == "__main__":
    SEQ, BATCH, INPUT_DIM, HID_DIM, N_LAYERS = 8, 4, 16, 32, 2

    key = jax.random.PRNGKey(0)
    key, k_src, k_par = jax.random.split(key, 3)
    src = jax.random.normal(k_src, (SEQ, BATCH, INPUT_DIM), jnp.float32)
    params = init_encoder_params(k_par, INPUT_DIM, HID_DIM, N_LAYERS)

    ref = jax.block_until_ready(_encoder_reference(src, params))

    # f32 path (default): strict numerics vs. the lax.scan reference.
    enc_f32 = jax.jit(functools.partial(encoder_forward, matmul_dtype=jnp.float32))
    hidden = jax.block_until_ready(enc_f32(src, params))
    assert hidden.shape == (N_LAYERS, BATCH, HID_DIM)
    assert jnp.allclose(hidden, ref, atol=1e-5, rtol=1e-5), "f32 mismatch vs reference"

    # bf16 MXU-operand path (v6e/v7x fast path); gate math stays f32.
    enc_bf16 = jax.jit(functools.partial(encoder_forward, matmul_dtype=jnp.bfloat16))
    hidden_bf16 = jax.block_until_ready(enc_bf16(src, params))
    assert hidden_bf16.shape == (N_LAYERS, BATCH, HID_DIM)
    assert bool(jnp.all(jnp.isfinite(hidden_bf16)))
    assert jnp.allclose(hidden_bf16, ref, atol=1e-1), "bf16 path diverged"

    print("KERNEL_OK")
</pallas_src>

<mosaic_0001>
module attributes {stable_mosaic.version = 11 : i64} {
  func.func @kernel(%arg0: i32, %arg1: i32, %arg2: memref<1x64x128xf32, #tpu.memory_space<vmem>>, %arg3: memref<128x512xf32, #tpu.memory_space<vmem>>, %arg4: memref<128x512xf32, #tpu.memory_space<vmem>>, %arg5: memref<1x512xf32, #tpu.memory_space<vmem>>, %arg6: memref<128x512xf32, #tpu.memory_space<vmem>>, %arg7: memref<128x512xf32, #tpu.memory_space<vmem>>, %arg8: memref<1x512xf32, #tpu.memory_space<vmem>>, %arg9: memref<2x8x128xf32, #tpu.memory_space<vmem>>, %arg10: memref<64x512xf32, #tpu.memory_space<vmem>>, %arg11: memref<64x128xf32, #tpu.memory_space<vmem>>, %arg12: memref<2x8x128xf32, #tpu.memory_space<vmem>>, %arg13: memref<2x8x128xf32, #tpu.memory_space<vmem>>) attributes {dimension_semantics = [#tpu.dimension_semantics<parallel>, #tpu.dimension_semantics<arbitrary>], iteration_bounds = array<i64: 1, 1>, scalar_prefetch = 0 : i64, scratch_operands = 4 : i64, tpu.core_type = #tpu.core_type<tc>, window_params = [{transform_indices = @transform_0, window_bounds = array<i64: 1, 64, 128>}, {pipeline_mode = #tpu.pipeline_mode<synchronous>, transform_indices = @transform_1, window_bounds = array<i64: 128, 512>}, {pipeline_mode = #tpu.pipeline_mode<synchronous>, transform_indices = @transform_2, window_bounds = array<i64: 128, 512>}, {pipeline_mode = #tpu.pipeline_mode<synchronous>, transform_indices = @transform_3, window_bounds = array<i64: 1, 512>}, {pipeline_mode = #tpu.pipeline_mode<synchronous>, transform_indices = @transform_4, window_bounds = array<i64: 128, 512>}, {pipeline_mode = #tpu.pipeline_mode<synchronous>, transform_indices = @transform_5, window_bounds = array<i64: 128, 512>}, {pipeline_mode = #tpu.pipeline_mode<synchronous>, transform_indices = @transform_6, window_bounds = array<i64: 1, 512>}, {transform_indices = @transform_7, window_bounds = array<i64: 2, 8, 128>}]} {
    %c0_i32 = arith.constant 0 : i32
    %0 = arith.cmpi eq, %arg1, %c0_i32 : i32
    %1 = arith.extui %0 : i1 to i32
    %c0_i32_0 = arith.constant 0 : i32
    %2 = arith.cmpi ne, %1, %c0_i32_0 : i32
    scf.if %2 {
      %cst_157 = arith.constant 0.000000e+00 : f32
      %425 = vector.broadcast %cst_157 : f32 to vector<2x8x128xf32>
      %c0_158 = arith.constant 0 : index
      %c0_159 = arith.constant 0 : index
      %c0_160 = arith.constant 0 : index
      %426 = vector.load %arg12[%c0_158, %c0_159, %c0_160] : memref<2x8x128xf32, #tpu.memory_space<vmem>>, vector<2x8x128xf32>
      tpu.vector_store %arg12[%c0_158, %c0_159, %c0_160], %425 {strides = array<i32>} : memref<2x8x128xf32, #tpu.memory_space<vmem>>, vector<2x8x128xf32>,
      %cst_161 = arith.constant 0.000000e+00 : f32
      %427 = vector.broadcast %cst_161 : f32 to vector<2x8x128xf32>
      %c0_162 = arith.constant 0 : index
      %c0_163 = arith.constant 0 : index
      %c0_164 = arith.constant 0 : index
      %428 = vector.load %arg13[%c0_162, %c0_163, %c0_164] : memref<2x8x128xf32, #tpu.memory_space<vmem>>, vector<2x8x128xf32>
      tpu.vector_store %arg13[%c0_162, %c0_163, %c0_164], %427 {strides = array<i32>} : memref<2x8x128xf32, #tpu.memory_space<vmem>>, vector<2x8x128xf32>,
    } else {
    }
    %c0 = arith.constant 0 : index
    %c0_1 = arith.constant 0 : index
    %c0_2 = arith.constant 0 : index
    %3 = vector.load %arg2[%c0, %c0_1, %c0_2] : memref<1x64x128xf32, #tpu.memory_space<vmem>>, vector<1x64x128xf32>
    %4 = vector.shape_cast %3 : vector<1x64x128xf32> to vector<64x128xf32>
    %c0_3 = arith.constant 0 : index
    %c0_4 = arith.constant 0 : index
    %5 = vector.load %arg3[%c0_3, %c0_4] : memref<128x512xf32, #tpu.memory_space<vmem>>, vector<128x512xf32>
    %cst = arith.constant dense<0.000000e+00> : vector<64x512xf32>
    %6 = tpu.matmul %4, %5, %cst {dimension_numbers = #tpu.dot_dimension_numbers<[1], [0], [0], [1], [0, 0, 1, 1], [], []>} : vector<64x128xf32>, vector<128x512xf32>, vector<64x512xf32> -> vector<64x512xf32>
    %c0_5 = arith.constant 0 : index
    %c0_6 = arith.constant 0 : index
    %7 = vector.load %arg5[%c0_5, %c0_6] : memref<1x512xf32, #tpu.memory_space<vmem>>, vector<1x512xf32>
    %8 = vector.broadcast %7 : vector<1x512xf32> to vector<64x512xf32>
    %9 = arith.addf %6, %8 : vector<64x512xf32>
    %c0_7 = arith.constant 0 : index
    %c0_8 = arith.constant 0 : index
    %10 = vector.load %arg10[%c0_7, %c0_8] : memref<64x512xf32, #tpu.memory_space<vmem>>, vector<64x512xf32>
    tpu.vector_store %arg10[%c0_7, %c0_8], %9 {strides = array<i32>} : memref<64x512xf32, #tpu.memory_space<vmem>>, vector<64x512xf32>,
    %c0_9 = arith.constant 0 : index
    %c0_10 = arith.constant 0 : index
    %c0_11 = arith.constant 0 : index
    %11 = vector.load %arg12[%c0_9, %c0_10, %c0_11] : memref<2x8x128xf32, #tpu.memory_space<vmem>>, vector<1x8x128xf32>
    %12 = vector.shape_cast %11 : vector<1x8x128xf32> to vector<8x128xf32>
    %c0_12 = arith.constant 0 : index
    %c0_13 = arith.constant 0 : index
    %c0_14 = arith.constant 0 : index
    %13 = vector.load %arg13[%c0_12, %c0_13, %c0_14] : memref<2x8x128xf32, #tpu.memory_space<vmem>>, vector<1x8x128xf32>
    %14 = vector.shape_cast %13 : vector<1x8x128xf32> to vector<8x128xf32>
    %c0_i32_15 = arith.constant 0 : i32
    %c8_i32 = arith.constant 8 : i32
    %15 = arith.muli %c0_i32_15, %c8_i32 : i32
    %16 = tpu.assume_multiple %15, 8 : i32
    %17 = arith.index_cast %16 : i32 to index
    %c0_16 = arith.constant 0 : index
    %18 = vector.load %arg10[%17, %c0_16] : memref<64x512xf32, #tpu.memory_space<vmem>>, vector<8x512xf32>
    %c0_17 = arith.constant 0 : index
    %c0_18 = arith.constant 0 : index
    %19 = vector.load %arg4[%c0_17, %c0_18] : memref<128x512xf32, #tpu.memory_space<vmem>>, vector<128x512xf32>
    %cst_19 = arith.constant dense<0.000000e+00> : vector<8x512xf32>
    %20 = tpu.matmul %12, %19, %cst_19 {dimension_numbers = #tpu.dot_dimension_numbers<[1], [0], [0], [1], [0, 0, 1, 1], [], []>} : vector<8x128xf32>, vector<128x512xf32>, vector<8x512xf32> -> vector<8x512xf32>
    %21 = arith.addf %18, %20 : vector<8x512xf32>
    %22 = vector.extract_strided_slice %21 {offsets = [0, 0], sizes = [8, 384], strides = [1, 1]} : vector<8x512xf32> to vector<8x384xf32>
    %23 = arith.negf %22 : vector<8x384xf32>
    %24 = math.exp %23 : vector<8x384xf32>
    %cst_20 = arith.constant 1.000000e+00 : f32
    %25 = vector.broadcast %cst_20 : f32 to vector<8x384xf32>
    %26 = arith.addf %25, %24 : vector<8x384xf32>
    %27 = arith.divf %25, %26 : vector<8x384xf32>
    %28 = vector.extract_strided_slice %21 {offsets = [0, 384], sizes = [8, 128], strides = [1, 1]} : vector<8x512xf32> to vector<8x128xf32>
    %29 = math.tanh %28 : vector<8x128xf32>
    %30 = vector.extract_strided_slice %27 {offsets = [0, 0], sizes = [8, 128], strides = [1, 1]} : vector<8x384xf32> to vector<8x128xf32>
    %31 = vector.extract_strided_slice %27 {offsets = [0, 128], sizes = [8, 128], strides = [1, 1]} : vector<8x384xf32> to vector<8x128xf32>
    %32 = vector.extract_strided_slice %27 {offsets = [0, 256], sizes = [8, 128], strides = [1, 1]} : vector<8x384xf32> to vector<8x128xf32>
    %33 = arith.mulf %31, %14 : vector<8x128xf32>
    %34 = arith.mulf %30, %29 : vector<8x128xf32>
    %35 = arith.addf %33, %34 : vector<8x128xf32>
    %36 = math.tanh %35 : vector<8x128xf32>
    %37 = arith.mulf %32, %36 : vector<8x128xf32>
    %38 = arith.index_cast %16 : i32 to index
    %c0_21 = arith.constant 0 : index
    %39 = vector.load %arg11[%38, %c0_21] : memref<64x128xf32, #tpu.memory_space<vmem>>, vector<8x128xf32>
    tpu.vector_store %arg11[%38, %c0_21], %37 {strides = array<i32>} : memref<64x128xf32, #tpu.memory_space<vmem>>, vector<8x128xf32>,
    %c1_i32 = arith.constant 1 : i32
    %c8_i32_22 = arith.constant 8 : i32
    %40 = arith.muli %c1_i32, %c8_i32_22 : i32
    %41 = tpu.assume_multiple %40, 8 : i32
    %42 = arith.index_cast %41 : i32 to index
    %c0_23 = arith.constant 0 : index
    %43 = vector.load %arg10[%42, %c0_23] : memref<64x512xf32, #tpu.memory_space<vmem>>, vector<8x512xf32>
    %c0_24 = arith.constant 0 : index
    %c0_25 = arith.constant 0 : index
    %44 = vector.load %arg4[%c0_24, %c0_25] : memref<128x512xf32, #tpu.memory_space<vmem>>, vector<128x512xf32>
    %cst_26 = arith.constant dense<0.000000e+00> : vector<8x512xf32>
    %45 = tpu.matmul %37, %44, %cst_26 {dimension_numbers = #tpu.dot_dimension_numbers<[1], [0], [0], [1], [0, 0, 1, 1], [], []>} : vector<8x128xf32>, vector<128x512xf32>, vector<8x512xf32> -> vector<8x512xf32>
    %46 = arith.addf %43, %45 : vector<8x512xf32>
    %47 = vector.extract_strided_slice %46 {offsets = [0, 0], sizes = [8, 384], strides = [1, 1]} : vector<8x512xf32> to vector<8x384xf32>
    %48 = arith.negf %47 : vector<8x384xf32>
    %49 = math.exp %48 : vector<8x384xf32>
    %cst_27 = arith.constant 1.000000e+00 : f32
    %50 = vector.broadcast %cst_27 : f32 to vector<8x384xf32>
    %51 = arith.addf %50, %49 : vector<8x384xf32>
    %52 = arith.divf %50, %51 : vector<8x384xf32>
    %53 = vector.extract_strided_slice %46 {offsets = [0, 384], sizes = [8, 128], strides = [1, 1]} : vector<8x512xf32> to vector<8x128xf32>
    %54 = math.tanh %53 : vector<8x128xf32>
    %55 = vector.extract_strided_slice %52 {offsets = [0, 0], sizes = [8, 128], strides = [1, 1]} : vector<8x384xf32> to vector<8x128xf32>
    %56 = vector.extract_strided_slice %52 {offsets = [0, 128], sizes = [8, 128], strides = [1, 1]} : vector<8x384xf32> to vector<8x128xf32>
    %57 = vector.extract_strided_slice %52 {offsets = [0, 256], sizes = [8, 128], strides = [1, 1]} : vector<8x384xf32> to vector<8x128xf32>
    %58 = arith.mulf %56, %35 : vector<8x128xf32>
    %59 = arith.mulf %55, %54 : vector<8x128xf32>
    %60 = arith.addf %58, %59 : vector<8x128xf32>
    %61 = math.tanh %60 : vector<8x128xf32>
    %62 = arith.mulf %57, %61 : vector<8x128xf32>
    %63 = arith.index_cast %41 : i32 to index
    %c0_28 = arith.constant 0 : index
    %64 = vector.load %arg11[%63, %c0_28] : memref<64x128xf32, #tpu.memory_space<vmem>>, vector<8x128xf32>
    tpu.vector_store %arg11[%63, %c0_28], %62 {strides = array<i32>} : memref<64x128xf32, #tpu.memory_space<vmem>>, vector<8x128xf32>,
    %c2_i32 = arith.constant 2 : i32
    %c8_i32_29 = arith.constant 8 : i32
    %65 = arith.muli %c2_i32, %c8_i32_29 : i32
    %66 = tpu.assume_multiple %65, 8 : i32
    %67 = arith.index_cast %66 : i32 to index
    %c0_30 = arith.constant 0 : index
    %68 = vector.load %arg10[%67, %c0_30] : memref<64x512xf32, #tpu.memory_space<vmem>>, vector<8x512xf32>
    %c0_31 = arith.constant 0 : index
    %c0_32 = arith.constant 0 : index
    %69 = vector.load %arg4[%c0_31, %c0_32] : memref<128x512xf32, #tpu.memory_space<vmem>>, vector<128x512xf32>
    %cst_33 = arith.constant dense<0.000000e+00> : vector<8x512xf32>
    %70 = tpu.matmul %62, %69, %cst_33 {dimension_numbers = #tpu.dot_dimension_numbers<[1], [0], [0], [1], [0, 0, 1, 1], [], []>} : vector<8x128xf32>, vector<128x512xf32>, vector<8x512xf32> -> vector<8x512xf32>
    %71 = arith.addf %68, %70 : vector<8x512xf32>
    %72 = vector.extract_strided_slice %71 {offsets = [0, 0], sizes = [8, 384], strides = [1, 1]} : vector<8x512xf32> to vector<8x384xf32>
    %73 = arith.negf %72 : vector<8x384xf32>
    %74 = math.exp %73 : vector<8x384xf32>
    %cst_34 = arith.constant 1.000000e+00 : f32
    %75 = vector.broadcast %cst_34 : f32 to vector<8x384xf32>
    %76 = arith.addf %75, %74 : vector<8x384xf32>
    %77 = arith.divf %75, %76 : vector<8x384xf32>
    %78 = vector.extract_strided_slice %71 {offsets = [0, 384], sizes = [8, 128], strides = [1, 1]} : vector<8x512xf32> to vector<8x128xf32>
    %79 = math.tanh %78 : vector<8x128xf32>
    %80 = vector.extract_strided_slice %77 {offsets = [0, 0], sizes = [8, 128], strides = [1, 1]} : vector<8x384xf32> to vector<8x128xf32>
    %81 = vector.extract_strided_slice %77 {offsets = [0, 128], sizes = [8, 128], strides = [1, 1]} : vector<8x384xf32> to vector<8x128xf32>
    %82 = vector.extract_strided_slice %77 {offsets = [0, 256], sizes = [8, 128], strides = [1, 1]} : vector<8x384xf32> to vector<8x128xf32>
    %83 = arith.mulf %81, %60 : vector<8x128xf32>
    %84 = arith.mulf %80, %79 : vector<8x128xf32>
    %85 = arith.addf %83, %84 : vector<8x128xf32>
    %86 = math.tanh %85 : vector<8x128xf32>
    %87 = arith.mulf %82, %86 : vector<8x128xf32>
    %88 = arith.index_cast %66 : i32 to index
    %c0_35 = arith.constant 0 : index
    %89 = vector.load %arg11[%88, %c0_35] : memref<64x128xf32, #tpu.memory_space<vmem>>, vector<8x128xf32>
    tpu.vector_store %arg11[%88, %c0_35], %87 {strides = array<i32>} : memref<64x128xf32, #tpu.memory_space<vmem>>, vector<8x128xf32>,
    %c3_i32 = arith.constant 3 : i32
    %c8_i32_36 = arith.constant 8 : i32
    %90 = arith.muli %c3_i32, %c8_i32_36 : i32
    %91 = tpu.assume_multiple %90, 8 : i32
    %92 = arith.index_cast %91 : i32 to index
    %c0_37 = arith.constant 0 : index
    %93 = vector.load %arg10[%92, %c0_37] : memref<64x512xf32, #tpu.memory_space<vmem>>, vector<8x512xf32>
    %c0_38 = arith.constant 0 : index
    %c0_39 = arith.constant 0 : index
    %94 = vector.load %arg4[%c0_38, %c0_39] : memref<128x512xf32, #tpu.memory_space<vmem>>, vector<128x512xf32>
    %cst_40 = arith.constant dense<0.000000e+00> : vector<8x512xf32>
    %95 = tpu.matmul %87, %94, %cst_40 {dimension_numbers = #tpu.dot_dimension_numbers<[1], [0], [0], [1], [0, 0, 1, 1], [], []>} : vector<8x128xf32>, vector<128x512xf32>, vector<8x512xf32> -> vector<8x512xf32>
    %96 = arith.addf %93, %95 : vector<8x512xf32>
    %97 = vector.extract_strided_slice %96 {offsets = [0, 0], sizes = [8, 384], strides = [1, 1]} : vector<8x512xf32> to vector<8x384xf32>
    %98 = arith.negf %97 : vector<8x384xf32>
    %99 = math.exp %98 : vector<8x384xf32>
    %cst_41 = arith.constant 1.000000e+00 : f32
    %100 = vector.broadcast %cst_41 : f32 to vector<8x384xf32>
    %101 = arith.addf %100, %99 : vector<8x384xf32>
    %102 = arith.divf %100, %101 : vector<8x384xf32>
    %103 = vector.extract_strided_slice %96 {offsets = [0, 384], sizes = [8, 128], strides = [1, 1]} : vector<8x512xf32> to vector<8x128xf32>
    %104 = math.tanh %103 : vector<8x128xf32>
    %105 = vector.extract_strided_slice %102 {offsets = [0, 0], sizes = [8, 128], strides = [1, 1]} : vector<8x384xf32> to vector<8x128xf32>
    %106 = vector.extract_strided_slice %102 {offsets = [0, 128], sizes = [8, 128], strides = [1, 1]} : vector<8x384xf32> to vector<8x128xf32>
    %107 = vector.extract_strided_slice %102 {offsets = [0, 256], sizes = [8, 128], strides = [1, 1]} : vector<8x384xf32> to vector<8x128xf32>
    %108 = arith.mulf %106, %85 : vector<8x128xf32>
    %109 = arith.mulf %105, %104 : vector<8x128xf32>
    %110 = arith.addf %108, %109 : vector<8x128xf32>
    %111 = math.tanh %110 : vector<8x128xf32>
    %112 = arith.mulf %107, %111 : vector<8x128xf32>
    %113 = arith.index_cast %91 : i32 to index
    %c0_42 = arith.constant 0 : index
    %114 = vector.load %arg11[%113, %c0_42] : memref<64x128xf32, #tpu.memory_space<vmem>>, vector<8x128xf32>
    tpu.vector_store %arg11[%113, %c0_42], %112 {strides = array<i32>} : memref<64x128xf32, #tpu.memory_space<vmem>>, vector<8x128xf32>,
    %c4_i32 = arith.constant 4 : i32
    %c8_i32_43 = arith.constant 8 : i32
    %115 = arith.muli %c4_i32, %c8_i32_43 : i32
    %116 = tpu.assume_multiple %115, 8 : i32
    %117 = arith.index_cast %116 : i32 to index
    %c0_44 = arith.constant 0 : index
    %118 = vector.load %arg10[%117, %c0_44] : memref<64x512xf32, #tpu.memory_space<vmem>>, vector<8x512xf32>
    %c0_45 = arith.constant 0 : index
    %c0_46 = arith.constant 0 : index
    %119 = vector.load %arg4[%c0_45, %c0_46] : memref<128x512xf32, #tpu.memory_space<vmem>>, vector<128x512xf32>
    %cst_47 = arith.constant dense<0.000000e+00> : vector<8x512xf32>
    %120 = tpu.matmul %112, %119, %cst_47 {dimension_numbers = #tpu.dot_dimension_numbers<[1], [0], [0], [1], [0, 0, 1, 1], [], []>} : vector<8x128xf32>, vector<128x512xf32>, vector<8x512xf32> -> vector<8x512xf32>
    %121 = arith.addf %118, %120 : vector<8x512xf32>
    %122 = vector.extract_strided_slice %121 {offsets = [0, 0], sizes = [8, 384], strides = [1, 1]} : vector<8x512xf32> to vector<8x384xf32>
    %123 = arith.negf %122 : vector<8x384xf32>
    %124 = math.exp %123 : vector<8x384xf32>
    %cst_48 = arith.constant 1.000000e+00 : f32
    %125 = vector.broadcast %cst_48 : f32 to vector<8x384xf32>
    %126 = arith.addf %125, %124 : vector<8x384xf32>
    %127 = arith.divf %125, %126 : vector<8x384xf32>
    %128 = vector.extract_strided_slice %121 {offsets = [0, 384], sizes = [8, 128], strides = [1, 1]} : vector<8x512xf32> to vector<8x128xf32>
    %129 = math.tanh %128 : vector<8x128xf32>
    %130 = vector.extract_strided_slice %127 {offsets = [0, 0], sizes = [8, 128], strides = [1, 1]} : vector<8x384xf32> to vector<8x128xf32>
    %131 = vector.extract_strided_slice %127 {offsets = [0, 128], sizes = [8, 128], strides = [1, 1]} : vector<8x384xf32> to vector<8x128xf32>
    %132 = vector.extract_strided_slice %127 {offsets = [0, 256], sizes = [8, 128], strides = [1, 1]} : vector<8x384xf32> to vector<8x128xf32>
    %133 = arith.mulf %131, %110 : vector<8x128xf32>
    %134 = arith.mulf %130, %129 : vector<8x128xf32>
    %135 = arith.addf %133, %134 : vector<8x128xf32>
    %136 = math.tanh %135 : vector<8x128xf32>
    %137 = arith.mulf %132, %136 : vector<8x128xf32>
    %138 = arith.index_cast %116 : i32 to index
    %c0_49 = arith.constant 0 : index
    %139 = vector.load %arg11[%138, %c0_49] : memref<64x128xf32, #tpu.memory_space<vmem>>, vector<8x128xf32>
    tpu.vector_store %arg11[%138, %c0_49], %137 {strides = array<i32>} : memref<64x128xf32, #tpu.memory_space<vmem>>, vector<8x128xf32>,
    %c5_i32 = arith.constant 5 : i32
    %c8_i32_50 = arith.constant 8 : i32
    %140 = arith.muli %c5_i32, %c8_i32_50 : i32
    %141 = tpu.assume_multiple %140, 8 : i32
    %142 = arith.index_cast %141 : i32 to index
    %c0_51 = arith.constant 0 : index
    %143 = vector.load %arg10[%142, %c0_51] : memref<64x512xf32, #tpu.memory_space<vmem>>, vector<8x512xf32>
    %c0_52 = arith.constant 0 : index
    %c0_53 = arith.constant 0 : index
    %144 = vector.load %arg4[%c0_52, %c0_53] : memref<128x512xf32, #tpu.memory_space<vmem>>, vector<128x512xf32>
    %cst_54 = arith.constant dense<0.000000e+00> : vector<8x512xf32>
    %145 = tpu.matmul %137, %144, %cst_54 {dimension_numbers = #tpu.dot_dimension_numbers<[1], [0], [0], [1], [0, 0, 1, 1], [], []>} : vector<8x128xf32>, vector<128x512xf32>, vector<8x512xf32> -> vector<8x512xf32>
    %146 = arith.addf %143, %145 : vector<8x512xf32>
    %147 = vector.extract_strided_slice %146 {offsets = [0, 0], sizes = [8, 384], strides = [1, 1]} : vector<8x512xf32> to vector<8x384xf32>
    %148 = arith.negf %147 : vector<8x384xf32>
    %149 = math.exp %148 : vector<8x384xf32>
    %cst_55 = arith.constant 1.000000e+00 : f32
    %150 = vector.broadcast %cst_55 : f32 to vector<8x384xf32>
    %151 = arith.addf %150, %149 : vector<8x384xf32>
    %152 = arith.divf %150, %151 : vector<8x384xf32>
    %153 = vector.extract_strided_slice %146 {offsets = [0, 384], sizes = [8, 128], strides = [1, 1]} : vector<8x512xf32> to vector<8x128xf32>
    %154 = math.tanh %153 : vector<8x128xf32>
    %155 = vector.extract_strided_slice %152 {offsets = [0, 0], sizes = [8, 128], strides = [1, 1]} : vector<8x384xf32> to vector<8x128xf32>
    %156 = vector.extract_strided_slice %152 {offsets = [0, 128], sizes = [8, 128], strides = [1, 1]} : vector<8x384xf32> to vector<8x128xf32>
    %157 = vector.extract_strided_slice %152 {offsets = [0, 256], sizes = [8, 128], strides = [1, 1]} : vector<8x384xf32> to vector<8x128xf32>
    %158 = arith.mulf %156, %135 : vector<8x128xf32>
    %159 = arith.mulf %155, %154 : vector<8x128xf32>
    %160 = arith.addf %158, %159 : vector<8x128xf32>
    %161 = math.tanh %160 : vector<8x128xf32>
    %162 = arith.mulf %157, %161 : vector<8x128xf32>
    %163 = arith.index_cast %141 : i32 to index
    %c0_56 = arith.constant 0 : index
    %164 = vector.load %arg11[%163, %c0_56] : memref<64x128xf32, #tpu.memory_space<vmem>>, vector<8x128xf32>
    tpu.vector_store %arg11[%163, %c0_56], %162 {strides = array<i32>} : memref<64x128xf32, #tpu.memory_space<vmem>>, vector<8x128xf32>,
    %c6_i32 = arith.constant 6 : i32
    %c8_i32_57 = arith.constant 8 : i32
    %165 = arith.muli %c6_i32, %c8_i32_57 : i32
    %166 = tpu.assume_multiple %165, 8 : i32
    %167 = arith.index_cast %166 : i32 to index
    %c0_58 = arith.constant 0 : index
    %168 = vector.load %arg10[%167, %c0_58] : memref<64x512xf32, #tpu.memory_space<vmem>>, vector<8x512xf32>
    %c0_59 = arith.constant 0 : index
    %c0_60 = arith.constant 0 : index
    %169 = vector.load %arg4[%c0_59, %c0_60] : memref<128x512xf32, #tpu.memory_space<vmem>>, vector<128x512xf32>
    %cst_61 = arith.constant dense<0.000000e+00> : vector<8x512xf32>
    %170 = tpu.matmul %162, %169, %cst_61 {dimension_numbers = #tpu.dot_dimension_numbers<[1], [0], [0], [1], [0, 0, 1, 1], [], []>} : vector<8x128xf32>, vector<128x512xf32>, vector<8x512xf32> -> vector<8x512xf32>
    %171 = arith.addf %168, %170 : vector<8x512xf32>
    %172 = vector.extract_strided_slice %171 {offsets = [0, 0], sizes = [8, 384], strides = [1, 1]} : vector<8x512xf32> to vector<8x384xf32>
    %173 = arith.negf %172 : vector<8x384xf32>
    %174 = math.exp %173 : vector<8x384xf32>
    %cst_62 = arith.constant 1.000000e+00 : f32
    %175 = vector.broadcast %cst_62 : f32 to vector<8x384xf32>
    %176 = arith.addf %175, %174 : vector<8x384xf32>
    %177 = arith.divf %175, %176 : vector<8x384xf32>
    %178 = vector.extract_strided_slice %171 {offsets = [0, 384], sizes = [8, 128], strides = [1, 1]} : vector<8x512xf32> to vector<8x128xf32>
    %179 = math.tanh %178 : vector<8x128xf32>
    %180 = vector.extract_strided_slice %177 {offsets = [0, 0], sizes = [8, 128], strides = [1, 1]} : vector<8x384xf32> to vector<8x128xf32>
    %181 = vector.extract_strided_slice %177 {offsets = [0, 128], sizes = [8, 128], strides = [1, 1]} : vector<8x384xf32> to vector<8x128xf32>
    %182 = vector.extract_strided_slice %177 {offsets = [0, 256], sizes = [8, 128], strides = [1, 1]} : vector<8x384xf32> to vector<8x128xf32>
    %183 = arith.mulf %181, %160 : vector<8x128xf32>
    %184 = arith.mulf %180, %179 : vector<8x128xf32>
    %185 = arith.addf %183, %184 : vector<8x128xf32>
    %186 = math.tanh %185 : vector<8x128xf32>
    %187 = arith.mulf %182, %186 : vector<8x128xf32>
    %188 = arith.index_cast %166 : i32 to index
    %c0_63 = arith.constant 0 : index
    %189 = vector.load %arg11[%188, %c0_63] : memref<64x128xf32, #tpu.memory_space<vmem>>, vector<8x128xf32>
    tpu.vector_store %arg11[%188, %c0_63], %187 {strides = array<i32>} : memref<64x128xf32, #tpu.memory_space<vmem>>, vector<8x128xf32>,
    %c7_i32 = arith.constant 7 : i32
    %c8_i32_64 = arith.constant 8 : i32
    %190 = arith.muli %c7_i32, %c8_i32_64 : i32
    %191 = tpu.assume_multiple %190, 8 : i32
    %192 = arith.index_cast %191 : i32 to index
    %c0_65 = arith.constant 0 : index
    %193 = vector.load %arg10[%192, %c0_65] : memref<64x512xf32, #tpu.memory_space<vmem>>, vector<8x512xf32>
    %c0_66 = arith.constant 0 : index
    %c0_67 = arith.constant 0 : index
    %194 = vector.load %arg4[%c0_66, %c0_67] : memref<128x512xf32, #tpu.memory_space<vmem>>, vector<128x512xf32>
    %cst_68 = arith.constant dense<0.000000e+00> : vector<8x512xf32>
    %195 = tpu.matmul %187, %194, %cst_68 {dimension_numbers = #tpu.dot_dimension_numbers<[1], [0], [0], [1], [0, 0, 1, 1], [], []>} : vector<8x128xf32>, vector<128x512xf32>, vector<8x512xf32> -> vector<8x512xf32>
    %196 = arith.addf %193, %195 : vector<8x512xf32>
    %197 = vector.extract_strided_slice %196 {offsets = [0, 0], sizes = [8, 384], strides = [1, 1]} : vector<8x512xf32> to vector<8x384xf32>
    %198 = arith.negf %197 : vector<8x384xf32>
    %199 = math.exp %198 : vector<8x384xf32>
    %cst_69 = arith.constant 1.000000e+00 : f32
    %200 = vector.broadcast %cst_69 : f32 to vector<8x384xf32>
    %201 = arith.addf %200, %199 : vector<8x384xf32>
    %202 = arith.divf %200, %201 : vector<8x384xf32>
    %203 = vector.extract_strided_slice %196 {offsets = [0, 384], sizes = [8, 128], strides = [1, 1]} : vector<8x512xf32> to vector<8x128xf32>
    %204 = math.tanh %203 : vector<8x128xf32>
    %205 = vector.extract_strided_slice %202 {offsets = [0, 0], sizes = [8, 128], strides = [1, 1]} : vector<8x384xf32> to vector<8x128xf32>
    %206 = vector.extract_strided_slice %202 {offsets = [0, 128], sizes = [8, 128], strides = [1, 1]} : vector<8x384xf32> to vector<8x128xf32>
    %207 = vector.extract_strided_slice %202 {offsets = [0, 256], sizes = [8, 128], strides = [1, 1]} : vector<8x384xf32> to vector<8x128xf32>
    %208 = arith.mulf %206, %185 : vector<8x128xf32>
    %209 = arith.mulf %205, %204 : vector<8x128xf32>
    %210 = arith.addf %208, %209 : vector<8x128xf32>
    %211 = math.tanh %210 : vector<8x128xf32>
    %212 = arith.mulf %207, %211 : vector<8x128xf32>
    %213 = arith.index_cast %191 : i32 to index
    %c0_70 = arith.constant 0 : index
    %214 = vector.load %arg11[%213, %c0_70] : memref<64x128xf32, #tpu.memory_space<vmem>>, vector<8x128xf32>
    tpu.vector_store %arg11[%213, %c0_70], %212 {strides = array<i32>} : memref<64x128xf32, #tpu.memory_space<vmem>>, vector<8x128xf32>,
    %c8_i32_71 = arith.constant 8 : i32
    %c0_72 = arith.constant 0 : index
    %c0_73 = arith.constant 0 : index
    %c0_74 = arith.constant 0 : index
    %215 = vector.load %arg12[%c0_72, %c0_73, %c0_74] : memref<2x8x128xf32, #tpu.memory_space<vmem>>, vector<1x8x128xf32>
    %216 = vector.shape_cast %215 : vector<1x8x128xf32> to vector<8x128xf32>
    %217 = vector.shape_cast %212 : vector<8x128xf32> to vector<1x8x128xf32>
    tpu.vector_store %arg12[%c0_72, %c0_73, %c0_74], %217 {strides = array<i32>} : memref<2x8x128xf32, #tpu.memory_space<vmem>>, vector<1x8x128xf32>,
    %c0_75 = arith.constant 0 : index
    %c0_76 = arith.constant 0 : index
    %c0_77 = arith.constant 0 : index
    %218 = vector.load %arg13[%c0_75, %c0_76, %c0_77] : memref<2x8x128xf32, #tpu.memory_space<vmem>>, vector<1x8x128xf32>
    %219 = vector.shape_cast %218 : vector<1x8x128xf32> to vector<8x128xf32>
    %220 = vector.shape_cast %210 : vector<8x128xf32> to vector<1x8x128xf32>
    tpu.vector_store %arg13[%c0_75, %c0_76, %c0_77], %220 {strides = array<i32>} : memref<2x8x128xf32, #tpu.memory_space<vmem>>, vector<1x8x128xf32>,
    %c0_78 = arith.constant 0 : index
    %c0_79 = arith.constant 0 : index
    %221 = vector.load %arg11[%c0_78, %c0_79] : memref<64x128xf32, #tpu.memory_space<vmem>>, vector<64x128xf32>
    %c0_80 = arith.constant 0 : index
    %c0_81 = arith.constant 0 : index
    %222 = vector.load %arg6[%c0_80, %c0_81] : memref<128x512xf32, #tpu.memory_space<vmem>>, vector<128x512xf32>
    %cst_82 = arith.constant dense<0.000000e+00> : vector<64x512xf32>
    %223 = tpu.matmul %221, %222, %cst_82 {dimension_numbers = #tpu.dot_dimension_numbers<[1], [0], [0], [1], [0, 0, 1, 1], [], []>} : vector<64x128xf32>, vector<128x512xf32>, vector<64x512xf32> -> vector<64x512xf32>
    %c0_83 = arith.constant 0 : index
    %c0_84 = arith.constant 0 : index
    %224 = vector.load %arg8[%c0_83, %c0_84] : memref<1x512xf32, #tpu.memory_space<vmem>>, vector<1x512xf32>
    %225 = vector.broadcast %224 : vector<1x512xf32> to vector<64x512xf32>
    %226 = arith.addf %223, %225 : vector<64x512xf32>
    %c0_85 = arith.constant 0 : index
    %c0_86 = arith.constant 0 : index
    %227 = vector.load %arg10[%c0_85, %c0_86] : memref<64x512xf32, #tpu.memory_space<vmem>>, vector<64x512xf32>
    tpu.vector_store %arg10[%c0_85, %c0_86], %226 {strides = array<i32>} : memref<64x512xf32, #tpu.memory_space<vmem>>, vector<64x512xf32>,
    %c1 = arith.constant 1 : index
    %c0_87 = arith.constant 0 : index
    %c0_88 = arith.constant 0 : index
    %228 = vector.load %arg12[%c1, %c0_87, %c0_88] : memref<2x8x128xf32, #tpu.memory_space<vmem>>, vector<1x8x128xf32>
    %229 = vector.shape_cast %228 : vector<1x8x128xf32> to vector<8x128xf32>
    %c1_89 = arith.constant 1 : index
    %c0_90 = arith.constant 0 : index
    %c0_91 = arith.constant 0 : index
    %230 = vector.load %arg13[%c1_89, %c0_90, %c0_91] : memref<2x8x128xf32, #tpu.memory_space<vmem>>, vector<1x8x128xf32>
    %231 = vector.shape_cast %230 : vector<1x8x128xf32> to vector<8x128xf32>
    %c0_i32_92 = arith.constant 0 : i32
    %c8_i32_93 = arith.constant 8 : i32
    %232 = arith.muli %c0_i32_92, %c8_i32_93 : i32
    %233 = tpu.assume_multiple %232, 8 : i32
    %234 = arith.index_cast %233 : i32 to index
    %c0_94 = arith.constant 0 : index
    %235 = vector.load %arg10[%234, %c0_94] : memref<64x512xf32, #tpu.memory_space<vmem>>, vector<8x512xf32>
    %c0_95 = arith.constant 0 : index
    %c0_96 = arith.constant 0 : index
    %236 = vector.load %arg7[%c0_95, %c0_96] : memref<128x512xf32, #tpu.memory_space<vmem>>, vector<128x512xf32>
    %cst_97 = arith.constant dense<0.000000e+00> : vector<8x512xf32>
    %237 = tpu.matmul %229, %236, %cst_97 {dimension_numbers = #tpu.dot_dimension_numbers<[1], [0], [0], [1], [0, 0, 1, 1], [], []>} : vector<8x128xf32>, vector<128x512xf32>, vector<8x512xf32> -> vector<8x512xf32>
    %238 = arith.addf %235, %237 : vector<8x512xf32>
    %239 = vector.extract_strided_slice %238 {offsets = [0, 0], sizes = [8, 384], strides = [1, 1]} : vector<8x512xf32> to vector<8x384xf32>
    %240 = arith.negf %239 : vector<8x384xf32>
    %241 = math.exp %240 : vector<8x384xf32>
    %cst_98 = arith.constant 1.000000e+00 : f32
    %242 = vector.broadcast %cst_98 : f32 to vector<8x384xf32>
    %243 = arith.addf %242, %241 : vector<8x384xf32>
    %244 = arith.divf %242, %243 : vector<8x384xf32>
    %245 = vector.extract_strided_slice %238 {offsets = [0, 384], sizes = [8, 128], strides = [1, 1]} : vector<8x512xf32> to vector<8x128xf32>
    %246 = math.tanh %245 : vector<8x128xf32>
    %247 = vector.extract_strided_slice %244 {offsets = [0, 0], sizes = [8, 128], strides = [1, 1]} : vector<8x384xf32> to vector<8x128xf32>
    %248 = vector.extract_strided_slice %244 {offsets = [0, 128], sizes = [8, 128], strides = [1, 1]} : vector<8x384xf32> to vector<8x128xf32>
    %249 = vector.extract_strided_slice %244 {offsets = [0, 256], sizes = [8, 128], strides = [1, 1]} : vector<8x384xf32> to vector<8x128xf32>
    %250 = arith.mulf %248, %231 : vector<8x128xf32>
    %251 = arith.mulf %247, %246 : vector<8x128xf32>
    %252 = arith.addf %250, %251 : vector<8x128xf32>
    %253 = math.tanh %252 : vector<8x128xf32>
    %254 = arith.mulf %249, %253 : vector<8x128xf32>
    %c1_i32_99 = arith.constant 1 : i32
    %c8_i32_100 = arith.constant 8 : i32
    %255 = arith.muli %c1_i32_99, %c8_i32_100 : i32
    %256 = tpu.assume_multiple %255, 8 : i32
    %257 = arith.index_cast %256 : i32 to index
    %c0_101 = arith.constant 0 : index
    %258 = vector.load %arg10[%257, %c0_101] : memref<64x512xf32, #tpu.memory_space<vmem>>, vector<8x512xf32>
    %c0_102 = arith.constant 0 : index
    %c0_103 = arith.constant 0 : index
    %259 = vector.load %arg7[%c0_102, %c0_103] : memref<128x512xf32, #tpu.memory_space<vmem>>, vector<128x512xf32>
    %cst_104 = arith.constant dense<0.000000e+00> : vector<8x512xf32>
    %260 = tpu.matmul %254, %259, %cst_104 {dimension_numbers = #tpu.dot_dimension_numbers<[1], [0], [0], [1], [0, 0, 1, 1], [], []>} : vector<8x128xf32>, vector<128x512xf32>, vector<8x512xf32> -> vector<8x512xf32>
    %261 = arith.addf %258, %260 : vector<8x512xf32>
    %262 = vector.extract_strided_slice %261 {offsets = [0, 0], sizes = [8, 384], strides = [1, 1]} : vector<8x512xf32> to vector<8x384xf32>
    %263 = arith.negf %262 : vector<8x384xf32>
    %264 = math.exp %263 : vector<8x384xf32>
    %cst_105 = arith.constant 1.000000e+00 : f32
    %265 = vector.broadcast %cst_105 : f32 to vector<8x384xf32>
    %266 = arith.addf %265, %264 : vector<8x384xf32>
    %267 = arith.divf %265, %266 : vector<8x384xf32>
    %268 = vector.extract_strided_slice %261 {offsets = [0, 384], sizes = [8, 128], strides = [1, 1]} : vector<8x512xf32> to vector<8x128xf32>
    %269 = math.tanh %268 : vector<8x128xf32>
    %270 = vector.extract_strided_slice %267 {offsets = [0, 0], sizes = [8, 128], strides = [1, 1]} : vector<8x384xf32> to vector<8x128xf32>
    %271 = vector.extract_strided_slice %267 {offsets = [0, 128], sizes = [8, 128], strides = [1, 1]} : vector<8x384xf32> to vector<8x128xf32>
    %272 = vector.extract_strided_slice %267 {offsets = [0, 256], sizes = [8, 128], strides = [1, 1]} : vector<8x384xf32> to vector<8x128xf32>
    %273 = arith.mulf %271, %252 : vector<8x128xf32>
    %274 = arith.mulf %270, %269 : vector<8x128xf32>
    %275 = arith.addf %273, %274 : vector<8x128xf32>
    %276 = math.tanh %275 : vector<8x128xf32>
    %277 = arith.mulf %272, %276 : vector<8x128xf32>
    %c2_i32_106 = arith.constant 2 : i32
    %c8_i32_107 = arith.constant 8 : i32
    %278 = arith.muli %c2_i32_106, %c8_i32_107 : i32
    %279 = tpu.assume_multiple %278, 8 : i32
    %280 = arith.index_cast %279 : i32 to index
    %c0_108 = arith.constant 0 : index
    %281 = vector.load %arg10[%280, %c0_108] : memref<64x512xf32, #tpu.memory_space<vmem>>, vector<8x512xf32>
    %c0_109 = arith.constant 0 : index
    %c0_110 = arith.constant 0 : index
    %282 = vector.load %arg7[%c0_109, %c0_110] : memref<128x512xf32, #tpu.memory_space<vmem>>, vector<128x512xf32>
    %cst_111 = arith.constant dense<0.000000e+00> : vector<8x512xf32>
    %283 = tpu.matmul %277, %282, %cst_111 {dimension_numbers = #tpu.dot_dimension_numbers<[1], [0], [0], [1], [0, 0, 1, 1], [], []>} : vector<8x128xf32>, vector<128x512xf32>, vector<8x512xf32> -> vector<8x512xf32>
    %284 = arith.addf %281, %283 : vector<8x512xf32>
    %285 = vector.extract_strided_slice %284 {offsets = [0, 0], sizes = [8, 384], strides = [1, 1]} : vector<8x512xf32> to vector<8x384xf32>
    %286 = arith.negf %285 : vector<8x384xf32>
    %287 = math.exp %286 : vector<8x384xf32>
    %cst_112 = arith.constant 1.000000e+00 : f32
    %288 = vector.broadcast %cst_112 : f32 to vector<8x384xf32>
    %289 = arith.addf %288, %287 : vector<8x384xf32>
    %290 = arith.divf %288, %289 : vector<8x384xf32>
    %291 = vector.extract_strided_slice %284 {offsets = [0, 384], sizes = [8, 128], strides = [1, 1]} : vector<8x512xf32> to vector<8x128xf32>
    %292 = math.tanh %291 : vector<8x128xf32>
    %293 = vector.extract_strided_slice %290 {offsets = [0, 0], sizes = [8, 128], strides = [1, 1]} : vector<8x384xf32> to vector<8x128xf32>
    %294 = vector.extract_strided_slice %290 {offsets = [0, 128], sizes = [8, 128], strides = [1, 1]} : vector<8x384xf32> to vector<8x128xf32>
    %295 = vector.extract_strided_slice %290 {offsets = [0, 256], sizes = [8, 128], strides = [1, 1]} : vector<8x384xf32> to vector<8x128xf32>
    %296 = arith.mulf %294, %275 : vector<8x128xf32>
    %297 = arith.mulf %293, %292 : vector<8x128xf32>
    %298 = arith.addf %296, %297 : vector<8x128xf32>
    %299 = math.tanh %298 : vector<8x128xf32>
    %300 = arith.mulf %295, %299 : vector<8x128xf32>
    %c3_i32_113 = arith.constant 3 : i32
    %c8_i32_114 = arith.constant 8 : i32
    %301 = arith.muli %c3_i32_113, %c8_i32_114 : i32
    %302 = tpu.assume_multiple %301, 8 : i32
    %303 = arith.index_cast %302 : i32 to index
    %c0_115 = arith.constant 0 : index
    %304 = vector.load %arg10[%303, %c0_115] : memref<64x512xf32, #tpu.memory_space<vmem>>, vector<8x512xf32>
    %c0_116 = arith.constant 0 : index
    %c0_117 = arith.constant 0 : index
    %305 = vector.load %arg7[%c0_116, %c0_117] : memref<128x512xf32, #tpu.memory_space<vmem>>, vector<128x512xf32>
    %cst_118 = arith.constant dense<0.000000e+00> : vector<8x512xf32>
    %306 = tpu.matmul %300, %305, %cst_118 {dimension_numbers = #tpu.dot_dimension_numbers<[1], [0], [0], [1], [0, 0, 1, 1], [], []>} : vector<8x128xf32>, vector<128x512xf32>, vector<8x512xf32> -> vector<8x512xf32>
    %307 = arith.addf %304, %306 : vector<8x512xf32>
    %308 = vector.extract_strided_slice %307 {offsets = [0, 0], sizes = [8, 384], strides = [1, 1]} : vector<8x512xf32> to vector<8x384xf32>
    %309 = arith.negf %308 : vector<8x384xf32>
    %310 = math.exp %309 : vector<8x384xf32>
    %cst_119 = arith.constant 1.000000e+00 : f32
    %311 = vector.broadcast %cst_119 : f32 to vector<8x384xf32>
    %312 = arith.addf %311, %310 : vector<8x384xf32>
    %313 = arith.divf %311, %312 : vector<8x384xf32>
    %314 = vector.extract_strided_slice %307 {offsets = [0, 384], sizes = [8, 128], strides = [1, 1]} : vector<8x512xf32> to vector<8x128xf32>
    %315 = math.tanh %314 : vector<8x128xf32>
    %316 = vector.extract_strided_slice %313 {offsets = [0, 0], sizes = [8, 128], strides = [1, 1]} : vector<8x384xf32> to vector<8x128xf32>
    %317 = vector.extract_strided_slice %313 {offsets = [0, 128], sizes = [8, 128], strides = [1, 1]} : vector<8x384xf32> to vector<8x128xf32>
    %318 = vector.extract_strided_slice %313 {offsets = [0, 256], sizes = [8, 128], strides = [1, 1]} : vector<8x384xf32> to vector<8x128xf32>
    %319 = arith.mulf %317, %298 : vector<8x128xf32>
    %320 = arith.mulf %316, %315 : vector<8x128xf32>
    %321 = arith.addf %319, %320 : vector<8x128xf32>
    %322 = math.tanh %321 : vector<8x128xf32>
    %323 = arith.mulf %318, %322 : vector<8x128xf32>
    %c4_i32_120 = arith.constant 4 : i32
    %c8_i32_121 = arith.constant 8 : i32
    %324 = arith.muli %c4_i32_120, %c8_i32_121 : i32
    %325 = tpu.assume_multiple %324, 8 : i32
    %326 = arith.index_cast %325 : i32 to index
    %c0_122 = arith.constant 0 : index
    %327 = vector.load %arg10[%326, %c0_122] : memref<64x512xf32, #tpu.memory_space<vmem>>, vector<8x512xf32>
    %c0_123 = arith.constant 0 : index
    %c0_124 = arith.constant 0 : index
    %328 = vector.load %arg7[%c0_123, %c0_124] : memref<128x512xf32, #tpu.memory_space<vmem>>, vector<128x512xf32>
    %cst_125 = arith.constant dense<0.000000e+00> : vector<8x512xf32>
    %329 = tpu.matmul %323, %328, %cst_125 {dimension_numbers = #tpu.dot_dimension_numbers<[1], [0], [0], [1], [0, 0, 1, 1], [], []>} : vector<8x128xf32>, vector<128x512xf32>, vector<8x512xf32> -> vector<8x512xf32>
    %330 = arith.addf %327, %329 : vector<8x512xf32>
    %331 = vector.extract_strided_slice %330 {offsets = [0, 0], sizes = [8, 384], strides = [1, 1]} : vector<8x512xf32> to vector<8x384xf32>
    %332 = arith.negf %331 : vector<8x384xf32>
    %333 = math.exp %332 : vector<8x384xf32>
    %cst_126 = arith.constant 1.000000e+00 : f32
    %334 = vector.broadcast %cst_126 : f32 to vector<8x384xf32>
    %335 = arith.addf %334, %333 : vector<8x384xf32>
    %336 = arith.divf %334, %335 : vector<8x384xf32>
    %337 = vector.extract_strided_slice %330 {offsets = [0, 384], sizes = [8, 128], strides = [1, 1]} : vector<8x512xf32> to vector<8x128xf32>
    %338 = math.tanh %337 : vector<8x128xf32>
    %339 = vector.extract_strided_slice %336 {offsets = [0, 0], sizes = [8, 128], strides = [1, 1]} : vector<8x384xf32> to vector<8x128xf32>
    %340 = vector.extract_strided_slice %336 {offsets = [0, 128], sizes = [8, 128], strides = [1, 1]} : vector<8x384xf32> to vector<8x128xf32>
    %341 = vector.extract_strided_slice %336 {offsets = [0, 256], sizes = [8, 128], strides = [1, 1]} : vector<8x384xf32> to vector<8x128xf32>
    %342 = arith.mulf %340, %321 : vector<8x128xf32>
    %343 = arith.mulf %339, %338 : vector<8x128xf32>
    %344 = arith.addf %342, %343 : vector<8x128xf32>
    %345 = math.tanh %344 : vector<8x128xf32>
    %346 = arith.mulf %341, %345 : vector<8x128xf32>
    %c5_i32_127 = arith.constant 5 : i32
    %c8_i32_128 = arith.constant 8 : i32
    %347 = arith.muli %c5_i32_127, %c8_i32_128 : i32
    %348 = tpu.assume_multiple %347, 8 : i32
    %349 = arith.index_cast %348 : i32 to index
    %c0_129 = arith.constant 0 : index
    %350 = vector.load %arg10[%349, %c0_129] : memref<64x512xf32, #tpu.memory_space<vmem>>, vector<8x512xf32>
    %c0_130 = arith.constant 0 : index
    %c0_131 = arith.constant 0 : index
    %351 = vector.load %arg7[%c0_130, %c0_131] : memref<128x512xf32, #tpu.memory_space<vmem>>, vector<128x512xf32>
    %cst_132 = arith.constant dense<0.000000e+00> : vector<8x512xf32>
    %352 = tpu.matmul %346, %351, %cst_132 {dimension_numbers = #tpu.dot_dimension_numbers<[1], [0], [0], [1], [0, 0, 1, 1], [], []>} : vector<8x128xf32>, vector<128x512xf32>, vector<8x512xf32> -> vector<8x512xf32>
    %353 = arith.addf %350, %352 : vector<8x512xf32>
    %354 = vector.extract_strided_slice %353 {offsets = [0, 0], sizes = [8, 384], strides = [1, 1]} : vector<8x512xf32> to vector<8x384xf32>
    %355 = arith.negf %354 : vector<8x384xf32>
    %356 = math.exp %355 : vector<8x384xf32>
    %cst_133 = arith.constant 1.000000e+00 : f32
    %357 = vector.broadcast %cst_133 : f32 to vector<8x384xf32>
    %358 = arith.addf %357, %356 : vector<8x384xf32>
    %359 = arith.divf %357, %358 : vector<8x384xf32>
    %360 = vector.extract_strided_slice %353 {offsets = [0, 384], sizes = [8, 128], strides = [1, 1]} : vector<8x512xf32> to vector<8x128xf32>
    %361 = math.tanh %360 : vector<8x128xf32>
    %362 = vector.extract_strided_slice %359 {offsets = [0, 0], sizes = [8, 128], strides = [1, 1]} : vector<8x384xf32> to vector<8x128xf32>
    %363 = vector.extract_strided_slice %359 {offsets = [0, 128], sizes = [8, 128], strides = [1, 1]} : vector<8x384xf32> to vector<8x128xf32>
    %364 = vector.extract_strided_slice %359 {offsets = [0, 256], sizes = [8, 128], strides = [1, 1]} : vector<8x384xf32> to vector<8x128xf32>
    %365 = arith.mulf %363, %344 : vector<8x128xf32>
    %366 = arith.mulf %362, %361 : vector<8x128xf32>
    %367 = arith.addf %365, %366 : vector<8x128xf32>
    %368 = math.tanh %367 : vector<8x128xf32>
    %369 = arith.mulf %364, %368 : vector<8x128xf32>
    %c6_i32_134 = arith.constant 6 : i32
    %c8_i32_135 = arith.constant 8 : i32
    %370 = arith.muli %c6_i32_134, %c8_i32_135 : i32
    %371 = tpu.assume_multiple %370, 8 : i32
    %372 = arith.index_cast %371 : i32 to index
    %c0_136 = arith.constant 0 : index
    %373 = vector.load %arg10[%372, %c0_136] : memref<64x512xf32, #tpu.memory_space<vmem>>, vector<8x512xf32>
    %c0_137 = arith.constant 0 : index
    %c0_138 = arith.constant 0 : index
    %374 = vector.load %arg7[%c0_137, %c0_138] : memref<128x512xf32, #tpu.memory_space<vmem>>, vector<128x512xf32>
    %cst_139 = arith.constant dense<0.000000e+00> : vector<8x512xf32>
    %375 = tpu.matmul %369, %374, %cst_139 {dimension_numbers = #tpu.dot_dimension_numbers<[1], [0], [0], [1], [0, 0, 1, 1], [], []>} : vector<8x128xf32>, vector<128x512xf32>, vector<8x512xf32> -> vector<8x512xf32>
    %376 = arith.addf %373, %375 : vector<8x512xf32>
    %377 = vector.extract_strided_slice %376 {offsets = [0, 0], sizes = [8, 384], strides = [1, 1]} : vector<8x512xf32> to vector<8x384xf32>
    %378 = arith.negf %377 : vector<8x384xf32>
    %379 = math.exp %378 : vector<8x384xf32>
    %cst_140 = arith.constant 1.000000e+00 : f32
    %380 = vector.broadcast %cst_140 : f32 to vector<8x384xf32>
    %381 = arith.addf %380, %379 : vector<8x384xf32>
    %382 = arith.divf %380, %381 : vector<8x384xf32>
    %383 = vector.extract_strided_slice %376 {offsets = [0, 384], sizes = [8, 128], strides = [1, 1]} : vector<8x512xf32> to vector<8x128xf32>
    %384 = math.tanh %383 : vector<8x128xf32>
    %385 = vector.extract_strided_slice %382 {offsets = [0, 0], sizes = [8, 128], strides = [1, 1]} : vector<8x384xf32> to vector<8x128xf32>
    %386 = vector.extract_strided_slice %382 {offsets = [0, 128], sizes = [8, 128], strides = [1, 1]} : vector<8x384xf32> to vector<8x128xf32>
    %387 = vector.extract_strided_slice %382 {offsets = [0, 256], sizes = [8, 128], strides = [1, 1]} : vector<8x384xf32> to vector<8x128xf32>
    %388 = arith.mulf %386, %367 : vector<8x128xf32>
    %389 = arith.mulf %385, %384 : vector<8x128xf32>
    %390 = arith.addf %388, %389 : vector<8x128xf32>
    %391 = math.tanh %390 : vector<8x128xf32>
    %392 = arith.mulf %387, %391 : vector<8x128xf32>
    %c7_i32_141 = arith.constant 7 : i32
    %c8_i32_142 = arith.constant 8 : i32
    %393 = arith.muli %c7_i32_141, %c8_i32_142 : i32
    %394 = tpu.assume_multiple %393, 8 : i32
    %395 = arith.index_cast %394 : i32 to index
    %c0_143 = arith.constant 0 : index
    %396 = vector.load %arg10[%395, %c0_143] : memref<64x512xf32, #tpu.memory_space<vmem>>, vector<8x512xf32>
    %c0_144 = arith.constant 0 : index
    %c0_145 = arith.constant 0 : index
    %397 = vector.load %arg7[%c0_144, %c0_145] : memref<128x512xf32, #tpu.memory_space<vmem>>, vector<128x512xf32>
    %cst_146 = arith.constant dense<0.000000e+00> : vector<8x512xf32>
    %398 = tpu.matmul %392, %397, %cst_146 {dimension_numbers = #tpu.dot_dimension_numbers<[1], [0], [0], [1], [0, 0, 1, 1], [], []>} : vector<8x128xf32>, vector<128x512xf32>, vector<8x512xf32> -> vector<8x512xf32>
    %399 = arith.addf %396, %398 : vector<8x512xf32>
    %400 = vector.extract_strided_slice %399 {offsets = [0, 0], sizes = [8, 384], strides = [1, 1]} : vector<8x512xf32> to vector<8x384xf32>
    %401 = arith.negf %400 : vector<8x384xf32>
    %402 = math.exp %401 : vector<8x384xf32>
    %cst_147 = arith.constant 1.000000e+00 : f32
    %403 = vector.broadcast %cst_147 : f32 to vector<8x384xf32>
    %404 = arith.addf %403, %402 : vector<8x384xf32>
    %405 = arith.divf %403, %404 : vector<8x384xf32>
    %406 = vector.extract_strided_slice %399 {offsets = [0, 384], sizes = [8, 128], strides = [1, 1]} : vector<8x512xf32> to vector<8x128xf32>
    %407 = math.tanh %406 : vector<8x128xf32>
    %408 = vector.extract_strided_slice %405 {offsets = [0, 0], sizes = [8, 128], strides = [1, 1]} : vector<8x384xf32> to vector<8x128xf32>
    %409 = vector.extract_strided_slice %405 {offsets = [0, 128], sizes = [8, 128], strides = [1, 1]} : vector<8x384xf32> to vector<8x128xf32>
    %410 = vector.extract_strided_slice %405 {offsets = [0, 256], sizes = [8, 128], strides = [1, 1]} : vector<8x384xf32> to vector<8x128xf32>
    %411 = arith.mulf %409, %390 : vector<8x128xf32>
    %412 = arith.mulf %408, %407 : vector<8x128xf32>
    %413 = arith.addf %411, %412 : vector<8x128xf32>
    %414 = math.tanh %413 : vector<8x128xf32>
    %415 = arith.mulf %410, %414 : vector<8x128xf32>
    %c8_i32_148 = arith.constant 8 : i32
    %c1_149 = arith.constant 1 : index
    %c0_150 = arith.constant 0 : index
    %c0_151 = arith.constant 0 : index
    %416 = vector.load %arg12[%c1_149, %c0_150, %c0_151] : memref<2x8x128xf32, #tpu.memory_space<vmem>>, vector<1x8x128xf32>
    %417 = vector.shape_cast %416 : vector<1x8x128xf32> to vector<8x128xf32>
    %418 = vector.shape_cast %415 : vector<8x128xf32> to vector<1x8x128xf32>
    tpu.vector_store %arg12[%c1_149, %c0_150, %c0_151], %418 {strides = array<i32>} : memref<2x8x128xf32, #tpu.memory_space<vmem>>, vector<1x8x128xf32>,
    %c1_152 = arith.constant 1 : index
    %c0_153 = arith.constant 0 : index
    %c0_154 = arith.constant 0 : index
    %419 = vector.load %arg13[%c1_152, %c0_153, %c0_154] : memref<2x8x128xf32, #tpu.memory_space<vmem>>, vector<1x8x128xf32>
    %420 = vector.shape_cast %419 : vector<1x8x128xf32> to vector<8x128xf32>
    %421 = vector.shape_cast %413 : vector<8x128xf32> to vector<1x8x128xf32>
    tpu.vector_store %arg13[%c1_152, %c0_153, %c0_154], %421 {strides = array<i32>} : memref<2x8x128xf32, #tpu.memory_space<vmem>>, vector<1x8x128xf32>,
    %c0_i32_155 = arith.constant 0 : i32
    %422 = arith.cmpi eq, %arg1, %c0_i32_155 : i32
    %423 = arith.extui %422 : i1 to i32
    %c0_i32_156 = arith.constant 0 : i32
    %424 = arith.cmpi ne, %423, %c0_i32_156 : i32
    scf.if %424 {
      %c0_157 = arith.constant 0 : index
      %c0_158 = arith.constant 0 : index
      %c0_159 = arith.constant 0 : index
      %425 = vector.load %arg12[%c0_157, %c0_158, %c0_159] : memref<2x8x128xf32, #tpu.memory_space<vmem>>, vector<2x8x128xf32>
      %c0_160 = arith.constant 0 : index
      %c0_161 = arith.constant 0 : index
      %c0_162 = arith.constant 0 : index
      %426 = vector.load %arg9[%c0_160, %c0_161, %c0_162] : memref<2x8x128xf32, #tpu.memory_space<vmem>>, vector<2x8x128xf32>
      tpu.vector_store %arg9[%c0_160, %c0_161, %c0_162], %425 {strides = array<i32>} : memref<2x8x128xf32, #tpu.memory_space<vmem>>, vector<2x8x128xf32>,
    } else {
    }
    return
  }
  func.func @transform_0(%arg0: i32, %arg1: i32) -> (i32, i32, i32) {
    %c0_i32 = arith.constant 0 : i32
    %c0_i32_0 = arith.constant 0 : i32
    return %arg0, %arg1, %c0_i32 : i32, i32, i32
  }
  func.func @transform_1(%arg0: i32, %arg1: i32) -> (i32, i32) {
    %c0_i32 = arith.constant 0 : i32
    %c0_i32_0 = arith.constant 0 : i32
    %c0_i32_1 = arith.constant 0 : i32
    return %c0_i32, %c0_i32_0 : i32, i32
  }
  func.func @transform_2(%arg0: i32, %arg1: i32) -> (i32, i32) {
    %c0_i32 = arith.constant 0 : i32
    %c0_i32_0 = arith.constant 0 : i32
    %c0_i32_1 = arith.constant 0 : i32
    return %c0_i32, %c0_i32_0 : i32, i32
  }
  func.func @transform_3(%arg0: i32, %arg1: i32) -> (i32, i32) {
    %c0_i32 = arith.constant 0 : i32
    %c0_i32_0 = arith.constant 0 : i32
    %c0_i32_1 = arith.constant 0 : i32
    return %c0_i32, %c0_i32_0 : i32, i32
  }
  func.func @transform_4(%arg0: i32, %arg1: i32) -> (i32, i32) {
    %c0_i32 = arith.constant 0 : i32
    %c0_i32_0 = arith.constant 0 : i32
    %c0_i32_1 = arith.constant 0 : i32
    return %c0_i32, %c0_i32_0 : i32, i32
  }
  func.func @transform_5(%arg0: i32, %arg1: i32) -> (i32, i32) {
    %c0_i32 = arith.constant 0 : i32
    %c0_i32_0 = arith.constant 0 : i32
    %c0_i32_1 = arith.constant 0 : i32
    return %c0_i32, %c0_i32_0 : i32, i32
  }
  func.func @transform_6(%arg0: i32, %arg1: i32) -> (i32, i32) {
    %c0_i32 = arith.constant 0 : i32
    %c0_i32_0 = arith.constant 0 : i32
    %c0_i32_1 = arith.constant 0 : i32
    return %c0_i32, %c0_i32_0 : i32, i32
  }
  func.func @transform_7(%arg0: i32, %arg1: i32) -> (i32, i32, i32) {
    %c0_i32 = arith.constant 0 : i32
    %c0_i32_0 = arith.constant 0 : i32
    %c0_i32_1 = arith.constant 0 : i32
    return %c0_i32, %arg0, %c0_i32_0 : i32, i32, i32
  }
}

</mosaic_0001>

<bundles_post_ra>
// kernel: encoder_forward.1
= control target key start
LH: loop header
LB: loop body
LE: loop exit
PB: predicated region body
PF: predicated region fallthrough
CT: control target
= control target key end

     0   :  { %v5750_v3 = vmov 0.0   ;;  %s7795_s1 = inlined_call_operand.vmem [shape: f32[128,512], index: 1, kind: input, shape index: {}]   ;;  %s7796_s2 = inlined_call_operand.vmem [shape: f32[128,512], index: 2, kind: input, shape index: {}]   ;;  %s7797_s0 = inlined_call_operand.vmem [shape: f32[1,64,128], index: 0, kind: input, shape index: {}]   ;;  %s7798_s3 = inlined_call_operand.vmem [shape: f32[1,512], index: 3, kind: input, shape index: {}]   ;;  %s7799_s4 = inlined_call_operand.vmem [shape: f32[128,512], index: 4, kind: input, shape index: {}]   ;;  %s7800_s5 = inlined_call_operand.vmem [shape: f32[128,512], index: 5, kind: input, shape index: {}]   ;;  %s7801_s7 = inlined_call_operand.vmem [shape: f32[2,8,128], index: 7, kind: output, shape index: {}]   ;;  %s7802_s6 = inlined_call_operand.vmem [shape: f32[1,512], index: 6, kind: input, shape index: {}]  }
   0x1   :  { %v43_v0 = vld [vmem:[%s7795_s1 + $0x8] sm:$0xff]  ;;  %v45_v2 = vld [vmem:[%s7795_s1 + $0x18] sm:$0xff]  ;;  %192 = vmatprep.mubr.f32.mxu0 %v5750_v3  ;;  %305 = vmatprep.mubr.f32.mxu1 %v5750_v3  ;;  %v42_v6 = vld [vmem:[%s7795_s1] sm:$0xff] }
   0x2   :  { %v47_v1 = vld [vmem:[%s7795_s1 + $0x28] sm:$0xff]  ;;  %v49_v5 = vld [vmem:[%s7795_s1 + $0x38] sm:$0xff]  ;;  %v46_v7 = vld [vmem:[%s7795_s1 + $0x20] sm:$0xff] }
   0x3   :  { %v4213_v4 = vpack.c.bf16 %v47_v1, %v43_v0  ;;  %v4245_v8 = vpack.c.bf16 %v49_v5, %v45_v2  ;;  %v4215_v9 = vpack.c.bf16 %v46_v7, %v42_v6  ;;  %v44_v10 = vld [vmem:[%s7795_s1 + $0x10] sm:$0xff]  ;;  %v51_v12 = vld [vmem:[%s7795_s1 + $0x48] sm:$0xff]  ;;  %v53_v15 = vld [vmem:[%s7795_s1 + $0x58] sm:$0xff] }
   0x4   :  { %v48_v11 = vld [vmem:[%s7795_s1 + $0x30] sm:$0xff]  ;;  %v55_v14 = vld [vmem:[%s7795_s1 + $0x68] sm:$0xff]  ;;  %v57_v16 = vld [vmem:[%s7795_s1 + $0x78] sm:$0xff] }
   0x5   :  { %4214 = vmatprep.subr.bf16.mxu0 %v4213_v4  ;;  %v4247_v13 = vpack.c.bf16 %v48_v11, %v44_v10  ;;  %4246 = vmatprep.subr.bf16.mxu1 %v4245_v8  ;;  %v4217_v17 = vpack.c.bf16 %v55_v14, %v51_v12  ;;  %v4249_v18 = vpack.c.bf16 %v57_v16, %v53_v15  ;;  %v50_v19 = vld [vmem:[%s7795_s1 + $0x40] sm:$0xff]  ;;  %v52_v21 = vld [vmem:[%s7795_s1 + $0x50] sm:$0xff]  ;;  %v59_v24 = vld [vmem:[%s7795_s1 + $0x88] sm:$0xff] }
   0x6   :  { %4216 = vmatpush1.bf16.msra.mxu0 %v4215_v9  ;;  %v54_v20 = vld [vmem:[%s7795_s1 + $0x60] sm:$0xff]  ;;  %v56_v23 = vld [vmem:[%s7795_s1 + $0x70] sm:$0xff]  ;;  %v63_v25 = vld [vmem:[%s7795_s1 + $0xa8] sm:$0xff] }
   0x7   :  { %4248 = vmatpush1.bf16.msra.mxu1 %v4247_v13  ;;  %v4219_v22 = vpack.c.bf16 %v54_v20, %v50_v19  ;;  %4218 = vmatprep.subr.bf16.mxu0 %v4217_v17  ;;  %v4251_v26 = vpack.c.bf16 %v56_v23, %v52_v21  ;;  %v4221_v27 = vpack.c.bf16 %v63_v25, %v59_v24  ;;  %v61_v28 = vld [vmem:[%s7795_s1 + $0x98] sm:$0xff]  ;;  %v58_v30 = vld [vmem:[%s7795_s1 + $0x80] sm:$0xff]  ;;  %v60_v33 = vld [vmem:[%s7795_s1 + $0x90] sm:$0xff] }
   0x8   :  { %4250 = vmatprep.subr.bf16.mxu1 %v4249_v18  ;;  %v65_v29 = vld [vmem:[%s7795_s1 + $0xb8] sm:$0xff]  ;;  %v62_v32 = vld [vmem:[%s7795_s1 + $0xa0] sm:$0xff]  ;;  %v64_v34 = vld [vmem:[%s7795_s1 + $0xb0] sm:$0xff] }
   0x9   :  { %v4253_v31 = vpack.c.bf16 %v65_v29, %v61_v28  ;;  %v4223_v35 = vpack.c.bf16 %v62_v32, %v58_v30  ;;  %v67_v36 = vld [vmem:[%s7795_s1 + $0xc8] sm:$0xff]  ;;  %v69_v38 = vld [vmem:[%s7795_s1 + $0xd8] sm:$0xff]  ;;  %v4255_v39 = vpack.c.bf16 %v64_v34, %v60_v33  ;;  %v66_v42 = vld [vmem:[%s7795_s1 + $0xc0] sm:$0xff] }
   0xa   :  { %4220 = vmatpush1.bf16.msra.mxu0 %v4219_v22  ;;  %v71_v37 = vld [vmem:[%s7795_s1 + $0xe8] sm:$0xff]  ;;  %v73_v41 = vld [vmem:[%s7795_s1 + $0xf8] sm:$0xff]  ;;  %v70_v43 = vld [vmem:[%s7795_s1 + $0xe0] sm:$0xff] }
   0xb   :  { %4252 = vmatpush1.bf16.msra.mxu1 %v4251_v26  ;;  %4222 = vmatprep.subr.bf16.mxu0 %v4221_v27  ;;  %v4225_v40 = vpack.c.bf16 %v71_v37, %v67_v36  ;;  %v4257_v44 = vpack.c.bf16 %v73_v41, %v69_v38  ;;  %v68_v45 = vld [vmem:[%s7795_s1 + $0xd0] sm:$0xff]  ;;  %v75_v47 = vld [vmem:[%s7795_s1 + $0x108] sm:$0xff]  ;;  %v77_v49 = vld [vmem:[%s7795_s1 + $0x118] sm:$0xff]  ;;  %v4227_v51 = vpack.c.bf16 %v70_v43, %v66_v42 }
   0xc   :  { %4254 = vmatprep.subr.bf16.mxu1 %v4253_v31  ;;  %v72_v46 = vld [vmem:[%s7795_s1 + $0xf0] sm:$0xff]  ;;  %v79_v48 = vld [vmem:[%s7795_s1 + $0x128] sm:$0xff]  ;;  %v81_v50 = vld [vmem:[%s7795_s1 + $0x138] sm:$0xff] }
   0xd   :  { %v4259_v52 = vpack.c.bf16 %v72_v46, %v68_v45  ;;  %v4229_v53 = vpack.c.bf16 %v79_v48, %v75_v47  ;;  %v74_v54 = vld [vmem:[%s7795_s1 + $0x100] sm:$0xff]  ;;  %v76_v56 = vld [vmem:[%s7795_s1 + $0x110] sm:$0xff]  ;;  %v4261_v57 = vpack.c.bf16 %v81_v50, %v77_v49  ;;  %v83_v59 = vld [vmem:[%s7795_s1 + $0x148] sm:$0xff] }
   0xe   :  { %4224 = vmatpush1.bf16.msra.mxu0 %v4223_v35  ;;  %v78_v55 = vld [vmem:[%s7795_s1 + $0x120] sm:$0xff]  ;;  %v80_v58 = vld [vmem:[%s7795_s1 + $0x130] sm:$0xff]  ;;  %v87_v60 = vld [vmem:[%s7795_s1 + $0x168] sm:$0xff] }
   0xf   :  { %4256 = vmatpush1.bf16.msra.mxu1 %v4255_v39  ;;  %4226 = vmatprep.subr.bf16.mxu0 %v4225_v40  ;;  %v85_v61 = vld [vmem:[%s7795_s1 + $0x158] sm:$0xff]  ;;  %v4231_v63 = vpack.c.bf16 %v78_v55, %v74_v54  ;;  %v4263_v0 = vpack.c.bf16 %v80_v58, %v76_v56  ;;  %v4233_v1 = vpack.c.bf16 %v87_v60, %v83_v59  ;;  %v82_v2 = vld [vmem:[%s7795_s1 + $0x140] sm:$0xff]  ;;  %v84_v5 = vld [vmem:[%s7795_s1 + $0x150] sm:$0xff] }
  0x10   :  { %4258 = vmatprep.subr.bf16.mxu1 %v4257_v44  ;;  %v89_v62 = vld [vmem:[%s7795_s1 + $0x178] sm:$0xff]  ;;  %v86_v4 = vld [vmem:[%s7795_s1 + $0x160] sm:$0xff]  ;;  %v88_v7 = vld [vmem:[%s7795_s1 + $0x170] sm:$0xff] }
  0x11   :  { %v4265_v6 = vpack.c.bf16 %v89_v62, %v85_v61  ;;  %v91_v8 = vld [vmem:[%s7795_s1 + $0x188] sm:$0xff]  ;;  %v93_v10 = vld [vmem:[%s7795_s1 + $0x198] sm:$0xff]  ;;  %v4235_v12 = vpack.c.bf16 %v86_v4, %v82_v2  ;;  %v4267_v13 = vpack.c.bf16 %v88_v7, %v84_v5  ;;  %v90_v15 = vld [vmem:[%s7795_s1 + $0x180] sm:$0xff] }
  0x12   :  { %4228 = vmatpush1.bf16.msra.mxu0 %v4227_v51  ;;  %v95_v9 = vld [vmem:[%s7795_s1 + $0x1a8] sm:$0xff]  ;;  %v97_v11 = vld [vmem:[%s7795_s1 + $0x1b8] sm:$0xff]  ;;  %v94_v16 = vld [vmem:[%s7795_s1 + $0x1a0] sm:$0xff] }
  0x13   :  { %4260 = vmatpush1.bf16.msra.mxu1 %v4259_v52  ;;  %4230 = vmatprep.subr.bf16.mxu0 %v4229_v53  ;;  %v4237_v14 = vpack.c.bf16 %v95_v9, %v91_v8  ;;  %v92_v17 = vld [vmem:[%s7795_s1 + $0x190] sm:$0xff]  ;;  %v4269_v18 = vpack.c.bf16 %v97_v11, %v93_v10  ;;  %v99_v20 = vld [vmem:[%s7795_s1 + $0x1c8] sm:$0xff]  ;;  %v101_v22 = vld [vmem:[%s7795_s1 + $0x1d8] sm:$0xff]  ;;  %v4239_v24 = vpack.c.bf16 %v94_v16, %v90_v15 }
  0x14   :  { %4262 = vmatprep.subr.bf16.mxu1 %v4261_v57  ;;  %v96_v19 = vld [vmem:[%s7795_s1 + $0x1b0] sm:$0xff]  ;;  %v103_v21 = vld [vmem:[%s7795_s1 + $0x1e8] sm:$0xff]  ;;  %v105_v23 = vld [vmem:[%s7795_s1 + $0x1f8] sm:$0xff] }
  0x15   :  { %v4271_v25 = vpack.c.bf16 %v96_v19, %v92_v17  ;;  %v4241_v26 = vpack.c.bf16 %v103_v21, %v99_v20  ;;  %v98_v27 = vld [vmem:[%s7795_s1 + $0x1c0] sm:$0xff]  ;;  %v100_v29 = vld [vmem:[%s7795_s1 + $0x1d0] sm:$0xff]  ;;  %v4273_v30 = vpack.c.bf16 %v105_v23, %v101_v22  ;;  %v396_v32 = vld [vmem:[%s7796_s2 + $0x8] sm:$0xff] }
  0x16   :  { %4232 = vmatpush1.bf16.msra.mxu0 %v4231_v63  ;;  %v102_v28 = vld [vmem:[%s7795_s1 + $0x1e0] sm:$0xff]  ;;  %v104_v31 = vld [vmem:[%s7795_s1 + $0x1f0] sm:$0xff]  ;;  %v400_v33 = vld [vmem:[%s7796_s2 + $0x28] sm:$0xff] }
  0x17   :  { %4264 = vmatpush1.bf16.msra.mxu1 %v4263_v0  ;;  %4234 = vmatprep.subr.bf16.mxu0 %v4233_v1  ;;  %v398_v34 = vld [vmem:[%s7796_s2 + $0x18] sm:$0xff]  ;;  %v4243_v36 = vpack.c.bf16 %v102_v28, %v98_v27  ;;  %v4275_v37 = vpack.c.bf16 %v104_v31, %v100_v29  ;;  %v5997_v38 = vpack.c.bf16 %v400_v33, %v396_v32  ;;  %v395_v39 = vld [vmem:[%s7796_s2] sm:$0xff]  ;;  %v397_v42 = vld [vmem:[%s7796_s2 + $0x10] sm:$0xff] }
  0x18   :  { %4266 = vmatprep.subr.bf16.mxu1 %v4265_v6  ;;  %v402_v35 = vld [vmem:[%s7796_s2 + $0x38] sm:$0xff]  ;;  %v399_v40 = vld [vmem:[%s7796_s2 + $0x20] sm:$0xff]  ;;  %v401_v43 = vld [vmem:[%s7796_s2 + $0x30] sm:$0xff] }
  0x19   :  { %v6005_v41 = vpack.c.bf16 %v402_v35, %v398_v34  ;;  %v404_v44 = vld [vmem:[%s7796_s2 + $0x48] sm:$0xff]  ;;  %v34_v46 = vld [vmem:[%s7797_s0] sm:$0xff]  ;;  %v6022_v47 = vpack.c.bf16 %v399_v40, %v395_v39  ;;  %v406_v48 = vld [vmem:[%s7796_s2 + $0x58] sm:$0xff]  ;;  %v6031_v50 = vpack.c.bf16 %v401_v43, %v397_v42 }
  0x1a   :  { %4236 = vmatpush1.bf16.msra.mxu0 %v4235_v12  ;;  %v408_v45 = vld [vmem:[%s7796_s2 + $0x68] sm:$0xff]  ;;  %v410_v49 = vld [vmem:[%s7796_s2 + $0x78] sm:$0xff]  ;;  %v403_v51 = vld [vmem:[%s7796_s2 + $0x40] sm:$0xff] }
  0x1b   :  { %4268 = vmatpush1.bf16.msra.mxu1 %v4267_v13  ;;  %4238 = vmatprep.subr.bf16.mxu0 %v4237_v14  ;;  %v407_v52 = vld [vmem:[%s7796_s2 + $0x60] sm:$0xff]  ;;  %v6040_v53 = vpack.c.bf16 %v408_v45, %v404_v44  ;;  %v405_v54 = vld [vmem:[%s7796_s2 + $0x50] sm:$0xff]  ;;  %v6048_v56 = vpack.c.bf16 %v410_v49, %v406_v48  ;;  %v412_v57 = vld [vmem:[%s7796_s2 + $0x88] sm:$0xff] }
  0x1c   :  { %4270 = vmatprep.subr.bf16.mxu1 %v4269_v18  ;;  %v409_v55 = vld [vmem:[%s7796_s2 + $0x70] sm:$0xff]  ;;  %v416_v58 = vld [vmem:[%s7796_s2 + $0xa8] sm:$0xff]  ;;  %v6060_v60 = vpack.c.bf16 %v407_v52, %v403_v51  ;;  %v414_v61 = vld [vmem:[%s7796_s2 + $0x98] sm:$0xff] }
  0x1d   :  { %v35_v59 = vld [vmem:[%s7797_s0 + $0x8] sm:$0xff]  ;;  %v418_v62 = vld [vmem:[%s7796_s2 + $0xb8] sm:$0xff]  ;;  %v6070_v63 = vpack.c.bf16 %v409_v55, %v405_v54  ;;  %v411_v0 = vld [vmem:[%s7796_s2 + $0x80] sm:$0xff]  ;;  %v6080_v2 = vpack.c.bf16 %v416_v58, %v412_v57 }
  0x1e   :  { %4240 = vmatpush1.bf16.msra.mxu0 %v4239_v24  ;;  %v415_v1 = vld [vmem:[%s7796_s2 + $0xa0] sm:$0xff]  ;;  %v413_v4 = vld [vmem:[%s7796_s2 + $0x90] sm:$0xff]  ;;  %v6089_v6 = vpack.c.bf16 %v418_v62, %v414_v61  ;;  %v420_v7 = vld [vmem:[%s7796_s2 + $0xc8] sm:$0xff] }
  0x1f   :  { %4272 = vmatpush1.bf16.msra.mxu1 %v4271_v25  ;;  %4242 = vmatprep.subr.bf16.mxu0 %v4241_v26  ;;  %v417_v5 = vld [vmem:[%s7796_s2 + $0xb0] sm:$0xff]  ;;  %v424_v8 = vld [vmem:[%s7796_s2 + $0xe8] sm:$0xff]  ;;  %v6101_v10 = vpack.c.bf16 %v415_v1, %v411_v0  ;;  %v422_v11 = vld [vmem:[%s7796_s2 + $0xd8] sm:$0xff] }
  0x20   :  { %4274 = vmatprep.subr.bf16.mxu1 %v4273_v30  ;;  %v36_v9 = vld [vmem:[%s7797_s0 + $0x10] sm:$0xff]  ;;  %v426_v12 = vld [vmem:[%s7796_s2 + $0xf8] sm:$0xff]  ;;  %v6111_v13 = vpack.c.bf16 %v417_v5, %v413_v4  ;;  %v419_v14 = vld [vmem:[%s7796_s2 + $0xc0] sm:$0xff]  ;;  %v6121_v16 = vpack.c.bf16 %v424_v8, %v420_v7 }
  0x21   :  { %v423_v15 = vld [vmem:[%s7796_s2 + $0xe0] sm:$0xff]  ;;  %v421_v17 = vld [vmem:[%s7796_s2 + $0xd0] sm:$0xff]  ;;  %v6130_v19 = vpack.c.bf16 %v426_v12, %v422_v11  ;;  %v428_v20 = vld [vmem:[%s7796_s2 + $0x108] sm:$0xff] }
  0x22   :  { %4244 = vmatpush1.bf16.msra.mxu0 %v4243_v36  ;;  %v425_v18 = vld [vmem:[%s7796_s2 + $0xf0] sm:$0xff]  ;;  %v432_v21 = vld [vmem:[%s7796_s2 + $0x128] sm:$0xff]  ;;  %v37_v22 = vld [vmem:[%s7797_s0 + $0x18] sm:$0xff]  ;;  %v6142_v23 = vpack.c.bf16 %v423_v15, %v419_v14 }
  0x23   :  { %4276 = vmatpush1.bf16.msra.mxu1 %v4275_v37  ;;  %4278 = vmatprep.subr.bf16.mxu0 %v5997_v38  ;;  %v430_v24 = vld [vmem:[%s7796_s2 + $0x118] sm:$0xff]  ;;  %v6152_v26 = vpack.c.bf16 %v425_v18, %v421_v17  ;;  %v427_v27 = vld [vmem:[%s7796_s2 + $0x100] sm:$0xff]  ;;  %v6162_v29 = vpack.c.bf16 %v432_v21, %v428_v20  ;;  %v429_v30 = vld [vmem:[%s7796_s2 + $0x110] sm:$0xff] }
  0x24   :  { %4310 = vmatprep.subr.bf16.mxu1 %v6005_v41  ;;  %v434_v25 = vld [vmem:[%s7796_s2 + $0x138] sm:$0xff]  ;;  %v431_v28 = vld [vmem:[%s7796_s2 + $0x120] sm:$0xff]  ;;  %v433_v31 = vld [vmem:[%s7796_s2 + $0x130] sm:$0xff] }
  0x25   :  { %193 = vmatmul.mubr.f32.vlgmr.msra.gmra.mrb[0].mxu0 %v34_v46  ;;  %v6171_v32 = vpack.c.bf16 %v434_v25, %v430_v24  ;;  %v436_v33 = vld [vmem:[%s7796_s2 + $0x148] sm:$0xff]  ;;  %v38_v35 = vld [vmem:[%s7797_s0 + $0x20] sm:$0xff]  ;;  %v6183_v36 = vpack.c.bf16 %v431_v28, %v427_v27  ;;  %v438_v37 = vld [vmem:[%s7796_s2 + $0x158] sm:$0xff]  ;;  %v6193_v40 = vpack.c.bf16 %v433_v31, %v429_v30  ;;  %v108_v28 = vlaneseq }
  0x26   :  { %306 = vmatmul.mubr.f32.vlgmr.msra.gmra.mrb[0].mxu1 %v34_v46  ;;  %4280 = vmatpush1.bf16.msra.mxu0 %v6022_v47  ;;  %v440_v34 = vld [vmem:[%s7796_s2 + $0x168] sm:$0xff]  ;;  %v442_v39 = vld [vmem:[%s7796_s2 + $0x178] sm:$0xff]  ;;  %v435_v42 = vld [vmem:[%s7796_s2 + $0x140] sm:$0xff] }
  0x27   :  { %4312 = vmatpush1.bf16.msra.mxu1 %v6031_v50  ;;  %198 = vmatprep.mubr.f32.mxu0 %v5750_v3  ;;  %v439_v43 = vld [vmem:[%s7796_s2 + $0x160] sm:$0xff]  ;;  %v6203_v44 = vpack.c.bf16 %v440_v34, %v436_v33  ;;  %v437_v45 = vld [vmem:[%s7796_s2 + $0x150] sm:$0xff]  ;;  %v6212_v48 = vpack.c.bf16 %v442_v39, %v438_v37  ;;  %v444_v49 = vld [vmem:[%s7796_s2 + $0x188] sm:$0xff]  ;;  %v6351_v30 = vshrl.u32 %v108_v28, 7 }
  0x28   :  { %311 = vmatprep.mubr.f32.mxu1 %v5750_v3  ;;  %4282 = vmatprep.subr.bf16.mxu0 %v6040_v53  ;;  %v441_v46 = vld [vmem:[%s7796_s2 + $0x170] sm:$0xff]  ;;  %v448_v51 = vld [vmem:[%s7796_s2 + $0x1a8] sm:$0xff]  ;;  %v6224_v54 = vpack.c.bf16 %v439_v43, %v435_v42  ;;  %v446_v55 = vld [vmem:[%s7796_s2 + $0x198] sm:$0xff] }
  0x29   :  { %199 = vmatmul.mubr.f32.gmra.mrb[2].mxu0 %v35_v59  ;;  %4314 = vmatprep.subr.bf16.mxu1 %v6048_v56  ;;  %v39_v52 = vld [vmem:[%s7797_s0 + $0x28] sm:$0xff]  ;;  %v450_v57 = vld [vmem:[%s7796_s2 + $0x1b8] sm:$0xff]  ;;  %v6234_v58 = vpack.c.bf16 %v441_v46, %v437_v45  ;;  %v447_v61 = vld [vmem:[%s7796_s2 + $0x1a0] sm:$0xff]  ;;  %v6244_v62 = vpack.c.bf16 %v448_v51, %v444_v49  ;;  %v110_v31 = vsub.s32 0, %v6351_v30  ;;  %v114_v34 = vsub.s32 1, %v6351_v30 }
  0x2a   :  { %312 = vmatmul.mubr.f32.gmra.mrb[2].mxu1 %v35_v59  ;;  %4284 = vmatpush1.bf16.msra.mxu0 %v6060_v60  ;;  %v443_v59 = vld [vmem:[%s7796_s2 + $0x180] sm:$0xff]  ;;  %v445_v0 = vld [vmem:[%s7796_s2 + $0x190] sm:$0xff]  ;;  %v6253_v4 = vpack.c.bf16 %v450_v57, %v446_v55  ;;  %v452_v5 = vld [vmem:[%s7796_s2 + $0x1c8] sm:$0xff]  ;;  %v118_v37 = vsub.s32 2, %v6351_v30  ;;  %v122_v55 = vsub.s32 3, %v6351_v30 }
  0x2b   :  { %4316 = vmatpush1.bf16.msra.mxu1 %v6070_v63  ;;  %204 = vmatprep.mubr.f32.mxu0 %v5750_v3  ;;  %v449_v1 = vld [vmem:[%s7796_s2 + $0x1b0] sm:$0xff]  ;;  %v456_v7 = vld [vmem:[%s7796_s2 + $0x1e8] sm:$0xff]  ;;  %v454_v11 = vld [vmem:[%s7796_s2 + $0x1d8] sm:$0xff] }
  0x2c   :  { %317 = vmatprep.mubr.f32.mxu1 %v5750_v3  ;;  %4286 = vmatprep.subr.bf16.mxu0 %v6080_v2  ;;  %v40_v8 = vld [vmem:[%s7797_s0 + $0x30] sm:$0xff]  ;;  %v458_v12 = vld [vmem:[%s7796_s2 + $0x1f8] sm:$0xff]  ;;  %v6275_v14 = vpack.c.bf16 %v449_v1, %v445_v0  ;;  %v451_v15 = vld [vmem:[%s7796_s2 + $0x1c0] sm:$0xff]  ;;  %v6285_v18 = vpack.c.bf16 %v456_v7, %v452_v5 }
  0x2d   :  { %205 = vmatmul.mubr.f32.gmra.mrb[4].mxu0 %v36_v9  ;;  %4318 = vmatprep.subr.bf16.mxu1 %v6089_v6  ;;  %v455_v17 = vld [vmem:[%s7796_s2 + $0x1e0] sm:$0xff]  ;;  %v453_v20 = vld [vmem:[%s7796_s2 + $0x1d0] sm:$0xff]  ;;  %v41_v24 = vld [vmem:[%s7797_s0 + $0x38] sm:$0xff] }
  0x2e   :  { %318 = vmatmul.mubr.f32.gmra.mrb[4].mxu1 %v36_v9  ;;  %4288 = vmatpush1.bf16.msra.mxu0 %v6101_v10  ;;  %v6265_v9 = vpack.c.bf16 %v447_v61, %v443_v59  ;;  %v457_v21 = vld [vmem:[%s7796_s2 + $0x1f0] sm:$0xff]  ;;  %v6300_v25 = vpack.c.bf16 %v455_v17, %v451_v15  ;;  %v106_v33 = vld [vmem:[%s7798_s3] sm:$0xf] }
  0x2f   :  { %4320 = vmatpush1.bf16.msra.mxu1 %v6111_v13  ;;  %210 = vmatprep.mubr.f32.mxu0 %v5750_v3  ;;  %v6304_v27 = vpack.c.bf16 %v457_v21, %v453_v20  ;;  %v6371_v51 = vrot.slane %v106_v33, %v118_v37  ;;  %v6377_v59 = vrot.slane %v106_v33, %v122_v55 }
  0x30   :  { %323 = vmatprep.mubr.f32.mxu1 %v5750_v3  ;;  %4290 = vmatprep.subr.bf16.mxu0 %v6121_v16 }
  0x31   :  { %211 = vmatmul.mubr.f32.gmra.mrb[6].mxu0 %v37_v22  ;;  %4322 = vmatprep.subr.bf16.mxu1 %v6130_v19 }
  0x32   :  { %324 = vmatmul.mubr.f32.gmra.mrb[6].mxu1 %v37_v22  ;;  %4292 = vmatpush1.bf16.msra.mxu0 %v6142_v23  ;;  %v6294_v22 = vpack.c.bf16 %v458_v12, %v454_v11 }
  0x33   :  { %4324 = vmatpush1.bf16.msra.mxu1 %v6152_v26  ;;  %216 = vmatprep.mubr.f32.mxu0 %v5750_v3 }
  0x34   :  { %329 = vmatprep.mubr.f32.mxu1 %v5750_v3  ;;  %4294 = vmatprep.subr.bf16.mxu0 %v6162_v29 }
  0x35   :  { %217 = vmatmul.mubr.f32.gmra.mrb[8].mxu0 %v38_v35  ;;  %4326 = vmatprep.subr.bf16.mxu1 %v6171_v32 }
  0x36   :  { %330 = vmatmul.mubr.f32.gmra.mrb[8].mxu1 %v38_v35  ;;  %4296 = vmatpush1.bf16.msra.mxu0 %v6183_v36  ;;  %v6360_v35 = vrot.slane %v106_v33, %v110_v31 }
  0x37   :  { %4328 = vmatpush1.bf16.msra.mxu1 %v6193_v40  ;;  %222 = vmatprep.mubr.f32.mxu0 %v5750_v3 }
  0x38   :  { %335 = vmatprep.mubr.f32.mxu1 %v5750_v3  ;;  %4298 = vmatprep.subr.bf16.mxu0 %v6203_v44 }
  0x39   :  { %223 = vmatmul.mubr.f32.gmra.mrb[10].mxu0 %v39_v52  ;;  %4330 = vmatprep.subr.bf16.mxu1 %v6212_v48 }
  0x3a   :  { %336 = vmatmul.mubr.f32.gmra.mrb[10].mxu1 %v39_v52  ;;  %4300 = vmatpush1.bf16.msra.mxu0 %v6224_v54 }
  0x3b   :  { %4332 = vmatpush1.bf16.msra.mxu1 %v6234_v58  ;;  %228 = vmatprep.mubr.f32.mxu0 %v5750_v3 }
  0x3c   :  { %341 = vmatprep.mubr.f32.mxu1 %v5750_v3  ;;  %4302 = vmatprep.subr.bf16.mxu0 %v6244_v62 }
  0x3d   :  { %229 = vmatmul.mubr.f32.gmra.mrb[12].mxu0 %v40_v8  ;;  %4334 = vmatprep.subr.bf16.mxu1 %v6253_v4 }
  0x3e   :  { %342 = vmatmul.mubr.f32.gmra.mrb[12].mxu1 %v40_v8  ;;  %4304 = vmatpush1.bf16.msra.mxu0 %v6265_v9 }
  0x3f   :  { %4336 = vmatpush1.bf16.msra.mxu1 %v6275_v14  ;;  %234 = vmatprep.mubr.f32.mxu0 %v5750_v3 }
  0x40   :  { %347 = vmatprep.mubr.f32.mxu1 %v5750_v3  ;;  %4306 = vmatprep.subr.bf16.mxu0 %v6285_v18 }
  0x41   :  { %235 = vmatmul.mubr.f32.gmra.mrb[14].mxu0 %v41_v24  ;;  %4338 = vmatprep.subr.bf16.mxu1 %v6294_v22 }
  0x42   :  { %348 = vmatmul.mubr.f32.gmra.mrb[14].mxu1 %v41_v24  ;;  %4308 = vmatpush1.bf16.msra.mxu0 %v6300_v25 }
  0x43   :  { %4340 = vmatpush1.bf16.msra.mxu1 %v6304_v27  ;;  %523 = vmatprep.mubr.f32.mxu0 %v5750_v3 }
  0x44   :  { %594 = vmatprep.mubr.f32.mxu1 %v5750_v3  ;;  %4342 = vmatprep.subr.bf16.mxu0 %v5997_v38 }
  0x45   :  { %524 = vmatmul.mubr.f32.vlgmr.msra.gmra.mrb[0].mxu0 %v5750_v3  ;;  %4374 = vmatprep.subr.bf16.mxu1 %v6005_v41 }
  0x46   :  { %595 = vmatmul.mubr.f32.vlgmr.msra.gmra.mrb[0].mxu1 %v5750_v3  ;;  %4344 = vmatpush1.bf16.msra.mxu0 %v6022_v47 }
  0x47   :  { %4376 = vmatpush1.bf16.msra.mxu1 %v6031_v50  ;;  %4346 = vmatprep.subr.bf16.mxu0 %v6040_v53 }
  0x48   :  { %4378 = vmatprep.subr.bf16.mxu1 %v6048_v56  ;;  %765 = vmatprep.mubr.f32.mxu0 %v5750_v3 }
  0x49   :  { %836 = vmatprep.mubr.f32.mxu1 %v5750_v3 }
  0x4a   :  { %4348 = vmatpush1.bf16.msra.mxu0 %v6060_v60 }
  0x4b   :  { %4380 = vmatpush1.bf16.msra.mxu1 %v6070_v63  ;;  %4350 = vmatprep.subr.bf16.mxu0 %v6080_v2 }
  0x4c   :  { %4382 = vmatprep.subr.bf16.mxu1 %v6089_v6 }
  0x4e   :  { %4352 = vmatpush1.bf16.msra.mxu0 %v6101_v10 }
  0x4f   :  { %4384 = vmatpush1.bf16.msra.mxu1 %v6111_v13  ;;  %4354 = vmatprep.subr.bf16.mxu0 %v6121_v16 }
  0x50   :  { %4386 = vmatprep.subr.bf16.mxu1 %v6130_v19 }
  0x52   :  { %4356 = vmatpush1.bf16.msra.mxu0 %v6142_v23 }
  0x53   :  { %4388 = vmatpush1.bf16.msra.mxu1 %v6152_v26  ;;  %4358 = vmatprep.subr.bf16.mxu0 %v6162_v29 }
  0x54   :  { %4390 = vmatprep.subr.bf16.mxu1 %v6171_v32 }
  0x56   :  { %4360 = vmatpush1.bf16.msra.mxu0 %v6183_v36 }
  0x57   :  { %4392 = vmatpush1.bf16.msra.mxu1 %v6193_v40  ;;  %4362 = vmatprep.subr.bf16.mxu0 %v6203_v44 }
  0x58   :  { %4394 = vmatprep.subr.bf16.mxu1 %v6212_v48 }
  0x5a   :  { %4364 = vmatpush1.bf16.msra.mxu0 %v6224_v54 }
  0x5b   :  { %4396 = vmatpush1.bf16.msra.mxu1 %v6234_v58  ;;  %4366 = vmatprep.subr.bf16.mxu0 %v6244_v62 }
  0x5c   :  { %4398 = vmatprep.subr.bf16.mxu1 %v6253_v4 }
  0x5e   :  { %4368 = vmatpush1.bf16.msra.mxu0 %v6265_v9 }
  0x5f   :  { %4400 = vmatpush1.bf16.msra.mxu1 %v6275_v14  ;;  %4370 = vmatprep.subr.bf16.mxu0 %v6285_v18 }
  0x60   :  { %4402 = vmatprep.subr.bf16.mxu1 %v6294_v22 }
  0x62   :  { %4372 = vmatpush1.bf16.msra.mxu0 %v6300_v25 }
  0x63   :  { %4404 = vmatpush1.bf16.msra.mxu1 %v6304_v27  ;;  %4406 = vmatprep.subr.bf16.mxu0 %v5997_v38  ;;  %v6364_v38 = vrot.slane %v106_v33, %v114_v34 }
  0x64   :  { %4438 = vmatprep.subr.bf16.mxu1 %v6005_v41 }
 0x118   :  { %v525_v41 = vpop.f32.mrb[0].mxu0 }
 0x119   :  { %v5365_v39 = vadd.f32 %v525_v41, %v6360_v35  ;;  %v596_v42 = vpop.f32.mrb[0].mxu1  ;;  %v527_v43 = vpop.f32.mrb[1].mxu0 }
 0x11a   :  { %v5366_v45 = vadd.f32 %v527_v43, %v6364_v38  ;;  %v598_v46 = vpop.f32.mrb[1].mxu1  ;;  %v5381_v57 = vadd.f32 %v596_v42, %v6371_v51 }
 0x11b   :  { %v4165_v49 = vmul.f32 -1.442695, %v5365_v39  ;;  %v5382_v0 = vadd.f32 %v598_v46, %v6377_v59 }
 0x11c   :  { %v4166_v52 = vmul.f32 -1.442695, %v5366_v45  ;;  %v4167_v61 = vmul.f32 -1.442695, %v5381_v57 }
 0x11d   :  { %5494 = vpow2.f32 %v4165_v49 }
 0x11e   :  { %5496 = vpow2.f32 %v4166_v52 }
 0x11f   :  { %5498 = vpow2.f32 %v4167_v61 }
 0x120   :  { %5500 = vtanh.f32 %v5382_v0 }
 0x127   :  { %v5495_v1 = vpop.eup %5494 }
 0x128   :  { %v614_v5 = vadd.f32 1.0, %v5495_v1  ;;  %v5497_v7 = vpop.eup %5496 }
 0x129   :  { %v615_v8 = vadd.f32 1.0, %v5497_v7  ;;  %v5499_v11 = vpop.eup %5498 }
 0x12a   :  { %5502 = vrcp.f32 %v614_v5  ;;  %v5501_v12 = vpop.eup %5500  ;;  %v616_v21 = vadd.f32 1.0, %v5499_v11 }
 0x12b   :  { %5504 = vrcp.f32 %v615_v8 }
 0x12c   :  { %5506 = vrcp.f32 %v616_v21 }
 0x134   :  { %v5503_v15 = vpop.eup %5502 }
 0x135   :  { %v625_v17 = vmul.f32 %v5503_v15, %v5501_v12  ;;  %v5505_v20 = vpop.eup %5504 }
 0x136   :  { %v624_v24 = vmul.f32 0.0, %v5505_v20  ;;  %v5507_v33 = vpop.eup %5506 }
 0x138   :  { %v6380_v28 = vadd.f32 %v625_v17, %v624_v24 }
 0x13a   :  { %5508 = vtanh.f32 %v6380_v28 }
 0x144   :  { %v5509_v41 = vpop.eup %5508 }
 0x145   :  { %v6383_v39 = vmul.f32 %v5509_v41, %v5507_v33  ;;  %v1128_v33 = vld [vmem:[%s7796_s2 + $0x28] sm:$0xff]  ;;  %v1126_v41 = vld [vmem:[%s7796_s2 + $0x18] sm:$0xff] }
 0x147   :  { %766 = vmatmul.mubr.f32.vlgmr.msra.gmra.mrb[2].mxu0 %v6383_v39  ;;  %837 = vmatmul.mubr.f32.vlgmr.msra.gmra.mrb[2].mxu1 %v6383_v39 }
 0x148   :  { %4408 = vmatpush1.bf16.msra.mxu0 %v6022_v47  ;;  %4440 = vmatpush1.bf16.msra.mxu1 %v6031_v50 }
 0x149   :  { %4410 = vmatprep.subr.bf16.mxu0 %v6040_v53  ;;  %4442 = vmatprep.subr.bf16.mxu1 %v6048_v56 }
 0x14a   :  { %1008 = vmatprep.mubr.f32.mxu0 %v5750_v3  ;;  %1079 = vmatprep.mubr.f32.mxu1 %v5750_v3 }
 0x14c   :  { %4412 = vmatpush1.bf16.msra.mxu0 %v6060_v60  ;;  %4444 = vmatpush1.bf16.msra.mxu1 %v6070_v63 }
 0x14d   :  { %4414 = vmatprep.subr.bf16.mxu0 %v6080_v2  ;;  %4446 = vmatprep.subr.bf16.mxu1 %v6089_v6 }
 0x150   :  { %4416 = vmatpush1.bf16.msra.mxu0 %v6101_v10  ;;  %4448 = vmatpush1.bf16.msra.mxu1 %v6111_v13 }
 0x151   :  { %4418 = vmatprep.subr.bf16.mxu0 %v6121_v16  ;;  %4450 = vmatprep.subr.bf16.mxu1 %v6130_v19 }
 0x154   :  { %4420 = vmatpush1.bf16.msra.mxu0 %v6142_v23  ;;  %4452 = vmatpush1.bf16.msra.mxu1 %v6152_v26 }
 0x155   :  { %4422 = vmatprep.subr.bf16.mxu0 %v6162_v29  ;;  %4454 = vmatprep.subr.bf16.mxu1 %v6171_v32 }
 0x158   :  { %4424 = vmatpush1.bf16.msra.mxu0 %v6183_v36  ;;  %4456 = vmatpush1.bf16.msra.mxu1 %v6193_v40 }
 0x159   :  { %4426 = vmatprep.subr.bf16.mxu0 %v6203_v44  ;;  %4458 = vmatprep.subr.bf16.mxu1 %v6212_v48 }
 0x15c   :  { %4428 = vmatpush1.bf16.msra.mxu0 %v6224_v54  ;;  %4460 = vmatpush1.bf16.msra.mxu1 %v6234_v58 }
 0x15d   :  { %4430 = vmatprep.subr.bf16.mxu0 %v6244_v62  ;;  %4462 = vmatprep.subr.bf16.mxu1 %v6253_v4 }
 0x160   :  { %4432 = vmatpush1.bf16.msra.mxu0 %v6265_v9  ;;  %4464 = vmatpush1.bf16.msra.mxu1 %v6275_v14 }
 0x161   :  { %4434 = vmatprep.subr.bf16.mxu0 %v6285_v18  ;;  %4466 = vmatprep.subr.bf16.mxu1 %v6294_v22 }
 0x164   :  { %4436 = vmatpush1.bf16.msra.mxu0 %v6300_v25  ;;  %4468 = vmatpush1.bf16.msra.mxu1 %v6304_v27 }
 0x21a   :  { %v767_v47 = vpop.f32.mrb[2].mxu0  ;;  %v838_v50 = vpop.f32.mrb[2].mxu1 }
 0x21b   :  { %v5367_v53 = vadd.f32 %v767_v47, %v6360_v35  ;;  %v769_v56 = vpop.f32.mrb[3].mxu0  ;;  %v840_v60 = vpop.f32.mrb[3].mxu1  ;;  %v5383_v45 = vadd.f32 %v838_v50, %v6371_v51  ;;  %v1130_v50 = vld [vmem:[%s7796_s2 + $0x38] sm:$0xff] }
 0x21c   :  { %v5368_v63 = vadd.f32 %v769_v56, %v6364_v38  ;;  %v5384_v46 = vadd.f32 %v840_v60, %v6377_v59  ;;  %v1127_v56 = vld [vmem:[%s7796_s2 + $0x20] sm:$0xff]  ;;  %v6453_v60 = vpack.c.bf16 %v1130_v50, %v1126_v41  ;;  %v1389_v41 = vld [vmem:[%s7796_s2 + $0xb8] sm:$0xff] }
 0x21d   :  { %v4168_v42 = vmul.f32 -1.442695, %v5367_v53  ;;  %v4170_v49 = vmul.f32 -1.442695, %v5383_v45  ;;  %v1123_v53 = vld [vmem:[%s7796_s2] sm:$0xff] }
 0x21e   :  { %v4169_v43 = vmul.f32 -1.442695, %v5368_v63  ;;  %v6455_v63 = vpack.c.bf16 %v1127_v56, %v1123_v53  ;;  %4502 = vmatprep.subr.bf16.mxu1 %v6453_v60  ;;  %v1382_v50 = vld [vmem:[%s7796_s2 + $0x80] sm:$0xff] }
 0x21f   :  { %5510 = vpow2.f32 %v4168_v42  ;;  %v1125_v42 = vld [vmem:[%s7796_s2 + $0x10] sm:$0xff]  ;;  %v1386_v53 = vld [vmem:[%s7796_s2 + $0xa0] sm:$0xff] }
 0x220   :  { %5512 = vpow2.f32 %v4169_v43  ;;  %v1129_v43 = vld [vmem:[%s7796_s2 + $0x30] sm:$0xff] }
 0x221   :  { %5514 = vtanh.f32 %v5384_v46  ;;  %v6464_v45 = vpack.c.bf16 %v1129_v43, %v1125_v42  ;;  %v1132_v46 = vld [vmem:[%s7796_s2 + $0x48] sm:$0xff]  ;;  %v6573_v42 = vpack.c.bf16 %v1386_v53, %v1382_v50  ;;  %v1384_v43 = vld [vmem:[%s7796_s2 + $0x90] sm:$0xff] }
 0x222   :  { %5516 = vpow2.f32 %v4170_v49  ;;  %v1136_v49 = vld [vmem:[%s7796_s2 + $0x68] sm:$0xff]  ;;  %v1412_v50 = vld [vmem:[%s7796_s2 + $0x170] sm:$0xff] }
 0x223   :  { %v1415_v53 = vld [vmem:[%s7796_s2 + $0x188] sm:$0xff] }
 0x229   :  { %v5511_v52 = vpop.eup %5510 }
 0x22a   :  { %v856_v57 = vadd.f32 1.0, %v5511_v52  ;;  %v5513_v61 = vpop.eup %5512  ;;  %v1134_v52 = vld [vmem:[%s7796_s2 + $0x58] sm:$0xff] }
 0x22b   :  { %v857_v0 = vadd.f32 1.0, %v5513_v61  ;;  %v5515_v1 = vpop.eup %5514  ;;  %v1138_v61 = vld [vmem:[%s7796_s2 + $0x78] sm:$0xff] }
 0x22c   :  { %5518 = vrcp.f32 %v856_v57  ;;  %v5517_v5 = vpop.eup %5516  ;;  %v6478_v57 = vpack.c.bf16 %v1136_v49, %v1132_v46  ;;  %v1388_v46 = vld [vmem:[%s7796_s2 + $0xb0] sm:$0xff] }
 0x22d   :  { %5520 = vrcp.f32 %v857_v0  ;;  %v858_v12 = vadd.f32 1.0, %v5517_v5  ;;  %v1131_v0 = vld [vmem:[%s7796_s2 + $0x40] sm:$0xff]  ;;  %v6489_v5 = vpack.c.bf16 %v1138_v61, %v1134_v52  ;;  %v6582_v49 = vpack.c.bf16 %v1388_v46, %v1384_v43  ;;  %v1391_v52 = vld [vmem:[%s7796_s2 + $0xc8] sm:$0xff] }
 0x22e   :  { %v1395_v61 = vld [vmem:[%s7796_s2 + $0xe8] sm:$0xff] }
 0x22f   :  { %5522 = vrcp.f32 %v858_v12  ;;  %v1419_v46 = vld [vmem:[%s7796_s2 + $0x1a8] sm:$0xff] }
 0x236   :  { %v5519_v7 = vpop.eup %5518 }
 0x237   :  { %v867_v8 = vmul.f32 %v5519_v7, %v5515_v1  ;;  %v5521_v11 = vpop.eup %5520  ;;  %v1135_v1 = vld [vmem:[%s7796_s2 + $0x60] sm:$0xff] }
 0x238   :  { %v866_v15 = vmul.f32 %v5521_v11, %v6380_v28  ;;  %v1124_v28 = vld [vmem:[%s7796_s2 + $0x8] sm:$0xff]  ;;  %v6491_v7 = vpack.c.bf16 %v1135_v1, %v1131_v0  ;;  %v1137_v11 = vld [vmem:[%s7796_s2 + $0x70] sm:$0xff]  ;;  %v1393_v0 = vld [vmem:[%s7796_s2 + $0xd8] sm:$0xff]  ;;  %v6596_v1 = vpack.c.bf16 %v1395_v61, %v1391_v52 }
 0x239   :  { %v5523_v20 = vpop.eup %5522  ;;  %v6442_v47 = vpack.c.bf16 %v1128_v33, %v1124_v28  ;;  %v1385_v28 = vld [vmem:[%s7796_s2 + $0x98] sm:$0xff] }
 0x23a   :  { %v6424_v17 = vadd.f32 %v867_v8, %v866_v15  ;;  %v1133_v8 = vld [vmem:[%s7796_s2 + $0x50] sm:$0xff]  ;;  %v6571_v56 = vpack.c.bf16 %v1389_v41, %v1385_v28  ;;  %v1417_v52 = vld [vmem:[%s7796_s2 + $0x198] sm:$0xff] }
 0x23b   :  { %4470 = vmatprep.subr.bf16.mxu0 %v6442_v47  ;;  %v6500_v12 = vpack.c.bf16 %v1137_v11, %v1133_v8  ;;  %v1397_v8 = vld [vmem:[%s7796_s2 + $0xf8] sm:$0xff]  ;;  %v1390_v11 = vld [vmem:[%s7796_s2 + $0xc0] sm:$0xff]  ;;  %v1408_v41 = vld [vmem:[%s7796_s2 + $0x150] sm:$0xff] }
 0x23c   :  { %5524 = vtanh.f32 %v6424_v17  ;;  %v6693_v43 = vpack.c.bf16 %v1412_v50, %v1408_v41  ;;  %v1421_v61 = vld [vmem:[%s7796_s2 + $0x1b8] sm:$0xff] }
 0x246   :  { %v5525_v21 = vpop.eup %5524 }
 0x247   :  { %v6427_v24 = vmul.f32 %v5525_v21, %v5523_v20  ;;  %v1387_v21 = vld [vmem:[%s7796_s2 + $0xa8] sm:$0xff] }
 0x249   :  { %1009 = vmatmul.mubr.f32.vlgmr.msra.gmra.mrb[4].mxu0 %v6427_v24  ;;  %1080 = vmatmul.mubr.f32.vlgmr.msra.gmra.mrb[4].mxu1 %v6427_v24 }
 0x24a   :  { %1251 = vmatprep.mubr.f32.mxu0 %v5750_v3  ;;  %1322 = vmatprep.mubr.f32.mxu1 %v5750_v3 }
 0x24b   :  { %4472 = vmatpush1.bf16.msra.mxu0 %v6455_v63  ;;  %4504 = vmatpush1.bf16.msra.mxu1 %v6464_v45 }
 0x24c   :  { %4474 = vmatprep.subr.bf16.mxu0 %v6478_v57  ;;  %4506 = vmatprep.subr.bf16.mxu1 %v6489_v5 }
 0x24f   :  { %4476 = vmatpush1.bf16.msra.mxu0 %v6491_v7  ;;  %4508 = vmatpush1.bf16.msra.mxu1 %v6500_v12 }
 0x250   :  { %4478 = vmatprep.subr.bf16.mxu0 %v6080_v2  ;;  %4510 = vmatprep.subr.bf16.mxu1 %v6089_v6 }
 0x253   :  { %4480 = vmatpush1.bf16.msra.mxu0 %v6101_v10  ;;  %4512 = vmatpush1.bf16.msra.mxu1 %v6111_v13 }
 0x254   :  { %4482 = vmatprep.subr.bf16.mxu0 %v6121_v16  ;;  %4514 = vmatprep.subr.bf16.mxu1 %v6130_v19 }
 0x257   :  { %4484 = vmatpush1.bf16.msra.mxu0 %v6142_v23  ;;  %4516 = vmatpush1.bf16.msra.mxu1 %v6152_v26 }
 0x258   :  { %4486 = vmatprep.subr.bf16.mxu0 %v6162_v29  ;;  %4518 = vmatprep.subr.bf16.mxu1 %v6171_v32 }
 0x25b   :  { %4488 = vmatpush1.bf16.msra.mxu0 %v6183_v36  ;;  %4520 = vmatpush1.bf16.msra.mxu1 %v6193_v40 }
 0x25c   :  { %4490 = vmatprep.subr.bf16.mxu0 %v6203_v44  ;;  %4522 = vmatprep.subr.bf16.mxu1 %v6212_v48 }
 0x25f   :  { %4492 = vmatpush1.bf16.msra.mxu0 %v6224_v54  ;;  %4524 = vmatpush1.bf16.msra.mxu1 %v6234_v58 }
 0x260   :  { %4494 = vmatprep.subr.bf16.mxu0 %v6244_v62  ;;  %4526 = vmatprep.subr.bf16.mxu1 %v6253_v4 }
 0x263   :  { %4496 = vmatpush1.bf16.msra.mxu0 %v6265_v9  ;;  %4528 = vmatpush1.bf16.msra.mxu1 %v6275_v14 }
 0x264   :  { %4498 = vmatprep.subr.bf16.mxu0 %v6285_v18  ;;  %4530 = vmatprep.subr.bf16.mxu1 %v6294_v22 }
 0x267   :  { %4500 = vmatpush1.bf16.msra.mxu0 %v6300_v25  ;;  %4532 = vmatpush1.bf16.msra.mxu1 %v6304_v27 }
 0x268   :  { %4534 = vmatprep.subr.bf16.mxu0 %v6442_v47  ;;  %4566 = vmatprep.subr.bf16.mxu1 %v6453_v60 }
 0x31c   :  { %v1010_v2 = vpop.f32.mrb[4].mxu0  ;;  %v1081_v6 = vpop.f32.mrb[4].mxu1 }
 0x31d   :  { %v5369_v10 = vadd.f32 %v1010_v2, %v6360_v35  ;;  %v1012_v13 = vpop.f32.mrb[5].mxu0  ;;  %v1083_v16 = vpop.f32.mrb[5].mxu1  ;;  %v5385_v29 = vadd.f32 %v1081_v6, %v6371_v51  ;;  %v1394_v2 = vld [vmem:[%s7796_s2 + $0xe0] sm:$0xff]  ;;  %v6607_v6 = vpack.c.bf16 %v1397_v8, %v1393_v0  ;;  %v6706_v0 = vpack.c.bf16 %v1419_v46, %v1415_v53 }
 0x31e   :  { %v5370_v19 = vadd.f32 %v1012_v13, %v6364_v38  ;;  %v5386_v32 = vadd.f32 %v1083_v16, %v6377_v59  ;;  %v1392_v13 = vld [vmem:[%s7796_s2 + $0xd0] sm:$0xff]  ;;  %v6708_v8 = vpack.c.bf16 %v1421_v61, %v1417_v52 }
 0x31f   :  { %v4171_v23 = vmul.f32 -1.442695, %v5369_v10  ;;  %v4173_v36 = vmul.f32 -1.442695, %v5385_v29  ;;  %v6609_v10 = vpack.c.bf16 %v1394_v2, %v1390_v11  ;;  %v1396_v16 = vld [vmem:[%s7796_s2 + $0xf0] sm:$0xff]  ;;  %v1401_v29 = vld [vmem:[%s7796_s2 + $0x118] sm:$0xff] }
 0x320   :  { %v4172_v26 = vmul.f32 -1.442695, %v5370_v19  ;;  %v6618_v19 = vpack.c.bf16 %v1396_v16, %v1392_v13  ;;  %v1414_v11 = vld [vmem:[%s7796_s2 + $0x180] sm:$0xff]  ;;  %v1416_v13 = vld [vmem:[%s7796_s2 + $0x190] sm:$0xff] }
 0x321   :  { %5526 = vpow2.f32 %v4171_v23  ;;  %v1399_v23 = vld [vmem:[%s7796_s2 + $0x108] sm:$0xff]  ;;  %v1418_v2 = vld [vmem:[%s7796_s2 + $0x1a0] sm:$0xff] }
 0x322   :  { %5528 = vpow2.f32 %v4172_v26  ;;  %v1403_v26 = vld [vmem:[%s7796_s2 + $0x128] sm:$0xff]  ;;  %v6720_v16 = vpack.c.bf16 %v1418_v2, %v1414_v11 }
 0x323   :  { %5530 = vtanh.f32 %v5386_v32  ;;  %v6632_v32 = vpack.c.bf16 %v1403_v26, %v1399_v23  ;;  %v1420_v23 = vld [vmem:[%s7796_s2 + $0x1b0] sm:$0xff]  ;;  %v1423_v26 = vld [vmem:[%s7796_s2 + $0x1c8] sm:$0xff] }
 0x324   :  { %5532 = vpow2.f32 %v4173_v36  ;;  %v1405_v36 = vld [vmem:[%s7796_s2 + $0x138] sm:$0xff] }
 0x32b   :  { %v5527_v40 = vpop.eup %5526 }
 0x32c   :  { %v1099_v44 = vadd.f32 1.0, %v5527_v40  ;;  %v5529_v48 = vpop.eup %5528  ;;  %v1398_v40 = vld [vmem:[%s7796_s2 + $0x100] sm:$0xff] }
 0x32d   :  { %v1100_v54 = vadd.f32 1.0, %v5529_v48  ;;  %v5531_v58 = vpop.eup %5530  ;;  %v6643_v48 = vpack.c.bf16 %v1405_v36, %v1401_v29  ;;  %v1427_v29 = vld [vmem:[%s7796_s2 + $0x1e8] sm:$0xff]  ;;  %v6733_v36 = vpack.c.bf16 %v1420_v23, %v1416_v13 }
 0x32e   :  { %5534 = vrcp.f32 %v1099_v44  ;;  %v5533_v62 = vpop.eup %5532  ;;  %v1402_v44 = vld [vmem:[%s7796_s2 + $0x120] sm:$0xff] }
 0x32f   :  { %5536 = vrcp.f32 %v1100_v54  ;;  %v1101_v18 = vadd.f32 1.0, %v5533_v62  ;;  %v6645_v54 = vpack.c.bf16 %v1402_v44, %v1398_v40  ;;  %v1404_v62 = vld [vmem:[%s7796_s2 + $0x130] sm:$0xff]  ;;  %v6735_v40 = vpack.c.bf16 %v1427_v29, %v1423_v26  ;;  %v1425_v44 = vld [vmem:[%s7796_s2 + $0x1d8] sm:$0xff] }
 0x331   :  { %5538 = vrcp.f32 %v1101_v18  ;;  %v1409_v18 = vld [vmem:[%s7796_s2 + $0x158] sm:$0xff] }
 0x338   :  { %v5535_v4 = vpop.eup %5534 }
 0x339   :  { %v1110_v9 = vmul.f32 %v5535_v4, %v5531_v58  ;;  %v5537_v14 = vpop.eup %5536  ;;  %v1400_v58 = vld [vmem:[%s7796_s2 + $0x110] sm:$0xff] }
 0x33a   :  { %v1109_v22 = vmul.f32 %v5537_v14, %v6424_v17  ;;  %v1383_v17 = vld [vmem:[%s7796_s2 + $0x88] sm:$0xff]  ;;  %v6654_v4 = vpack.c.bf16 %v1404_v62, %v1400_v58  ;;  %v1429_v58 = vld [vmem:[%s7796_s2 + $0x1f8] sm:$0xff]  ;;  %v1422_v62 = vld [vmem:[%s7796_s2 + $0x1c0] sm:$0xff] }
 0x33b   :  { %v5539_v27 = vpop.eup %5538  ;;  %v6560_v33 = vpack.c.bf16 %v1387_v21, %v1383_v17  ;;  %v1411_v14 = vld [vmem:[%s7796_s2 + $0x168] sm:$0xff]  ;;  %v1410_v17 = vld [vmem:[%s7796_s2 + $0x160] sm:$0xff] }
 0x33c   :  { %v6536_v25 = vadd.f32 %v1110_v9, %v1109_v22  ;;  %v1407_v9 = vld [vmem:[%s7796_s2 + $0x148] sm:$0xff] }
 0x33d   :  { %v6668_v22 = vpack.c.bf16 %v1411_v14, %v1407_v9  ;;  %v6746_v9 = vpack.c.bf16 %v1429_v58, %v1425_v44  ;;  %v1426_v14 = vld [vmem:[%s7796_s2 + $0x1e0] sm:$0xff] }
 0x33e   :  { %5540 = vtanh.f32 %v6536_v25 }
 0x348   :  { %v5541_v15 = vpop.eup %5540 }
 0x349   :  { %v6539_v20 = vmul.f32 %v5541_v15, %v5539_v27  ;;  %v1413_v27 = vld [vmem:[%s7796_s2 + $0x178] sm:$0xff]  ;;  %v1406_v15 = vld [vmem:[%s7796_s2 + $0x140] sm:$0xff] }
 0x34a   :  { %v6679_v21 = vpack.c.bf16 %v1413_v27, %v1409_v18  ;;  %v6681_v28 = vpack.c.bf16 %v1410_v17, %v1406_v15  ;;  %v1424_v18 = vld [vmem:[%s7796_s2 + $0x1d0] sm:$0xff]  ;;  %v6758_v15 = vpack.c.bf16 %v1426_v14, %v1422_v62 }
 0x34b   :  { %1252 = vmatmul.mubr.f32.vlgmr.msra.gmra.mrb[6].mxu0 %v6539_v20  ;;  %1323 = vmatmul.mubr.f32.vlgmr.msra.gmra.mrb[6].mxu1 %v6539_v20  ;;  %v1428_v27 = vld [vmem:[%s7796_s2 + $0x1f0] sm:$0xff] }
 0x34c   :  { %4536 = vmatpush1.bf16.msra.mxu0 %v6455_v63  ;;  %4568 = vmatpush1.bf16.msra.mxu1 %v6464_v45  ;;  %v6762_v17 = vpack.c.bf16 %v1428_v27, %v1424_v18 }
 0x34d   :  { %4538 = vmatprep.subr.bf16.mxu0 %v6478_v57  ;;  %4570 = vmatprep.subr.bf16.mxu1 %v6489_v5 }
 0x34e   :  { %1494 = vmatprep.mubr.f32.mxu0 %v5750_v3  ;;  %1565 = vmatprep.mubr.f32.mxu1 %v5750_v3 }
 0x350   :  { %4540 = vmatpush1.bf16.msra.mxu0 %v6491_v7  ;;  %4572 = vmatpush1.bf16.msra.mxu1 %v6500_v12 }
 0x351   :  { %4542 = vmatprep.subr.bf16.mxu0 %v6560_v33  ;;  %4574 = vmatprep.subr.bf16.mxu1 %v6571_v56 }
 0x354   :  { %4544 = vmatpush1.bf16.msra.mxu0 %v6573_v42  ;;  %4576 = vmatpush1.bf16.msra.mxu1 %v6582_v49 }
 0x355   :  { %4546 = vmatprep.subr.bf16.mxu0 %v6596_v1  ;;  %4578 = vmatprep.subr.bf16.mxu1 %v6607_v6 }
 0x358   :  { %4548 = vmatpush1.bf16.msra.mxu0 %v6609_v10  ;;  %4580 = vmatpush1.bf16.msra.mxu1 %v6618_v19 }
 0x359   :  { %4550 = vmatprep.subr.bf16.mxu0 %v6632_v32  ;;  %4582 = vmatprep.subr.bf16.mxu1 %v6643_v48 }
 0x35c   :  { %4552 = vmatpush1.bf16.msra.mxu0 %v6645_v54  ;;  %4584 = vmatpush1.bf16.msra.mxu1 %v6654_v4 }
 0x35d   :  { %4554 = vmatprep.subr.bf16.mxu0 %v6668_v22  ;;  %4586 = vmatprep.subr.bf16.mxu1 %v6679_v21 }
 0x360   :  { %4556 = vmatpush1.bf16.msra.mxu0 %v6681_v28  ;;  %4588 = vmatpush1.bf16.msra.mxu1 %v6693_v43 }
 0x361   :  { %4558 = vmatprep.subr.bf16.mxu0 %v6706_v0  ;;  %4590 = vmatprep.subr.bf16.mxu1 %v6708_v8 }
 0x364   :  { %4560 = vmatpush1.bf16.msra.mxu0 %v6720_v16  ;;  %4592 = vmatpush1.bf16.msra.mxu1 %v6733_v36 }
 0x365   :  { %4562 = vmatprep.subr.bf16.mxu0 %v6735_v40  ;;  %4594 = vmatprep.subr.bf16.mxu1 %v6746_v9 }
 0x368   :  { %4564 = vmatpush1.bf16.msra.mxu0 %v6758_v15  ;;  %4596 = vmatpush1.bf16.msra.mxu1 %v6762_v17 }
 0x369   :  { %4598 = vmatprep.subr.bf16.mxu0 %v6442_v47  ;;  %4630 = vmatprep.subr.bf16.mxu1 %v6453_v60 }
 0x41e   :  { %v1253_v41 = vpop.f32.mrb[6].mxu0  ;;  %v1324_v50 = vpop.f32.mrb[6].mxu1 }
 0x41f   :  { %v5371_v53 = vadd.f32 %v1253_v41, %v6360_v35  ;;  %v1255_v46 = vpop.f32.mrb[7].mxu0  ;;  %v1326_v52 = vpop.f32.mrb[7].mxu1  ;;  %v5387_v13 = vadd.f32 %v1324_v50, %v6371_v51 }
 0x420   :  { %v5372_v61 = vadd.f32 %v1255_v46, %v6364_v38  ;;  %v5388_v23 = vadd.f32 %v1326_v52, %v6377_v59 }
 0x421   :  { %v4174_v11 = vmul.f32 -1.442695, %v5371_v53  ;;  %v4176_v26 = vmul.f32 -1.442695, %v5387_v13 }
 0x422   :  { %v4175_v2 = vmul.f32 -1.442695, %v5372_v61 }
 0x423   :  { %5542 = vpow2.f32 %v4174_v11 }
 0x424   :  { %5544 = vpow2.f32 %v4175_v2 }
 0x425   :  { %5546 = vtanh.f32 %v5388_v23 }
 0x426   :  { %5548 = vpow2.f32 %v4176_v26 }
 0x42d   :  { %v5543_v29 = vpop.eup %5542 }
 0x42e   :  { %v1342_v44 = vadd.f32 1.0, %v5543_v29  ;;  %v5545_v58 = vpop.eup %5544 }
 0x42f   :  { %v1343_v62 = vadd.f32 1.0, %v5545_v58  ;;  %v5547_v14 = vpop.eup %5546 }
 0x430   :  { %5550 = vrcp.f32 %v1342_v44  ;;  %v5549_v18 = vpop.eup %5548 }
 0x431   :  { %5552 = vrcp.f32 %v1343_v62  ;;  %v1344_v46 = vadd.f32 1.0, %v5549_v18 }
 0x433   :  { %5554 = vrcp.f32 %v1344_v46 }
 0x43a   :  { %v5551_v27 = vpop.eup %5550 }
 0x43b   :  { %v1353_v41 = vmul.f32 %v5551_v27, %v5547_v14  ;;  %v5553_v53 = vpop.eup %5552 }
 0x43c   :  { %v1352_v61 = vmul.f32 %v5553_v53, %v6536_v25 }
 0x43d   :  { %v5555_v52 = vpop.eup %5554 }
 0x43e   :  { %v6774_v50 = vadd.f32 %v1353_v41, %v1352_v61 }
 0x440   :  { %5556 = vtanh.f32 %v6774_v50 }
 0x44a   :  { %v5557_v11 = vpop.eup %5556 }
 0x44b   :  { %v6777_v2 = vmul.f32 %v5557_v11, %v5555_v52 }
 0x44d   :  { %1495 = vmatmul.mubr.f32.vlgmr.msra.gmra.mrb[8].mxu0 %v6777_v2  ;;  %1566 = vmatmul.mubr.f32.vlgmr.msra.gmra.mrb[8].mxu1 %v6777_v2 }
 0x44e   :  { %4600 = vmatpush1.bf16.msra.mxu0 %v6455_v63  ;;  %4632 = vmatpush1.bf16.msra.mxu1 %v6464_v45 }
 0x44f   :  { %4602 = vmatprep.subr.bf16.mxu0 %v6478_v57  ;;  %4634 = vmatprep.subr.bf16.mxu1 %v6489_v5 }
 0x450   :  { %1737 = vmatprep.mubr.f32.mxu0 %v5750_v3  ;;  %1808 = vmatprep.mubr.f32.mxu1 %v5750_v3 }
 0x452   :  { %4604 = vmatpush1.bf16.msra.mxu0 %v6491_v7  ;;  %4636 = vmatpush1.bf16.msra.mxu1 %v6500_v12 }
 0x453   :  { %4606 = vmatprep.subr.bf16.mxu0 %v6560_v33  ;;  %4638 = vmatprep.subr.bf16.mxu1 %v6571_v56 }
 0x456   :  { %4608 = vmatpush1.bf16.msra.mxu0 %v6573_v42  ;;  %4640 = vmatpush1.bf16.msra.mxu1 %v6582_v49 }
 0x457   :  { %4610 = vmatprep.subr.bf16.mxu0 %v6596_v1  ;;  %4642 = vmatprep.subr.bf16.mxu1 %v6607_v6 }
 0x45a   :  { %4612 = vmatpush1.bf16.msra.mxu0 %v6609_v10  ;;  %4644 = vmatpush1.bf16.msra.mxu1 %v6618_v19 }
 0x45b   :  { %4614 = vmatprep.subr.bf16.mxu0 %v6632_v32  ;;  %4646 = vmatprep.subr.bf16.mxu1 %v6643_v48 }
 0x45e   :  { %4616 = vmatpush1.bf16.msra.mxu0 %v6645_v54  ;;  %4648 = vmatpush1.bf16.msra.mxu1 %v6654_v4 }
 0x45f   :  { %4618 = vmatprep.subr.bf16.mxu0 %v6668_v22  ;;  %4650 = vmatprep.subr.bf16.mxu1 %v6679_v21 }
 0x462   :  { %4620 = vmatpush1.bf16.msra.mxu0 %v6681_v28  ;;  %4652 = vmatpush1.bf16.msra.mxu1 %v6693_v43 }
 0x463   :  { %4622 = vmatprep.subr.bf16.mxu0 %v6706_v0  ;;  %4654 = vmatprep.subr.bf16.mxu1 %v6708_v8 }
 0x466   :  { %4624 = vmatpush1.bf16.msra.mxu0 %v6720_v16  ;;  %4656 = vmatpush1.bf16.msra.mxu1 %v6733_v36 }
 0x467   :  { %4626 = vmatprep.subr.bf16.mxu0 %v6735_v40  ;;  %4658 = vmatprep.subr.bf16.mxu1 %v6746_v9 }
 0x46a   :  { %4628 = vmatpush1.bf16.msra.mxu0 %v6758_v15  ;;  %4660 = vmatpush1.bf16.msra.mxu1 %v6762_v17 }
 0x46b   :  { %4662 = vmatprep.subr.bf16.mxu0 %v6442_v47  ;;  %4694 = vmatprep.subr.bf16.mxu1 %v6453_v60 }
 0x520   :  { %v1496_v25 = vpop.f32.mrb[8].mxu0  ;;  %v1567_v13 = vpop.f32.mrb[8].mxu1 }
 0x521   :  { %v5373_v23 = vadd.f32 %v1496_v25, %v6360_v35  ;;  %v1498_v26 = vpop.f32.mrb[9].mxu0  ;;  %v1569_v29 = vpop.f32.mrb[9].mxu1  ;;  %v5389_v14 = vadd.f32 %v1567_v13, %v6371_v51 }
 0x522   :  { %v5374_v44 = vadd.f32 %v1498_v26, %v6364_v38  ;;  %v5390_v18 = vadd.f32 %v1569_v29, %v6377_v59 }
 0x523   :  { %v4177_v58 = vmul.f32 -1.442695, %v5373_v23  ;;  %v4179_v27 = vmul.f32 -1.442695, %v5389_v14 }
 0x524   :  { %v4178_v62 = vmul.f32 -1.442695, %v5374_v44 }
 0x525   :  { %5558 = vpow2.f32 %v4177_v58 }
 0x526   :  { %5560 = vpow2.f32 %v4178_v62 }
 0x527   :  { %5562 = vtanh.f32 %v5390_v18 }
 0x528   :  { %5564 = vpow2.f32 %v4179_v27 }
 0x52f   :  { %v5559_v47 = vpop.eup %5558 }
 0x530   :  { %v1585_v41 = vadd.f32 1.0, %v5559_v47  ;;  %v5561_v60 = vpop.eup %5560 }
 0x531   :  { %v1586_v53 = vadd.f32 1.0, %v5561_v60  ;;  %v5563_v46 = vpop.eup %5562 }
 0x532   :  { %5566 = vrcp.f32 %v1585_v41  ;;  %v5565_v61 = vpop.eup %5564 }
 0x533   :  { %5568 = vrcp.f32 %v1586_v53  ;;  %v1587_v23 = vadd.f32 1.0, %v5565_v61 }
 0x535   :  { %5570 = vrcp.f32 %v1587_v23 }
 0x53c   :  { %v5567_v52 = vpop.eup %5566 }
 0x53d   :  { %v1596_v11 = vmul.f32 %v5567_v52, %v5563_v46  ;;  %v5569_v25 = vpop.eup %5568 }
 0x53e   :  { %v1595_v26 = vmul.f32 %v5569_v25, %v6774_v50 }
 0x53f   :  { %v5571_v29 = vpop.eup %5570 }
 0x540   :  { %v6820_v13 = vadd.f32 %v1596_v11, %v1595_v26 }
 0x542   :  { %5572 = vtanh.f32 %v6820_v13 }
 0x54c   :  { %v5573_v44 = vpop.eup %5572 }
 0x54d   :  { %v6823_v58 = vmul.f32 %v5573_v44, %v5571_v29 }
 0x54f   :  { %1738 = vmatmul.mubr.f32.vlgmr.msra.gmra.mrb[10].mxu0 %v6823_v58  ;;  %1809 = vmatmul.mubr.f32.vlgmr.msra.gmra.mrb[10].mxu1 %v6823_v58 }
 0x550   :  { %4664 = vmatpush1.bf16.msra.mxu0 %v6455_v63  ;;  %4696 = vmatpush1.bf16.msra.mxu1 %v6464_v45 }
 0x551   :  { %4666 = vmatprep.subr.bf16.mxu0 %v6478_v57  ;;  %4698 = vmatprep.subr.bf16.mxu1 %v6489_v5 }
 0x552   :  { %1980 = vmatprep.mubr.f32.mxu0 %v5750_v3  ;;  %2051 = vmatprep.mubr.f32.mxu1 %v5750_v3 }
 0x554   :  { %4668 = vmatpush1.bf16.msra.mxu0 %v6491_v7  ;;  %4700 = vmatpush1.bf16.msra.mxu1 %v6500_v12 }
 0x555   :  { %4670 = vmatprep.subr.bf16.mxu0 %v6560_v33  ;;  %4702 = vmatprep.subr.bf16.mxu1 %v6571_v56 }
 0x558   :  { %4672 = vmatpush1.bf16.msra.mxu0 %v6573_v42  ;;  %4704 = vmatpush1.bf16.msra.mxu1 %v6582_v49 }
 0x559   :  { %4674 = vmatprep.subr.bf16.mxu0 %v6596_v1  ;;  %4706 = vmatprep.subr.bf16.mxu1 %v6607_v6 }
 0x55c   :  { %4676 = vmatpush1.bf16.msra.mxu0 %v6609_v10  ;;  %4708 = vmatpush1.bf16.msra.mxu1 %v6618_v19 }
 0x55d   :  { %4678 = vmatprep.subr.bf16.mxu0 %v6632_v32  ;;  %4710 = vmatprep.subr.bf16.mxu1 %v6643_v48 }
 0x560   :  { %4680 = vmatpush1.bf16.msra.mxu0 %v6645_v54  ;;  %4712 = vmatpush1.bf16.msra.mxu1 %v6654_v4 }
 0x561   :  { %4682 = vmatprep.subr.bf16.mxu0 %v6668_v22  ;;  %4714 = vmatprep.subr.bf16.mxu1 %v6679_v21 }
 0x564   :  { %4684 = vmatpush1.bf16.msra.mxu0 %v6681_v28  ;;  %4716 = vmatpush1.bf16.msra.mxu1 %v6693_v43 }
 0x565   :  { %4686 = vmatprep.subr.bf16.mxu0 %v6706_v0  ;;  %4718 = vmatprep.subr.bf16.mxu1 %v6708_v8 }
 0x568   :  { %4688 = vmatpush1.bf16.msra.mxu0 %v6720_v16  ;;  %4720 = vmatpush1.bf16.msra.mxu1 %v6733_v36 }
 0x569   :  { %4690 = vmatprep.subr.bf16.mxu0 %v6735_v40  ;;  %4722 = vmatprep.subr.bf16.mxu1 %v6746_v9 }
 0x56c   :  { %4692 = vmatpush1.bf16.msra.mxu0 %v6758_v15  ;;  %4724 = vmatpush1.bf16.msra.mxu1 %v6762_v17 }
 0x622   :  { %v1739_v63 = vpop.f32.mrb[10].mxu0  ;;  %v1810_v45 = vpop.f32.mrb[10].mxu1 }
 0x623   :  { %v5375_v57 = vadd.f32 %v1739_v63, %v6360_v35  ;;  %v1741_v5 = vpop.f32.mrb[11].mxu0  ;;  %v1812_v7 = vpop.f32.mrb[11].mxu1  ;;  %v5391_v14 = vadd.f32 %v1810_v45, %v6371_v51 }
 0x624   :  { %v5376_v12 = vadd.f32 %v1741_v5, %v6364_v38  ;;  %v5392_v18 = vadd.f32 %v1812_v7, %v6377_v59  ;;  %v2098_v5 = vld [vmem:[%s7796_s2 + $0x18] sm:$0xff] }
 0x625   :  { %v4180_v50 = vmul.f32 -1.442695, %v5375_v57  ;;  %v4182_v27 = vmul.f32 -1.442695, %v5391_v14  ;;  %v2100_v57 = vld [vmem:[%s7796_s2 + $0x28] sm:$0xff] }
 0x626   :  { %v4181_v62 = vmul.f32 -1.442695, %v5376_v12  ;;  %v2102_v12 = vld [vmem:[%s7796_s2 + $0x38] sm:$0xff] }
 0x627   :  { %5574 = vpow2.f32 %v4180_v50  ;;  %v2095_v50 = vld [vmem:[%s7796_s2] sm:$0xff]  ;;  %v4757_v14 = vpack.c.bf16 %v2102_v12, %v2098_v5 }
 0x628   :  { %5576 = vpow2.f32 %v4181_v62  ;;  %v2099_v62 = vld [vmem:[%s7796_s2 + $0x20] sm:$0xff] }
 0x629   :  { %5578 = vtanh.f32 %v5392_v18  ;;  %v4727_v18 = vpack.c.bf16 %v2099_v62, %v2095_v50  ;;  %4758 = vmatprep.subr.bf16.mxu1 %v4757_v14  ;;  %v2341_v62 = vld [vmem:[%s7799_s4] sm:$0xff] }
 0x62a   :  { %5580 = vpow2.f32 %v4182_v27  ;;  %v2097_v27 = vld [vmem:[%s7796_s2 + $0x10] sm:$0xff]  ;;  %v2345_v14 = vld [vmem:[%s7799_s4 + $0x20] sm:$0xff] }
 0x631   :  { %v5575_v47 = vpop.eup %5574 }
 0x632   :  { %v1828_v41 = vadd.f32 1.0, %v5575_v47  ;;  %v5577_v60 = vpop.eup %5576  ;;  %v2101_v47 = vld [vmem:[%s7796_s2 + $0x30] sm:$0xff] }
 0x633   :  { %v1829_v53 = vadd.f32 1.0, %v5577_v60  ;;  %v5579_v46 = vpop.eup %5578  ;;  %v2104_v60 = vld [vmem:[%s7796_s2 + $0x48] sm:$0xff] }
 0x634   :  { %5582 = vrcp.f32 %v1828_v41  ;;  %v5581_v61 = vpop.eup %5580  ;;  %v4759_v41 = vpack.c.bf16 %v2101_v47, %v2097_v27  ;;  %v2350_v27 = vld [vmem:[%s7799_s4 + $0x48] sm:$0xff] }
 0x635   :  { %5584 = vrcp.f32 %v1829_v53  ;;  %v1830_v23 = vadd.f32 1.0, %v5581_v61  ;;  %v2108_v53 = vld [vmem:[%s7796_s2 + $0x68] sm:$0xff] }
 0x636   :  { %v4729_v61 = vpack.c.bf16 %v2108_v53, %v2104_v60  ;;  %v2354_v47 = vld [vmem:[%s7799_s4 + $0x68] sm:$0xff]  ;;  %v2356_v60 = vld [vmem:[%s7799_s4 + $0x78] sm:$0xff] }
 0x637   :  { %5586 = vrcp.f32 %v1830_v23 }
 0x63e   :  { %v5583_v52 = vpop.eup %5582 }
 0x63f   :  { %v1839_v11 = vmul.f32 %v5583_v52, %v5579_v46  ;;  %v5585_v25 = vpop.eup %5584  ;;  %v2106_v46 = vld [vmem:[%s7796_s2 + $0x58] sm:$0xff] }
 0x640   :  { %v1838_v26 = vmul.f32 %v5585_v25, %v6820_v13  ;;  %v2096_v13 = vld [vmem:[%s7796_s2 + $0x8] sm:$0xff]  ;;  %v2110_v52 = vld [vmem:[%s7796_s2 + $0x78] sm:$0xff]  ;;  %v2107_v25 = vld [vmem:[%s7796_s2 + $0x60] sm:$0xff] }
 0x641   :  { %v5587_v44 = vpop.eup %5586  ;;  %v4725_v7 = vpack.c.bf16 %v2100_v57, %v2096_v13  ;;  %v4761_v23 = vpack.c.bf16 %v2110_v52, %v2106_v46 }
 0x642   :  { %v6864_v29 = vadd.f32 %v1839_v11, %v1838_v26  ;;  %v2103_v11 = vld [vmem:[%s7796_s2 + $0x40] sm:$0xff] }
 0x643   :  { %4726 = vmatprep.subr.bf16.mxu0 %v4725_v7  ;;  %v4731_v26 = vpack.c.bf16 %v2107_v25, %v2103_v11  ;;  %v2349_v11 = vld [vmem:[%s7799_s4 + $0x40] sm:$0xff] }
 0x644   :  { %5588 = vtanh.f32 %v6864_v29  ;;  %v2353_v25 = vld [vmem:[%s7799_s4 + $0x60] sm:$0xff] }
 0x64e   :  { %v5589_v63 = vpop.eup %5588 }
 0x64f   :  { %v6867_v45 = vmul.f32 %v5589_v63, %v5587_v44  ;;  %v2105_v44 = vld [vmem:[%s7796_s2 + $0x50] sm:$0xff] }
 0x650   :  { %v2109_v63 = vld [vmem:[%s7796_s2 + $0x70] sm:$0xff] }
 0x651   :  { %1981 = vmatmul.mubr.f32.vlgmr.msra.gmra.mrb[12].mxu0 %v6867_v45  ;;  %2052 = vmatmul.mubr.f32.vlgmr.msra.gmra.mrb[12].mxu1 %v6867_v45  ;;  %v4763_v13 = vpack.c.bf16 %v2109_v63, %v2105_v44  ;;  %v2351_v63 = vld [vmem:[%s7799_s4 + $0x50] sm:$0xff] }
 0x652   :  { %2223 = vmatprep.mubr.f32.mxu0 %v5750_v3  ;;  %2294 = vmatprep.mubr.f32.mxu1 %v5750_v3 }
 0x653   :  { %4728 = vmatpush1.bf16.msra.mxu0 %v4727_v18  ;;  %4760 = vmatpush1.bf16.msra.mxu1 %v4759_v41  ;;  %v2343_v18 = vld [vmem:[%s7799_s4 + $0x10] sm:$0xff]  ;;  %v2352_v41 = vld [vmem:[%s7799_s4 + $0x58] sm:$0xff] }
 0x654   :  { %4730 = vmatprep.subr.bf16.mxu0 %v4729_v61  ;;  %4762 = vmatprep.subr.bf16.mxu1 %v4761_v23  ;;  %v4791_v61 = vpack.c.bf16 %v2345_v14, %v2341_v62  ;;  %v4825_v44 = vpack.c.bf16 %v2356_v60, %v2352_v41  ;;  %v2375_v41 = vld [vmem:[%s7799_s4 + $0x110] sm:$0xff] }
 0x655   :  { %v2379_v60 = vld [vmem:[%s7799_s4 + $0x130] sm:$0xff] }
 0x657   :  { %4732 = vmatpush1.bf16.msra.mxu0 %v4731_v26  ;;  %4764 = vmatpush1.bf16.msra.mxu1 %v4763_v13  ;;  %v4793_v26 = vpack.c.bf16 %v2354_v47, %v2350_v27  ;;  %v2355_v13 = vld [vmem:[%s7799_s4 + $0x70] sm:$0xff] }
 0x658   :  { %4734 = vmatprep.subr.bf16.mxu0 %v6560_v33  ;;  %4766 = vmatprep.subr.bf16.mxu1 %v6571_v56  ;;  %v2342_v33 = vld [vmem:[%s7799_s4 + $0x8] sm:$0xff] }
 0x659   :  { %v2346_v56 = vld [vmem:[%s7799_s4 + $0x28] sm:$0xff] }
 0x65b   :  { %4736 = vmatpush1.bf16.msra.mxu0 %v6573_v42  ;;  %4768 = vmatpush1.bf16.msra.mxu1 %v6582_v49  ;;  %v2344_v42 = vld [vmem:[%s7799_s4 + $0x18] sm:$0xff] }
 0x65c   :  { %4738 = vmatprep.subr.bf16.mxu0 %v6596_v1  ;;  %4770 = vmatprep.subr.bf16.mxu1 %v6607_v6  ;;  %v2348_v49 = vld [vmem:[%s7799_s4 + $0x38] sm:$0xff]  ;;  %v4789_v1 = vpack.c.bf16 %v2346_v56, %v2342_v33  ;;  %v2358_v33 = vld [vmem:[%s7799_s4 + $0x88] sm:$0xff] }
 0x65d   :  { %v4821_v6 = vpack.c.bf16 %v2348_v49, %v2344_v42  ;;  %v2362_v56 = vld [vmem:[%s7799_s4 + $0xa8] sm:$0xff]  ;;  %v2360_v42 = vld [vmem:[%s7799_s4 + $0x98] sm:$0xff] }
 0x65e   :  { %v2364_v49 = vld [vmem:[%s7799_s4 + $0xb8] sm:$0xff] }
 0x65f   :  { %4740 = vmatpush1.bf16.msra.mxu0 %v6609_v10  ;;  %4772 = vmatpush1.bf16.msra.mxu1 %v6618_v19 }
 0x660   :  { %4742 = vmatprep.subr.bf16.mxu0 %v6632_v32  ;;  %4774 = vmatprep.subr.bf16.mxu1 %v6643_v48 }
 0x663   :  { %4744 = vmatpush1.bf16.msra.mxu0 %v6645_v54  ;;  %4776 = vmatpush1.bf16.msra.mxu1 %v6654_v4 }
 0x664   :  { %4746 = vmatprep.subr.bf16.mxu0 %v6668_v22  ;;  %4778 = vmatprep.subr.bf16.mxu1 %v6679_v21 }
 0x667   :  { %4748 = vmatpush1.bf16.msra.mxu0 %v6681_v28  ;;  %4780 = vmatpush1.bf16.msra.mxu1 %v6693_v43 }
 0x668   :  { %4750 = vmatprep.subr.bf16.mxu0 %v6706_v0  ;;  %4782 = vmatprep.subr.bf16.mxu1 %v6708_v8 }
 0x66b   :  { %4752 = vmatpush1.bf16.msra.mxu0 %v6720_v16  ;;  %4784 = vmatpush1.bf16.msra.mxu1 %v6733_v36 }
 0x66c   :  { %4754 = vmatprep.subr.bf16.mxu0 %v6735_v40  ;;  %4786 = vmatprep.subr.bf16.mxu1 %v6746_v9 }
 0x66f   :  { %4756 = vmatpush1.bf16.msra.mxu0 %v6758_v15  ;;  %4788 = vmatpush1.bf16.msra.mxu1 %v6762_v17 }
 0x670   :  { %4790 = vmatprep.subr.bf16.mxu0 %v4789_v1  ;;  %4822 = vmatprep.subr.bf16.mxu1 %v4821_v6  ;;  %v4795_v1 = vpack.c.bf16 %v2353_v25, %v2349_v11  ;;  %v4827_v6 = vpack.c.bf16 %v2355_v13, %v2351_v63  ;;  %v4839_v25 = vpack.c.bf16 %v2379_v60, %v2375_v41  ;;  %v2706_v41 = vld [vmem:[%s7800_s5 + $0x68] sm:$0xff]  ;;  %v2704_v60 = vld [vmem:[%s7800_s5 + $0x58] sm:$0xff] }
 0x724   :  { %v1982_v10 = vpop.f32.mrb[12].mxu0  ;;  %v2053_v19 = vpop.f32.mrb[12].mxu1 }
 0x725   :  { %v5377_v32 = vadd.f32 %v1982_v10, %v6360_v35  ;;  %v1984_v48 = vpop.f32.mrb[13].mxu0  ;;  %v2055_v54 = vpop.f32.mrb[13].mxu1  ;;  %v5393_v28 = vadd.f32 %v2053_v19, %v6371_v51  ;;  %v2357_v10 = vld [vmem:[%s7799_s4 + $0x80] sm:$0xff] }
 0x726   :  { %v5378_v4 = vadd.f32 %v1984_v48, %v6364_v38  ;;  %v5394_v43 = vadd.f32 %v2055_v54, %v6377_v59  ;;  %v2361_v19 = vld [vmem:[%s7799_s4 + $0xa0] sm:$0xff]  ;;  %v4829_v48 = vpack.c.bf16 %v2364_v49, %v2360_v42  ;;  %v2359_v54 = vld [vmem:[%s7799_s4 + $0x90] sm:$0xff]  ;;  %v2390_v42 = vld [vmem:[%s7799_s4 + $0x188] sm:$0xff] }
 0x727   :  { %v4183_v22 = vmul.f32 -1.442695, %v5377_v32  ;;  %v4185_v0 = vmul.f32 -1.442695, %v5393_v28  ;;  %v4797_v32 = vpack.c.bf16 %v2362_v56, %v2358_v33  ;;  %v2368_v28 = vld [vmem:[%s7799_s4 + $0xd8] sm:$0xff]  ;;  %v2383_v33 = vld [vmem:[%s7799_s4 + $0x150] sm:$0xff] }
 0x728   :  { %v4184_v21 = vmul.f32 -1.442695, %v5378_v4  ;;  %v2363_v4 = vld [vmem:[%s7799_s4 + $0xb0] sm:$0xff]  ;;  %v2394_v49 = vld [vmem:[%s7799_s4 + $0x1a8] sm:$0xff] }
 0x729   :  { %5590 = vpow2.f32 %v4183_v22  ;;  %v2366_v22 = vld [vmem:[%s7799_s4 + $0xc8] sm:$0xff]  ;;  %v2387_v56 = vld [vmem:[%s7799_s4 + $0x170] sm:$0xff] }
 0x72a   :  { %5592 = vpow2.f32 %v4184_v21  ;;  %v2370_v21 = vld [vmem:[%s7799_s4 + $0xe8] sm:$0xff] }
 0x72b   :  { %5594 = vtanh.f32 %v5394_v43  ;;  %v2372_v43 = vld [vmem:[%s7799_s4 + $0xf8] sm:$0xff] }
 0x72c   :  { %5596 = vpow2.f32 %v4185_v0  ;;  %v4799_v0 = vpack.c.bf16 %v2361_v19, %v2357_v10  ;;  %v4843_v19 = vpack.c.bf16 %v2387_v56, %v2383_v33  ;;  %v2714_v33 = vld [vmem:[%s7800_s5 + $0xa8] sm:$0xff]  ;;  %v2712_v56 = vld [vmem:[%s7800_s5 + $0x98] sm:$0xff] }
 0x733   :  { %v5591_v8 = vpop.eup %5590 }
 0x734   :  { %v2071_v16 = vadd.f32 1.0, %v5591_v8  ;;  %v5593_v36 = vpop.eup %5592  ;;  %v4831_v8 = vpack.c.bf16 %v2363_v4, %v2359_v54  ;;  %v4813_v54 = vpack.c.bf16 %v2394_v49, %v2390_v42  ;;  %v2716_v49 = vld [vmem:[%s7800_s5 + $0xb8] sm:$0xff] }
 0x735   :  { %v2072_v40 = vadd.f32 1.0, %v5593_v36  ;;  %v5595_v9 = vpop.eup %5594  ;;  %v2369_v36 = vld [vmem:[%s7799_s4 + $0xe0] sm:$0xff] }
 0x736   :  { %5598 = vrcp.f32 %v2071_v16  ;;  %v5597_v15 = vpop.eup %5596  ;;  %v2365_v16 = vld [vmem:[%s7799_s4 + $0xc0] sm:$0xff] }
 0x737   :  { %5600 = vrcp.f32 %v2072_v40  ;;  %v2073_v7 = vadd.f32 1.0, %v5597_v15  ;;  %v4801_v40 = vpack.c.bf16 %v2370_v21, %v2366_v22  ;;  %v2367_v15 = vld [vmem:[%s7799_s4 + $0xd0] sm:$0xff]  ;;  %v4803_v62 = vpack.c.bf16 %v2369_v36, %v2365_v16 }
 0x738   :  { %v2391_v22 = vld [vmem:[%s7799_s4 + $0x190] sm:$0xff] }
 0x739   :  { %5602 = vrcp.f32 %v2073_v7  ;;  %v2376_v7 = vld [vmem:[%s7799_s4 + $0x118] sm:$0xff]  ;;  %v2395_v21 = vld [vmem:[%s7799_s4 + $0x1b0] sm:$0xff] }
 0x73a   :  { %v4847_v36 = vpack.c.bf16 %v2395_v21, %v2391_v22  ;;  %v2722_v22 = vld [vmem:[%s7800_s5 + $0xe8] sm:$0xff]  ;;  %v2720_v21 = vld [vmem:[%s7800_s5 + $0xd8] sm:$0xff] }
 0x740   :  { %v5599_v17 = vpop.eup %5598 }
 0x741   :  { %v2082_v57 = vmul.f32 %v5599_v17, %v5595_v9  ;;  %v5601_v5 = vpop.eup %5600  ;;  %v4833_v9 = vpack.c.bf16 %v2372_v43, %v2368_v28  ;;  %v2371_v17 = vld [vmem:[%s7799_s4 + $0xf0] sm:$0xff]  ;;  %v2398_v28 = vld [vmem:[%s7799_s4 + $0x1c8] sm:$0xff] }
 0x742   :  { %v2081_v12 = vmul.f32 %v5601_v5, %v6864_v29  ;;  %v2347_v29 = vld [vmem:[%s7799_s4 + $0x30] sm:$0xff]  ;;  %v2378_v5 = vld [vmem:[%s7799_s4 + $0x128] sm:$0xff]  ;;  %v4835_v14 = vpack.c.bf16 %v2371_v17, %v2367_v15  ;;  %v2401_v17 = vld [vmem:[%s7799_s4 + $0x1e0] sm:$0xff] }
 0x743   :  { %v5603_v53 = vpop.eup %5602  ;;  %v4823_v52 = vpack.c.bf16 %v2347_v29, %v2343_v18  ;;  %v2373_v18 = vld [vmem:[%s7799_s4 + $0x100] sm:$0xff]  ;;  %v2402_v43 = vld [vmem:[%s7799_s4 + $0x1e8] sm:$0xff] }
 0x744   :  { %v6962_v50 = vadd.f32 %v2082_v57, %v2081_v12  ;;  %v2374_v57 = vld [vmem:[%s7799_s4 + $0x108] sm:$0xff]  ;;  %v2380_v12 = vld [vmem:[%s7799_s4 + $0x138] sm:$0xff]  ;;  %v2377_v29 = vld [vmem:[%s7799_s4 + $0x120] sm:$0xff] }
 0x745   :  { %v4805_v27 = vpack.c.bf16 %v2378_v5, %v2374_v57  ;;  %v4837_v47 = vpack.c.bf16 %v2380_v12, %v2376_v7  ;;  %v4807_v11 = vpack.c.bf16 %v2377_v29, %v2373_v18  ;;  %v2399_v57 = vld [vmem:[%s7799_s4 + $0x1d0] sm:$0xff] }
 0x746   :  { %5604 = vtanh.f32 %v6962_v50  ;;  %v2403_v5 = vld [vmem:[%s7799_s4 + $0x1f0] sm:$0xff] }
 0x747   :  { %v4851_v12 = vpack.c.bf16 %v2403_v5, %v2399_v57  ;;  %v2695_v18 = vld [vmem:[%s7800_s5 + $0x10] sm:$0xff]  ;;  %v2730_v57 = vld [vmem:[%s7800_s5 + $0x128] sm:$0xff]  ;;  %v2728_v5 = vld [vmem:[%s7800_s5 + $0x118] sm:$0xff] }
 0x748   :  { %v2699_v29 = vld [vmem:[%s7800_s5 + $0x30] sm:$0xff] }
 0x750   :  { %v5605_v46 = vpop.eup %5604 }
 0x751   :  { %v6995_v23 = vmul.f32 %v5605_v46, %v5603_v53  ;;  %v2382_v53 = vld [vmem:[%s7799_s4 + $0x148] sm:$0xff] }
 0x752   :  { %v2386_v46 = vld [vmem:[%s7799_s4 + $0x168] sm:$0xff] }
 0x753   :  { %2224 = vmatmul.mubr.f32.vlgmr.msra.gmra.mrb[14].mxu0 %v6995_v23  ;;  %2295 = vmatmul.mubr.f32.vlgmr.msra.gmra.mrb[14].mxu1 %v6995_v23  ;;  %v4809_v63 = vpack.c.bf16 %v2386_v46, %v2382_v53  ;;  %v2708_v46 = vld [vmem:[%s7800_s5 + $0x78] sm:$0xff] }
 0x754   :  { %4792 = vmatpush1.bf16.msra.mxu0 %v4791_v61  ;;  %4824 = vmatpush1.bf16.msra.mxu1 %v4823_v52  ;;  %v2384_v61 = vld [vmem:[%s7799_s4 + $0x158] sm:$0xff] }
 0x755   :  { %4794 = vmatprep.subr.bf16.mxu0 %v4793_v26  ;;  %4826 = vmatprep.subr.bf16.mxu1 %v4825_v44  ;;  %v2388_v52 = vld [vmem:[%s7799_s4 + $0x178] sm:$0xff]  ;;  %v2381_v26 = vld [vmem:[%s7799_s4 + $0x140] sm:$0xff] }
 0x756   :  { %2491 = vmatprep.mubr.f32.mxu0 %v5750_v3  ;;  %2604 = vmatprep.mubr.f32.mxu1 %v5750_v3  ;;  %v2385_v44 = vld [vmem:[%s7799_s4 + $0x160] sm:$0xff]  ;;  %v4841_v13 = vpack.c.bf16 %v2388_v52, %v2384_v61 }
 0x757   :  { %v4811_v10 = vpack.c.bf16 %v2385_v44, %v2381_v26  ;;  %v2701_v61 = vld [vmem:[%s7800_s5 + $0x40] sm:$0xff]  ;;  %v2703_v26 = vld [vmem:[%s7800_s5 + $0x50] sm:$0xff] }
 0x758   :  { %4796 = vmatpush1.bf16.msra.mxu0 %v4795_v1  ;;  %4828 = vmatpush1.bf16.msra.mxu1 %v4827_v6  ;;  %v2392_v1 = vld [vmem:[%s7799_s4 + $0x198] sm:$0xff]  ;;  %v2705_v52 = vld [vmem:[%s7800_s5 + $0x60] sm:$0xff]  ;;  %v2707_v44 = vld [vmem:[%s7800_s5 + $0x70] sm:$0xff] }
 0x759   :  { %4798 = vmatprep.subr.bf16.mxu0 %v4797_v32  ;;  %4830 = vmatprep.subr.bf16.mxu1 %v4829_v48  ;;  %v2396_v6 = vld [vmem:[%s7799_s4 + $0x1b8] sm:$0xff]  ;;  %v2389_v32 = vld [vmem:[%s7799_s4 + $0x180] sm:$0xff] }
 0x75a   :  { %v2393_v48 = vld [vmem:[%s7799_s4 + $0x1a0] sm:$0xff]  ;;  %v4845_v4 = vpack.c.bf16 %v2396_v6, %v2392_v1 }
 0x75b   :  { %v4815_v16 = vpack.c.bf16 %v2393_v48, %v2389_v32  ;;  %v2709_v1 = vld [vmem:[%s7800_s5 + $0x80] sm:$0xff]  ;;  %v2711_v32 = vld [vmem:[%s7800_s5 + $0x90] sm:$0xff] }
 0x75c   :  { %4800 = vmatpush1.bf16.msra.mxu0 %v4799_v0  ;;  %4832 = vmatpush1.bf16.msra.mxu1 %v4831_v8  ;;  %v2400_v0 = vld [vmem:[%s7799_s4 + $0x1d8] sm:$0xff]  ;;  %v2713_v6 = vld [vmem:[%s7800_s5 + $0xa0] sm:$0xff]  ;;  %v2715_v48 = vld [vmem:[%s7800_s5 + $0xb0] sm:$0xff] }
 0x75d   :  { %4802 = vmatprep.subr.bf16.mxu0 %v4801_v40  ;;  %4834 = vmatprep.subr.bf16.mxu1 %v4833_v9  ;;  %v2404_v8 = vld [vmem:[%s7799_s4 + $0x1f8] sm:$0xff]  ;;  %v2397_v40 = vld [vmem:[%s7799_s4 + $0x1c0] sm:$0xff]  ;;  %v4817_v9 = vpack.c.bf16 %v2402_v43, %v2398_v28 }
 0x75e   :  { %v4849_v15 = vpack.c.bf16 %v2404_v8, %v2400_v0  ;;  %v4819_v7 = vpack.c.bf16 %v2401_v17, %v2397_v40  ;;  %v2724_v43 = vld [vmem:[%s7800_s5 + $0xf8] sm:$0xff]  ;;  %v2717_v0 = vld [vmem:[%s7800_s5 + $0xc0] sm:$0xff]  ;;  %v2719_v40 = vld [vmem:[%s7800_s5 + $0xd0] sm:$0xff] }
 0x75f   :  { %v2721_v8 = vld [vmem:[%s7800_s5 + $0xe0] sm:$0xff]  ;;  %v2726_v17 = vld [vmem:[%s7800_s5 + $0x108] sm:$0xff] }
 0x760   :  { %4804 = vmatpush1.bf16.msra.mxu0 %v4803_v62  ;;  %4836 = vmatpush1.bf16.msra.mxu1 %v4835_v14 }
 0x761   :  { %4806 = vmatprep.subr.bf16.mxu0 %v4805_v27  ;;  %4838 = vmatprep.subr.bf16.mxu1 %v4837_v47  ;;  %v7210_v27 = vpack.c.bf16 %v2699_v29, %v2695_v18  ;;  %v2702_v47 = vld [vmem:[%s7800_s5 + $0x48] sm:$0xff] }
 0x762   :  { %v7224_v53 = vpack.c.bf16 %v2706_v41, %v2702_v47  ;;  %v2734_v18 = vld [vmem:[%s7800_s5 + $0x148] sm:$0xff]  ;;  %v2736_v41 = vld [vmem:[%s7800_s5 + $0x158] sm:$0xff] }
 0x763   :  { %v2738_v47 = vld [vmem:[%s7800_s5 + $0x168] sm:$0xff] }
 0x764   :  { %4808 = vmatpush1.bf16.msra.mxu0 %v4807_v11  ;;  %4840 = vmatpush1.bf16.msra.mxu1 %v4839_v25  ;;  %v7235_v11 = vpack.c.bf16 %v2708_v46, %v2704_v60  ;;  %v7237_v25 = vpack.c.bf16 %v2705_v52, %v2701_v61  ;;  %v2740_v60 = vld [vmem:[%s7800_s5 + $0x178] sm:$0xff]  ;;  %v7370_v46 = vpack.c.bf16 %v2738_v47, %v2734_v18  ;;  %v2733_v52 = vld [vmem:[%s7800_s5 + $0x140] sm:$0xff]  ;;  %v2751_v18 = vld [vmem:[%s7800_s5 + $0x1d0] sm:$0xff] }
 0x765   :  { %4810 = vmatprep.subr.bf16.mxu0 %v4809_v63  ;;  %4842 = vmatprep.subr.bf16.mxu1 %v4841_v13  ;;  %v7246_v63 = vpack.c.bf16 %v2707_v44, %v2703_v26  ;;  %v2710_v13 = vld [vmem:[%s7800_s5 + $0x88] sm:$0xff]  ;;  %v7372_v61 = vpack.c.bf16 %v2740_v60, %v2736_v41  ;;  %v2737_v26 = vld [vmem:[%s7800_s5 + $0x160] sm:$0xff]  ;;  %v2735_v44 = vld [vmem:[%s7800_s5 + $0x150] sm:$0xff] }
 0x766   :  { %v7260_v42 = vpack.c.bf16 %v2714_v33, %v2710_v13  ;;  %v7384_v13 = vpack.c.bf16 %v2737_v26, %v2733_v52  ;;  %v2739_v33 = vld [vmem:[%s7800_s5 + $0x170] sm:$0xff] }
 0x767   :  { %v2755_v47 = vld [vmem:[%s7800_s5 + $0x1f0] sm:$0xff] }
 0x768   :  { %4812 = vmatpush1.bf16.msra.mxu0 %v4811_v10  ;;  %4844 = vmatpush1.bf16.msra.mxu1 %v4843_v19  ;;  %v7271_v10 = vpack.c.bf16 %v2716_v49, %v2712_v56  ;;  %v7273_v19 = vpack.c.bf16 %v2713_v6, %v2709_v1  ;;  %v2742_v56 = vld [vmem:[%s7800_s5 + $0x188] sm:$0xff]  ;;  %v7397_v1 = vpack.c.bf16 %v2739_v33, %v2735_v44 }
 0x769   :  { %4814 = vmatprep.subr.bf16.mxu0 %v4813_v54  ;;  %4846 = vmatprep.subr.bf16.mxu1 %v4845_v4  ;;  %v7282_v54 = vpack.c.bf16 %v2715_v48, %v2711_v32  ;;  %v2718_v4 = vld [vmem:[%s7800_s5 + $0xc8] sm:$0xff]  ;;  %v2744_v32 = vld [vmem:[%s7800_s5 + $0x198] sm:$0xff]  ;;  %v7462_v41 = vpack.c.bf16 %v2755_v47, %v2751_v18 }
 0x76a   :  { %v7296_v28 = vpack.c.bf16 %v2722_v22, %v2718_v4  ;;  %v2746_v49 = vld [vmem:[%s7800_s5 + $0x1a8] sm:$0xff]  ;;  %v2748_v48 = vld [vmem:[%s7800_s5 + $0x1b8] sm:$0xff]  ;;  %v2741_v4 = vld [vmem:[%s7800_s5 + $0x180] sm:$0xff] }
 0x76b   :  { %v7399_v6 = vpack.c.bf16 %v2746_v49, %v2742_v56  ;;  %v7410_v22 = vpack.c.bf16 %v2748_v48, %v2744_v32 }
 0x76c   :  { %4816 = vmatpush1.bf16.msra.mxu0 %v4815_v16  ;;  %4848 = vmatpush1.bf16.msra.mxu1 %v4847_v36  ;;  %v7307_v16 = vpack.c.bf16 %v2724_v43, %v2720_v21  ;;  %v7309_v36 = vpack.c.bf16 %v2721_v8, %v2717_v0  ;;  %v2745_v21 = vld [vmem:[%s7800_s5 + $0x1a0] sm:$0xff]  ;;  %v2743_v43 = vld [vmem:[%s7800_s5 + $0x190] sm:$0xff] }
 0x76d   :  { %4818 = vmatprep.subr.bf16.mxu0 %v4817_v9  ;;  %4850 = vmatprep.subr.bf16.mxu1 %v4849_v15  ;;  %v2723_v9 = vld [vmem:[%s7800_s5 + $0xf0] sm:$0xff]  ;;  %v7422_v8 = vpack.c.bf16 %v2745_v21, %v2741_v4 }
 0x76e   :  { %v7318_v15 = vpack.c.bf16 %v2723_v9, %v2719_v40  ;;  %v2747_v0 = vld [vmem:[%s7800_s5 + $0x1b0] sm:$0xff]  ;;  %v2750_v9 = vld [vmem:[%s7800_s5 + $0x1c8] sm:$0xff] }
 0x76f   :  { %v7426_v40 = vpack.c.bf16 %v2747_v0, %v2743_v43 }
 0x770   :  { %4820 = vmatpush1.bf16.msra.mxu0 %v4819_v7  ;;  %4852 = vmatpush1.bf16.msra.mxu1 %v4851_v12  ;;  %v7332_v7 = vpack.c.bf16 %v2730_v57, %v2726_v17  ;;  %v2732_v12 = vld [vmem:[%s7800_s5 + $0x138] sm:$0xff]  ;;  %v2754_v17 = vld [vmem:[%s7800_s5 + $0x1e8] sm:$0xff] }
 0x771   :  { %v2752_v57 = vld [vmem:[%s7800_s5 + $0x1d8] sm:$0xff] }
 0x773   :  { %2492 = vmatmul.mubr.f32.vlgmr.msra.gmra.mrb[16].mxu0 %v6383_v39  ;;  %2605 = vmatmul.mubr.f32.vlgmr.msra.gmra.mrb[16].mxu1 %v6383_v39  ;;  %v2694_v39 = vld [vmem:[%s7800_s5 + $0x8] sm:$0xff] }
 0x774   :  { %2497 = vmatprep.mubr.f32.mxu0 %v5750_v3  ;;  %2610 = vmatprep.mubr.f32.mxu1 %v5750_v3 }
 0x777   :  { %2498 = vmatmul.mubr.f32.gmra.mrb[18].mxu0 %v6427_v24  ;;  %2611 = vmatmul.mubr.f32.gmra.mrb[18].mxu1 %v6427_v24  ;;  %v2698_v24 = vld [vmem:[%s7800_s5 + $0x28] sm:$0xff] }
 0x778   :  { %2503 = vmatprep.mubr.f32.mxu0 %v5750_v3  ;;  %2616 = vmatprep.mubr.f32.mxu1 %v5750_v3 }
 0x77b   :  { %2504 = vmatmul.mubr.f32.gmra.mrb[20].mxu0 %v6539_v20  ;;  %2617 = vmatmul.mubr.f32.gmra.mrb[20].mxu1 %v6539_v20  ;;  %v2696_v20 = vld [vmem:[%s7800_s5 + $0x18] sm:$0xff] }
 0x77c   :  { %2509 = vmatprep.mubr.f32.mxu0 %v5750_v3  ;;  %2622 = vmatprep.mubr.f32.mxu1 %v5750_v3 }
 0x77f   :  { %2510 = vmatmul.mubr.f32.gmra.mrb[22].mxu0 %v6777_v2  ;;  %2623 = vmatmul.mubr.f32.gmra.mrb[22].mxu1 %v6777_v2  ;;  %v7188_v2 = vpack.c.bf16 %v2698_v24, %v2694_v39  ;;  %v2725_v39 = vld [vmem:[%s7800_s5 + $0x100] sm:$0xff] }
 0x780   :  { %2515 = vmatprep.mubr.f32.mxu0 %v5750_v3  ;;  %2628 = vmatprep.mubr.f32.mxu1 %v5750_v3  ;;  %v2729_v24 = vld [vmem:[%s7800_s5 + $0x120] sm:$0xff] }
 0x781   :  { %4854 = vmatprep.subr.bf16.mxu0 %v7188_v2 }
 0x783   :  { %2516 = vmatmul.mubr.f32.gmra.mrb[24].mxu0 %v6823_v58  ;;  %2629 = vmatmul.mubr.f32.gmra.mrb[24].mxu1 %v6823_v58  ;;  %v2700_v58 = vld [vmem:[%s7800_s5 + $0x38] sm:$0xff] }
 0x784   :  { %2521 = vmatprep.mubr.f32.mxu0 %v5750_v3  ;;  %2634 = vmatprep.mubr.f32.mxu1 %v5750_v3  ;;  %v7199_v62 = vpack.c.bf16 %v2700_v58, %v2696_v20  ;;  %v7343_v20 = vpack.c.bf16 %v2732_v12, %v2728_v5  ;;  %v7345_v58 = vpack.c.bf16 %v2729_v24, %v2725_v39  ;;  %v2756_v12 = vld [vmem:[%s7800_s5 + $0x1f8] sm:$0xff]  ;;  %v2749_v39 = vld [vmem:[%s7800_s5 + $0x1c0] sm:$0xff] }
 0x785   :  { %v7440_v5 = vpack.c.bf16 %v2754_v17, %v2750_v9  ;;  %v2753_v24 = vld [vmem:[%s7800_s5 + $0x1e0] sm:$0xff] }
 0x786   :  { %4886 = vmatprep.subr.bf16.mxu1 %v7199_v62 }
 0x787   :  { %2522 = vmatmul.mubr.f32.gmra.mrb[26].mxu0 %v6867_v45  ;;  %2635 = vmatmul.mubr.f32.gmra.mrb[26].mxu1 %v6867_v45  ;;  %v2693_v45 = vld [vmem:[%s7800_s5] sm:$0xff] }
 0x788   :  { %2527 = vmatprep.mubr.f32.mxu0 %v5750_v3  ;;  %2640 = vmatprep.mubr.f32.mxu1 %v5750_v3 }
 0x789   :  { %4888 = vmatpush1.bf16.msra.mxu1 %v7210_v27 }
 0x78a   :  { %4890 = vmatprep.subr.bf16.mxu1 %v7235_v11 }
 0x78b   :  { %2528 = vmatmul.mubr.f32.gmra.mrb[28].mxu0 %v6995_v23  ;;  %2641 = vmatmul.mubr.f32.gmra.mrb[28].mxu1 %v6995_v23  ;;  %v2697_v23 = vld [vmem:[%s7800_s5 + $0x20] sm:$0xff] }
 0x78c   :  { %2533 = vmatprep.mubr.f32.mxu0 %v5750_v3  ;;  %2646 = vmatprep.mubr.f32.mxu1 %v5750_v3  ;;  %v7201_v14 = vpack.c.bf16 %v2697_v23, %v2693_v45  ;;  %v2727_v45 = vld [vmem:[%s7800_s5 + $0x110] sm:$0xff] }
 0x78d   :  { %4892 = vmatpush1.bf16.msra.mxu1 %v7246_v63  ;;  %v2731_v23 = vld [vmem:[%s7800_s5 + $0x130] sm:$0xff] }
 0x78e   :  { %4856 = vmatpush1.bf16.msra.mxu0 %v7201_v14  ;;  %4894 = vmatprep.subr.bf16.mxu1 %v7271_v10  ;;  %v7357_v29 = vpack.c.bf16 %v2731_v23, %v2727_v45  ;;  %v7451_v45 = vpack.c.bf16 %v2756_v12, %v2752_v57  ;;  %v7453_v23 = vpack.c.bf16 %v2753_v24, %v2749_v39 }
 0x78f   :  { %4858 = vmatprep.subr.bf16.mxu0 %v7224_v53 }
 0x791   :  { %4896 = vmatpush1.bf16.msra.mxu1 %v7282_v54 }
 0x792   :  { %4860 = vmatpush1.bf16.msra.mxu0 %v7237_v25  ;;  %4898 = vmatprep.subr.bf16.mxu1 %v7307_v16 }
 0x793   :  { %4862 = vmatprep.subr.bf16.mxu0 %v7260_v42 }
 0x795   :  { %4900 = vmatpush1.bf16.msra.mxu1 %v7318_v15 }
 0x796   :  { %4864 = vmatpush1.bf16.msra.mxu0 %v7273_v19  ;;  %4902 = vmatprep.subr.bf16.mxu1 %v7343_v20 }
 0x797   :  { %4866 = vmatprep.subr.bf16.mxu0 %v7296_v28 }
 0x799   :  { %4904 = vmatpush1.bf16.msra.mxu1 %v7357_v29 }
 0x79a   :  { %4868 = vmatpush1.bf16.msra.mxu0 %v7309_v36  ;;  %4906 = vmatprep.subr.bf16.mxu1 %v7372_v61 }
 0x79b   :  { %4870 = vmatprep.subr.bf16.mxu0 %v7332_v7 }
 0x79d   :  { %4908 = vmatpush1.bf16.msra.mxu1 %v7397_v1 }
 0x79e   :  { %4872 = vmatpush1.bf16.msra.mxu0 %v7345_v58  ;;  %4910 = vmatprep.subr.bf16.mxu1 %v7410_v22 }
 0x79f   :  { %4874 = vmatprep.subr.bf16.mxu0 %v7370_v46 }
 0x7a1   :  { %4912 = vmatpush1.bf16.msra.mxu1 %v7426_v40 }
 0x7a2   :  { %4876 = vmatpush1.bf16.msra.mxu0 %v7384_v13  ;;  %4914 = vmatprep.subr.bf16.mxu1 %v7451_v45 }
 0x7a3   :  { %4878 = vmatprep.subr.bf16.mxu0 %v7399_v6 }
 0x7a5   :  { %4916 = vmatpush1.bf16.msra.mxu1 %v7462_v41 }
 0x7a6   :  { %4880 = vmatpush1.bf16.msra.mxu0 %v7422_v8  ;;  %4950 = vmatprep.subr.bf16.mxu1 %v7199_v62 }
 0x7a7   :  { %4882 = vmatprep.subr.bf16.mxu0 %v7440_v5 }
 0x7aa   :  { %4884 = vmatpush1.bf16.msra.mxu0 %v7453_v23 }
 0x7ab   :  { %4918 = vmatprep.subr.bf16.mxu0 %v7188_v2 }
 0x826   :  { %v2225_v60 = vpop.f32.mrb[14].mxu0  ;;  %v2296_v52 = vpop.f32.mrb[14].mxu1 }
 0x827   :  { %v5379_v26 = vadd.f32 %v2225_v60, %v6360_v35  ;;  %v2227_v44 = vpop.f32.mrb[15].mxu0  ;;  %v2298_v33 = vpop.f32.mrb[15].mxu1  ;;  %v5395_v48 = vadd.f32 %v2296_v52, %v6371_v51 }
 0x828   :  { %v5380_v56 = vadd.f32 %v2227_v44, %v6364_v38  ;;  %v5396_v4 = vadd.f32 %v2298_v33, %v6377_v59 }
 0x829   :  { %v4186_v49 = vmul.f32 -1.442695, %v5379_v26  ;;  %v4188_v21 = vmul.f32 -1.442695, %v5395_v48 }
 0x82a   :  { %v4187_v32 = vmul.f32 -1.442695, %v5380_v56 }
 0x82b   :  { %5606 = vpow2.f32 %v4186_v49 }
 0x82c   :  { %5608 = vpow2.f32 %v4187_v32 }
 0x82d   :  { %5610 = vtanh.f32 %v5396_v4 }
 0x82e   :  { %5612 = vpow2.f32 %v4188_v21 }
 0x835   :  { %v5607_v43 = vpop.eup %5606 }
 0x836   :  { %v2314_v0 = vadd.f32 1.0, %v5607_v43  ;;  %v5609_v9 = vpop.eup %5608 }
 0x837   :  { %v2315_v35 = vadd.f32 1.0, %v5609_v9  ;;  %v5611_v17 = vpop.eup %5610 }
 0x838   :  { %5614 = vrcp.f32 %v2314_v0  ;;  %v5613_v57 = vpop.eup %5612 }
 0x839   :  { %5616 = vrcp.f32 %v2315_v35  ;;  %v2316_v24 = vadd.f32 1.0, %v5613_v57 }
 0x83b   :  { %5618 = vrcp.f32 %v2316_v24 }
 0x842   :  { %v5615_v38 = vpop.eup %5614 }
 0x843   :  { %v2325_v12 = vmul.f32 %v5615_v38, %v5611_v17  ;;  %v5617_v39 = vpop.eup %5616 }
 0x844   :  { %v2324_v18 = vmul.f32 %v5617_v39, %v6962_v50  ;;  %v2405_v50 = vld [vmem:[%s7802_s6] sm:$0xf] }
 0x845   :  { %v5619_v59 = vpop.eup %5618  ;;  %v7520_v52 = vrot.slane %v2405_v50, %v110_v31  ;;  %v7524_v26 = vrot.slane %v2405_v50, %v114_v34  ;;  %v7530_v43 = vrot.slane %v2405_v50, %v118_v37  ;;  %v7534_v31 = vrot.slane %v2405_v50, %v122_v55 }
 0x846   :  { %v2326_v51 = vadd.f32 %v2325_v12, %v2324_v18 }
 0x848   :  { %5620 = vtanh.f32 %v2326_v51 }
 0x852   :  { %v5621_v47 = vpop.eup %5620 }
 0x853   :  { %v2328_v60 = vmul.f32 %v5621_v47, %v5619_v59 }
 0x855   :  { %2534 = vmatmul.mubr.f32.gmra.mrb[30].mxu0 %v2328_v60  ;;  %4152 = vst [vmem:[%s7801_s7] sm:$0xff] %v2328_v60  ;;  %2647 = vmatmul.mubr.f32.gmra.mrb[30].mxu1 %v2328_v60 }
 0x856   :  { %2821 = vmatprep.mubr.f32.mxu0 %v5750_v3  ;;  %2892 = vmatprep.mubr.f32.mxu1 %v5750_v3 }
 0x859   :  { %2822 = vmatmul.mubr.f32.vlgmr.msra.gmra.mrb[16].mxu0 %v5750_v3  ;;  %2893 = vmatmul.mubr.f32.vlgmr.msra.gmra.mrb[16].mxu1 %v5750_v3 }
 0x85a   :  { %4920 = vmatpush1.bf16.msra.mxu0 %v7201_v14  ;;  %4952 = vmatpush1.bf16.msra.mxu1 %v7210_v27 }
 0x85b   :  { %4922 = vmatprep.subr.bf16.mxu0 %v7224_v53  ;;  %4954 = vmatprep.subr.bf16.mxu1 %v7235_v11 }
 0x85c   :  { %2995 = vmatprep.mubr.f32.mxu0 %v5750_v3  ;;  %3066 = vmatprep.mubr.f32.mxu1 %v5750_v3 }
 0x85e   :  { %4924 = vmatpush1.bf16.msra.mxu0 %v7237_v25  ;;  %4956 = vmatpush1.bf16.msra.mxu1 %v7246_v63 }
 0x85f   :  { %4926 = vmatprep.subr.bf16.mxu0 %v7260_v42  ;;  %4958 = vmatprep.subr.bf16.mxu1 %v7271_v10 }
 0x862   :  { %4928 = vmatpush1.bf16.msra.mxu0 %v7273_v19  ;;  %4960 = vmatpush1.bf16.msra.mxu1 %v7282_v54 }
 0x863   :  { %4930 = vmatprep.subr.bf16.mxu0 %v7296_v28  ;;  %4962 = vmatprep.subr.bf16.mxu1 %v7307_v16 }
 0x866   :  { %4932 = vmatpush1.bf16.msra.mxu0 %v7309_v36  ;;  %4964 = vmatpush1.bf16.msra.mxu1 %v7318_v15 }
 0x867   :  { %4934 = vmatprep.subr.bf16.mxu0 %v7332_v7  ;;  %4966 = vmatprep.subr.bf16.mxu1 %v7343_v20 }
 0x86a   :  { %4936 = vmatpush1.bf16.msra.mxu0 %v7345_v58  ;;  %4968 = vmatpush1.bf16.msra.mxu1 %v7357_v29 }
 0x86b   :  { %4938 = vmatprep.subr.bf16.mxu0 %v7370_v46  ;;  %4970 = vmatprep.subr.bf16.mxu1 %v7372_v61 }
 0x86e   :  { %4940 = vmatpush1.bf16.msra.mxu0 %v7384_v13  ;;  %4972 = vmatpush1.bf16.msra.mxu1 %v7397_v1 }
 0x86f   :  { %4942 = vmatprep.subr.bf16.mxu0 %v7399_v6  ;;  %4974 = vmatprep.subr.bf16.mxu1 %v7410_v22 }
 0x872   :  { %4944 = vmatpush1.bf16.msra.mxu0 %v7422_v8  ;;  %4976 = vmatpush1.bf16.msra.mxu1 %v7426_v40 }
 0x873   :  { %4946 = vmatprep.subr.bf16.mxu0 %v7440_v5  ;;  %4978 = vmatprep.subr.bf16.mxu1 %v7451_v45 }
 0x876   :  { %4948 = vmatpush1.bf16.msra.mxu0 %v7453_v23  ;;  %4980 = vmatpush1.bf16.msra.mxu1 %v7462_v41 }
 0x877   :  { %4982 = vmatprep.subr.bf16.mxu0 %v7188_v2  ;;  %5014 = vmatprep.subr.bf16.mxu1 %v7199_v62 }
 0x92c   :  { %v2823_v44 = vpop.f32.mrb[16].mxu0  ;;  %v2894_v33 = vpop.f32.mrb[16].mxu1 }
 0x92d   :  { %v5397_v56 = vadd.f32 %v2823_v44, %v7520_v52  ;;  %v2825_v49 = vpop.f32.mrb[17].mxu0  ;;  %v2896_v32 = vpop.f32.mrb[17].mxu1  ;;  %v5413_v34 = vadd.f32 %v2894_v33, %v7530_v43 }
 0x92e   :  { %v5398_v48 = vadd.f32 %v2825_v49, %v7524_v26  ;;  %v5414_v0 = vadd.f32 %v2896_v32, %v7534_v31 }
 0x92f   :  { %v4189_v4 = vmul.f32 -1.442695, %v5397_v56  ;;  %v4191_v9 = vmul.f32 -1.442695, %v5413_v34 }
 0x930   :  { %v4190_v21 = vmul.f32 -1.442695, %v5398_v48 }
 0x931   :  { %5622 = vpow2.f32 %v4189_v4 }
 0x932   :  { %5624 = vpow2.f32 %v4190_v21 }
 0x933   :  { %5626 = vtanh.f32 %v5414_v0 }
 0x934   :  { %5628 = vpow2.f32 %v4191_v9 }
 0x93b   :  { %v5623_v35 = vpop.eup %5622 }
 0x93c   :  { %v2912_v17 = vadd.f32 1.0, %v5623_v35  ;;  %v5625_v57 = vpop.eup %5624 }
 0x93d   :  { %v2913_v38 = vadd.f32 1.0, %v5625_v57  ;;  %v5627_v37 = vpop.eup %5626 }
 0x93e   :  { %5630 = vrcp.f32 %v2912_v17  ;;  %v5629_v12 = vpop.eup %5628 }
 0x93f   :  { %5632 = vrcp.f32 %v2913_v38  ;;  %v2914_v55 = vadd.f32 1.0, %v5629_v12 }
 0x941   :  { %5634 = vrcp.f32 %v2914_v55 }
 0x948   :  { %v5631_v39 = vpop.eup %5630 }
 0x949   :  { %v2923_v24 = vmul.f32 %v5631_v39, %v5627_v37  ;;  %v5633_v30 = vpop.eup %5632 }
 0x94a   :  { %v2922_v18 = vmul.f32 0.0, %v5633_v30 }
 0x94b   :  { %v5635_v59 = vpop.eup %5634 }
 0x94c   :  { %v7538_v51 = vadd.f32 %v2923_v24, %v2922_v18 }
 0x94e   :  { %5636 = vtanh.f32 %v7538_v51 }
 0x958   :  { %v5637_v47 = vpop.eup %5636 }
 0x959   :  { %v2926_v60 = vmul.f32 %v5637_v47, %v5635_v59 }
 0x95b   :  { %2996 = vmatmul.mubr.f32.vlgmr.msra.gmra.mrb[18].mxu0 %v2926_v60  ;;  %3067 = vmatmul.mubr.f32.vlgmr.msra.gmra.mrb[18].mxu1 %v2926_v60 }
 0x95c   :  { %4984 = vmatpush1.bf16.msra.mxu0 %v7201_v14  ;;  %5016 = vmatpush1.bf16.msra.mxu1 %v7210_v27 }
 0x95d   :  { %4986 = vmatprep.subr.bf16.mxu0 %v7224_v53  ;;  %5018 = vmatprep.subr.bf16.mxu1 %v7235_v11 }
 0x95e   :  { %3169 = vmatprep.mubr.f32.mxu0 %v5750_v3  ;;  %3240 = vmatprep.mubr.f32.mxu1 %v5750_v3 }
 0x960   :  { %4988 = vmatpush1.bf16.msra.mxu0 %v7237_v25  ;;  %5020 = vmatpush1.bf16.msra.mxu1 %v7246_v63 }
 0x961   :  { %4990 = vmatprep.subr.bf16.mxu0 %v7260_v42  ;;  %5022 = vmatprep.subr.bf16.mxu1 %v7271_v10 }
 0x964   :  { %4992 = vmatpush1.bf16.msra.mxu0 %v7273_v19  ;;  %5024 = vmatpush1.bf16.msra.mxu1 %v7282_v54 }
 0x965   :  { %4994 = vmatprep.subr.bf16.mxu0 %v7296_v28  ;;  %5026 = vmatprep.subr.bf16.mxu1 %v7307_v16 }
 0x968   :  { %4996 = vmatpush1.bf16.msra.mxu0 %v7309_v36  ;;  %5028 = vmatpush1.bf16.msra.mxu1 %v7318_v15 }
 0x969   :  { %4998 = vmatprep.subr.bf16.mxu0 %v7332_v7  ;;  %5030 = vmatprep.subr.bf16.mxu1 %v7343_v20 }
 0x96c   :  { %5000 = vmatpush1.bf16.msra.mxu0 %v7345_v58  ;;  %5032 = vmatpush1.bf16.msra.mxu1 %v7357_v29 }
 0x96d   :  { %5002 = vmatprep.subr.bf16.mxu0 %v7370_v46  ;;  %5034 = vmatprep.subr.bf16.mxu1 %v7372_v61 }
 0x970   :  { %5004 = vmatpush1.bf16.msra.mxu0 %v7384_v13  ;;  %5036 = vmatpush1.bf16.msra.mxu1 %v7397_v1 }
 0x971   :  { %5006 = vmatprep.subr.bf16.mxu0 %v7399_v6  ;;  %5038 = vmatprep.subr.bf16.mxu1 %v7410_v22 }
 0x974   :  { %5008 = vmatpush1.bf16.msra.mxu0 %v7422_v8  ;;  %5040 = vmatpush1.bf16.msra.mxu1 %v7426_v40 }
 0x975   :  { %5010 = vmatprep.subr.bf16.mxu0 %v7440_v5  ;;  %5042 = vmatprep.subr.bf16.mxu1 %v7451_v45 }
 0x978   :  { %5012 = vmatpush1.bf16.msra.mxu0 %v7453_v23  ;;  %5044 = vmatpush1.bf16.msra.mxu1 %v7462_v41 }
 0x979   :  { %5046 = vmatprep.subr.bf16.mxu0 %v7188_v2  ;;  %5078 = vmatprep.subr.bf16.mxu1 %v7199_v62 }
 0xa2e   :  { %v2997_v50 = vpop.f32.mrb[18].mxu0  ;;  %v3068_v44 = vpop.f32.mrb[18].mxu1 }
 0xa2f   :  { %v5399_v33 = vadd.f32 %v2997_v50, %v7520_v52  ;;  %v2999_v56 = vpop.f32.mrb[19].mxu0  ;;  %v3070_v49 = vpop.f32.mrb[19].mxu1  ;;  %v5415_v21 = vadd.f32 %v3068_v44, %v7530_v43 }
 0xa30   :  { %v5400_v32 = vadd.f32 %v2999_v56, %v7524_v26  ;;  %v5416_v34 = vadd.f32 %v3070_v49, %v7534_v31 }
 0xa31   :  { %v4192_v48 = vmul.f32 -1.442695, %v5399_v33  ;;  %v4194_v0 = vmul.f32 -1.442695, %v5415_v21 }
 0xa32   :  { %v4193_v4 = vmul.f32 -1.442695, %v5400_v32 }
 0xa33   :  { %5638 = vpow2.f32 %v4192_v48 }
 0xa34   :  { %5640 = vpow2.f32 %v4193_v4 }
 0xa35   :  { %5642 = vtanh.f32 %v5416_v34 }
 0xa36   :  { %5644 = vpow2.f32 %v4194_v0 }
 0xa3d   :  { %v5639_v9 = vpop.eup %5638 }
 0xa3e   :  { %v3086_v35 = vadd.f32 1.0, %v5639_v9  ;;  %v5641_v17 = vpop.eup %5640 }
 0xa3f   :  { %v3087_v57 = vadd.f32 1.0, %v5641_v17  ;;  %v5643_v38 = vpop.eup %5642 }
 0xa40   :  { %5646 = vrcp.f32 %v3086_v35  ;;  %v5645_v37 = vpop.eup %5644 }
 0xa41   :  { %5648 = vrcp.f32 %v3087_v57  ;;  %v3088_v30 = vadd.f32 1.0, %v5645_v37 }
 0xa43   :  { %5650 = vrcp.f32 %v3088_v30 }
 0xa4a   :  { %v5647_v12 = vpop.eup %5646 }
 0xa4b   :  { %v3097_v39 = vmul.f32 %v5647_v12, %v5643_v38  ;;  %v5649_v24 = vpop.eup %5648 }
 0xa4c   :  { %v3096_v55 = vmul.f32 %v5649_v24, %v7538_v51 }
 0xa4d   :  { %v5651_v59 = vpop.eup %5650 }
 0xa4e   :  { %v7580_v18 = vadd.f32 %v3097_v39, %v3096_v55 }
 0xa50   :  { %5652 = vtanh.f32 %v7580_v18 }
 0xa5a   :  { %v5653_v47 = vpop.eup %5652 }
 0xa5b   :  { %v3100_v60 = vmul.f32 %v5653_v47, %v5651_v59 }
 0xa5d   :  { %3170 = vmatmul.mubr.f32.vlgmr.msra.gmra.mrb[20].mxu0 %v3100_v60  ;;  %3241 = vmatmul.mubr.f32.vlgmr.msra.gmra.mrb[20].mxu1 %v3100_v60 }
 0xa5e   :  { %5048 = vmatpush1.bf16.msra.mxu0 %v7201_v14  ;;  %5080 = vmatpush1.bf16.msra.mxu1 %v7210_v27 }
 0xa5f   :  { %5050 = vmatprep.subr.bf16.mxu0 %v7224_v53  ;;  %5082 = vmatprep.subr.bf16.mxu1 %v7235_v11 }
 0xa60   :  { %3343 = vmatprep.mubr.f32.mxu0 %v5750_v3  ;;  %3414 = vmatprep.mubr.f32.mxu1 %v5750_v3 }
 0xa62   :  { %5052 = vmatpush1.bf16.msra.mxu0 %v7237_v25  ;;  %5084 = vmatpush1.bf16.msra.mxu1 %v7246_v63 }
 0xa63   :  { %5054 = vmatprep.subr.bf16.mxu0 %v7260_v42  ;;  %5086 = vmatprep.subr.bf16.mxu1 %v7271_v10 }
 0xa66   :  { %5056 = vmatpush1.bf16.msra.mxu0 %v7273_v19  ;;  %5088 = vmatpush1.bf16.msra.mxu1 %v7282_v54 }
 0xa67   :  { %5058 = vmatprep.subr.bf16.mxu0 %v7296_v28  ;;  %5090 = vmatprep.subr.bf16.mxu1 %v7307_v16 }
 0xa6a   :  { %5060 = vmatpush1.bf16.msra.mxu0 %v7309_v36  ;;  %5092 = vmatpush1.bf16.msra.mxu1 %v7318_v15 }
 0xa6b   :  { %5062 = vmatprep.subr.bf16.mxu0 %v7332_v7  ;;  %5094 = vmatprep.subr.bf16.mxu1 %v7343_v20 }
 0xa6e   :  { %5064 = vmatpush1.bf16.msra.mxu0 %v7345_v58  ;;  %5096 = vmatpush1.bf16.msra.mxu1 %v7357_v29 }
 0xa6f   :  { %5066 = vmatprep.subr.bf16.mxu0 %v7370_v46  ;;  %5098 = vmatprep.subr.bf16.mxu1 %v7372_v61 }
 0xa72   :  { %5068 = vmatpush1.bf16.msra.mxu0 %v7384_v13  ;;  %5100 = vmatpush1.bf16.msra.mxu1 %v7397_v1 }
 0xa73   :  { %5070 = vmatprep.subr.bf16.mxu0 %v7399_v6  ;;  %5102 = vmatprep.subr.bf16.mxu1 %v7410_v22 }
 0xa76   :  { %5072 = vmatpush1.bf16.msra.mxu0 %v7422_v8  ;;  %5104 = vmatpush1.bf16.msra.mxu1 %v7426_v40 }
 0xa77   :  { %5074 = vmatprep.subr.bf16.mxu0 %v7440_v5  ;;  %5106 = vmatprep.subr.bf16.mxu1 %v7451_v45 }
 0xa7a   :  { %5076 = vmatpush1.bf16.msra.mxu0 %v7453_v23  ;;  %5108 = vmatpush1.bf16.msra.mxu1 %v7462_v41 }
 0xa7b   :  { %5110 = vmatprep.subr.bf16.mxu0 %v7188_v2  ;;  %5142 = vmatprep.subr.bf16.mxu1 %v7199_v62 }
 0xb30   :  { %v3171_v51 = vpop.f32.mrb[20].mxu0  ;;  %v3242_v50 = vpop.f32.mrb[20].mxu1 }
 0xb31   :  { %v5401_v44 = vadd.f32 %v3171_v51, %v7520_v52  ;;  %v3173_v33 = vpop.f32.mrb[21].mxu0  ;;  %v3244_v56 = vpop.f32.mrb[21].mxu1  ;;  %v5417_v4 = vadd.f32 %v3242_v50, %v7530_v43 }
 0xb32   :  { %v5402_v49 = vadd.f32 %v3173_v33, %v7524_v26  ;;  %v5418_v21 = vadd.f32 %v3244_v56, %v7534_v31 }
 0xb33   :  { %v4195_v32 = vmul.f32 -1.442695, %v5401_v44  ;;  %v4197_v34 = vmul.f32 -1.442695, %v5417_v4 }
 0xb34   :  { %v4196_v48 = vmul.f32 -1.442695, %v5402_v49 }
 0xb35   :  { %5654 = vpow2.f32 %v4195_v32 }
 0xb36   :  { %5656 = vpow2.f32 %v4196_v48 }
 0xb37   :  { %5658 = vtanh.f32 %v5418_v21 }
 0xb38   :  { %5660 = vpow2.f32 %v4197_v34 }
 0xb3f   :  { %v5655_v0 = vpop.eup %5654 }
 0xb40   :  { %v3260_v9 = vadd.f32 1.0, %v5655_v0  ;;  %v5657_v35 = vpop.eup %5656 }
 0xb41   :  { %v3261_v17 = vadd.f32 1.0, %v5657_v35  ;;  %v5659_v57 = vpop.eup %5658 }
 0xb42   :  { %5662 = vrcp.f32 %v3260_v9  ;;  %v5661_v38 = vpop.eup %5660 }
 0xb43   :  { %5664 = vrcp.f32 %v3261_v17  ;;  %v3262_v24 = vadd.f32 1.0, %v5661_v38 }
 0xb45   :  { %5666 = vrcp.f32 %v3262_v24 }
 0xb4c   :  { %v5663_v37 = vpop.eup %5662 }
 0xb4d   :  { %v3271_v12 = vmul.f32 %v5663_v37, %v5659_v57  ;;  %v5665_v39 = vpop.eup %5664 }
 0xb4e   :  { %v3270_v30 = vmul.f32 %v5665_v39, %v7580_v18 }
 0xb4f   :  { %v5667_v59 = vpop.eup %5666 }
 0xb50   :  { %v7622_v55 = vadd.f32 %v3271_v12, %v3270_v30 }
 0xb52   :  { %5668 = vtanh.f32 %v7622_v55 }
 0xb5c   :  { %v5669_v47 = vpop.eup %5668 }
 0xb5d   :  { %v3274_v60 = vmul.f32 %v5669_v47, %v5667_v59 }
 0xb5f   :  { %3344 = vmatmul.mubr.f32.vlgmr.msra.gmra.mrb[22].mxu0 %v3274_v60  ;;  %3415 = vmatmul.mubr.f32.vlgmr.msra.gmra.mrb[22].mxu1 %v3274_v60 }
 0xb60   :  { %5112 = vmatpush1.bf16.msra.mxu0 %v7201_v14  ;;  %5144 = vmatpush1.bf16.msra.mxu1 %v7210_v27 }
 0xb61   :  { %5114 = vmatprep.subr.bf16.mxu0 %v7224_v53  ;;  %5146 = vmatprep.subr.bf16.mxu1 %v7235_v11 }
 0xb62   :  { %3517 = vmatprep.mubr.f32.mxu0 %v5750_v3  ;;  %3588 = vmatprep.mubr.f32.mxu1 %v5750_v3 }
 0xb64   :  { %5116 = vmatpush1.bf16.msra.mxu0 %v7237_v25  ;;  %5148 = vmatpush1.bf16.msra.mxu1 %v7246_v63 }
 0xb65   :  { %5118 = vmatprep.subr.bf16.mxu0 %v7260_v42  ;;  %5150 = vmatprep.subr.bf16.mxu1 %v7271_v10 }
 0xb68   :  { %5120 = vmatpush1.bf16.msra.mxu0 %v7273_v19  ;;  %5152 = vmatpush1.bf16.msra.mxu1 %v7282_v54 }
 0xb69   :  { %5122 = vmatprep.subr.bf16.mxu0 %v7296_v28  ;;  %5154 = vmatprep.subr.bf16.mxu1 %v7307_v16 }
 0xb6c   :  { %5124 = vmatpush1.bf16.msra.mxu0 %v7309_v36  ;;  %5156 = vmatpush1.bf16.msra.mxu1 %v7318_v15 }
 0xb6d   :  { %5126 = vmatprep.subr.bf16.mxu0 %v7332_v7  ;;  %5158 = vmatprep.subr.bf16.mxu1 %v7343_v20 }
 0xb70   :  { %5128 = vmatpush1.bf16.msra.mxu0 %v7345_v58  ;;  %5160 = vmatpush1.bf16.msra.mxu1 %v7357_v29 }
 0xb71   :  { %5130 = vmatprep.subr.bf16.mxu0 %v7370_v46  ;;  %5162 = vmatprep.subr.bf16.mxu1 %v7372_v61 }
 0xb74   :  { %5132 = vmatpush1.bf16.msra.mxu0 %v7384_v13  ;;  %5164 = vmatpush1.bf16.msra.mxu1 %v7397_v1 }
 0xb75   :  { %5134 = vmatprep.subr.bf16.mxu0 %v7399_v6  ;;  %5166 = vmatprep.subr.bf16.mxu1 %v7410_v22 }
 0xb78   :  { %5136 = vmatpush1.bf16.msra.mxu0 %v7422_v8  ;;  %5168 = vmatpush1.bf16.msra.mxu1 %v7426_v40 }
 0xb79   :  { %5138 = vmatprep.subr.bf16.mxu0 %v7440_v5  ;;  %5170 = vmatprep.subr.bf16.mxu1 %v7451_v45 }
 0xb7c   :  { %5140 = vmatpush1.bf16.msra.mxu0 %v7453_v23  ;;  %5172 = vmatpush1.bf16.msra.mxu1 %v7462_v41 }
 0xb7d   :  { %5174 = vmatprep.subr.bf16.mxu0 %v7188_v2  ;;  %5206 = vmatprep.subr.bf16.mxu1 %v7199_v62 }
 0xc32   :  { %v3345_v18 = vpop.f32.mrb[22].mxu0  ;;  %v3416_v51 = vpop.f32.mrb[22].mxu1 }
 0xc33   :  { %v5403_v50 = vadd.f32 %v3345_v18, %v7520_v52  ;;  %v3347_v44 = vpop.f32.mrb[23].mxu0  ;;  %v3418_v33 = vpop.f32.mrb[23].mxu1  ;;  %v5419_v48 = vadd.f32 %v3416_v51, %v7530_v43 }
 0xc34   :  { %v5404_v56 = vadd.f32 %v3347_v44, %v7524_v26  ;;  %v5420_v4 = vadd.f32 %v3418_v33, %v7534_v31 }
 0xc35   :  { %v4198_v49 = vmul.f32 -1.442695, %v5403_v50  ;;  %v4200_v21 = vmul.f32 -1.442695, %v5419_v48 }
 0xc36   :  { %v4199_v32 = vmul.f32 -1.442695, %v5404_v56 }
 0xc37   :  { %5670 = vpow2.f32 %v4198_v49 }
 0xc38   :  { %5672 = vpow2.f32 %v4199_v32 }
 0xc39   :  { %5674 = vtanh.f32 %v5420_v4 }
 0xc3a   :  { %5676 = vpow2.f32 %v4200_v21 }
 0xc41   :  { %v5671_v34 = vpop.eup %5670 }
 0xc42   :  { %v3434_v0 = vadd.f32 1.0, %v5671_v34  ;;  %v5673_v9 = vpop.eup %5672 }
 0xc43   :  { %v3435_v35 = vadd.f32 1.0, %v5673_v9  ;;  %v5675_v17 = vpop.eup %5674 }
 0xc44   :  { %5678 = vrcp.f32 %v3434_v0  ;;  %v5677_v57 = vpop.eup %5676 }
 0xc45   :  { %5680 = vrcp.f32 %v3435_v35  ;;  %v3436_v39 = vadd.f32 1.0, %v5677_v57 }
 0xc47   :  { %5682 = vrcp.f32 %v3436_v39 }
 0xc4e   :  { %v5679_v38 = vpop.eup %5678 }
 0xc4f   :  { %v3445_v37 = vmul.f32 %v5679_v38, %v5675_v17  ;;  %v5681_v12 = vpop.eup %5680 }
 0xc50   :  { %v3444_v24 = vmul.f32 %v5681_v12, %v7622_v55 }
 0xc51   :  { %v5683_v59 = vpop.eup %5682 }
 0xc52   :  { %v7664_v30 = vadd.f32 %v3445_v37, %v3444_v24 }
 0xc54   :  { %5684 = vtanh.f32 %v7664_v30 }
 0xc5e   :  { %v5685_v47 = vpop.eup %5684 }
 0xc5f   :  { %v3448_v60 = vmul.f32 %v5685_v47, %v5683_v59 }
 0xc61   :  { %3518 = vmatmul.mubr.f32.vlgmr.msra.gmra.mrb[24].mxu0 %v3448_v60  ;;  %3589 = vmatmul.mubr.f32.vlgmr.msra.gmra.mrb[24].mxu1 %v3448_v60 }
 0xc62   :  { %5176 = vmatpush1.bf16.msra.mxu0 %v7201_v14  ;;  %5208 = vmatpush1.bf16.msra.mxu1 %v7210_v27 }
 0xc63   :  { %5178 = vmatprep.subr.bf16.mxu0 %v7224_v53  ;;  %5210 = vmatprep.subr.bf16.mxu1 %v7235_v11 }
 0xc64   :  { %3691 = vmatprep.mubr.f32.mxu0 %v5750_v3  ;;  %3762 = vmatprep.mubr.f32.mxu1 %v5750_v3 }
 0xc66   :  { %5180 = vmatpush1.bf16.msra.mxu0 %v7237_v25  ;;  %5212 = vmatpush1.bf16.msra.mxu1 %v7246_v63 }
 0xc67   :  { %5182 = vmatprep.subr.bf16.mxu0 %v7260_v42  ;;  %5214 = vmatprep.subr.bf16.mxu1 %v7271_v10 }
 0xc6a   :  { %5184 = vmatpush1.bf16.msra.mxu0 %v7273_v19  ;;  %5216 = vmatpush1.bf16.msra.mxu1 %v7282_v54 }
 0xc6b   :  { %5186 = vmatprep.subr.bf16.mxu0 %v7296_v28  ;;  %5218 = vmatprep.subr.bf16.mxu1 %v7307_v16 }
 0xc6e   :  { %5188 = vmatpush1.bf16.msra.mxu0 %v7309_v36  ;;  %5220 = vmatpush1.bf16.msra.mxu1 %v7318_v15 }
 0xc6f   :  { %5190 = vmatprep.subr.bf16.mxu0 %v7332_v7  ;;  %5222 = vmatprep.subr.bf16.mxu1 %v7343_v20 }
 0xc72   :  { %5192 = vmatpush1.bf16.msra.mxu0 %v7345_v58  ;;  %5224 = vmatpush1.bf16.msra.mxu1 %v7357_v29 }
 0xc73   :  { %5194 = vmatprep.subr.bf16.mxu0 %v7370_v46  ;;  %5226 = vmatprep.subr.bf16.mxu1 %v7372_v61 }
 0xc76   :  { %5196 = vmatpush1.bf16.msra.mxu0 %v7384_v13  ;;  %5228 = vmatpush1.bf16.msra.mxu1 %v7397_v1 }
 0xc77   :  { %5198 = vmatprep.subr.bf16.mxu0 %v7399_v6  ;;  %5230 = vmatprep.subr.bf16.mxu1 %v7410_v22 }
 0xc7a   :  { %5200 = vmatpush1.bf16.msra.mxu0 %v7422_v8  ;;  %5232 = vmatpush1.bf16.msra.mxu1 %v7426_v40 }
 0xc7b   :  { %5202 = vmatprep.subr.bf16.mxu0 %v7440_v5  ;;  %5234 = vmatprep.subr.bf16.mxu1 %v7451_v45 }
 0xc7e   :  { %5204 = vmatpush1.bf16.msra.mxu0 %v7453_v23  ;;  %5236 = vmatpush1.bf16.msra.mxu1 %v7462_v41 }
 0xc7f   :  { %5238 = vmatprep.subr.bf16.mxu0 %v7188_v2  ;;  %5270 = vmatprep.subr.bf16.mxu1 %v7199_v62 }
 0xd34   :  { %v3519_v55 = vpop.f32.mrb[24].mxu0  ;;  %v3590_v18 = vpop.f32.mrb[24].mxu1 }
 0xd35   :  { %v5405_v51 = vadd.f32 %v3519_v55, %v7520_v52  ;;  %v3521_v50 = vpop.f32.mrb[25].mxu0  ;;  %v3592_v44 = vpop.f32.mrb[25].mxu1  ;;  %v5421_v32 = vadd.f32 %v3590_v18, %v7530_v43 }
 0xd36   :  { %v5406_v33 = vadd.f32 %v3521_v50, %v7524_v26  ;;  %v5422_v48 = vadd.f32 %v3592_v44, %v7534_v31 }
 0xd37   :  { %v4201_v56 = vmul.f32 -1.442695, %v5405_v51  ;;  %v4203_v4 = vmul.f32 -1.442695, %v5421_v32 }
 0xd38   :  { %v4202_v49 = vmul.f32 -1.442695, %v5406_v33 }
 0xd39   :  { %5686 = vpow2.f32 %v4201_v56 }
 0xd3a   :  { %5688 = vpow2.f32 %v4202_v49 }
 0xd3b   :  { %5690 = vtanh.f32 %v5422_v48 }
 0xd3c   :  { %5692 = vpow2.f32 %v4203_v4 }
 0xd43   :  { %v5687_v21 = vpop.eup %5686 }
 0xd44   :  { %v3608_v34 = vadd.f32 1.0, %v5687_v21  ;;  %v5689_v0 = vpop.eup %5688 }
 0xd45   :  { %v3609_v9 = vadd.f32 1.0, %v5689_v0  ;;  %v5691_v35 = vpop.eup %5690 }
 0xd46   :  { %5694 = vrcp.f32 %v3608_v34  ;;  %v5693_v17 = vpop.eup %5692 }
 0xd47   :  { %5696 = vrcp.f32 %v3609_v9  ;;  %v3610_v12 = vadd.f32 1.0, %v5693_v17 }
 0xd49   :  { %5698 = vrcp.f32 %v3610_v12 }
 0xd50   :  { %v5695_v57 = vpop.eup %5694 }
 0xd51   :  { %v3619_v38 = vmul.f32 %v5695_v57, %v5691_v35  ;;  %v5697_v37 = vpop.eup %5696 }
 0xd52   :  { %v3618_v39 = vmul.f32 %v5697_v37, %v7664_v30 }
 0xd53   :  { %v5699_v59 = vpop.eup %5698 }
 0xd54   :  { %v7706_v24 = vadd.f32 %v3619_v38, %v3618_v39 }
 0xd56   :  { %5700 = vtanh.f32 %v7706_v24 }
 0xd60   :  { %v5701_v47 = vpop.eup %5700 }
 0xd61   :  { %v3622_v60 = vmul.f32 %v5701_v47, %v5699_v59 }
 0xd63   :  { %3692 = vmatmul.mubr.f32.vlgmr.msra.gmra.mrb[26].mxu0 %v3622_v60  ;;  %3763 = vmatmul.mubr.f32.vlgmr.msra.gmra.mrb[26].mxu1 %v3622_v60 }
 0xd64   :  { %5240 = vmatpush1.bf16.msra.mxu0 %v7201_v14  ;;  %5272 = vmatpush1.bf16.msra.mxu1 %v7210_v27 }
 0xd65   :  { %5242 = vmatprep.subr.bf16.mxu0 %v7224_v53  ;;  %5274 = vmatprep.subr.bf16.mxu1 %v7235_v11 }
 0xd66   :  { %3865 = vmatprep.mubr.f32.mxu0 %v5750_v3  ;;  %3936 = vmatprep.mubr.f32.mxu1 %v5750_v3 }
 0xd68   :  { %5244 = vmatpush1.bf16.msra.mxu0 %v7237_v25  ;;  %5276 = vmatpush1.bf16.msra.mxu1 %v7246_v63 }
 0xd69   :  { %5246 = vmatprep.subr.bf16.mxu0 %v7260_v42  ;;  %5278 = vmatprep.subr.bf16.mxu1 %v7271_v10 }
 0xd6c   :  { %5248 = vmatpush1.bf16.msra.mxu0 %v7273_v19  ;;  %5280 = vmatpush1.bf16.msra.mxu1 %v7282_v54 }
 0xd6d   :  { %5250 = vmatprep.subr.bf16.mxu0 %v7296_v28  ;;  %5282 = vmatprep.subr.bf16.mxu1 %v7307_v16 }
 0xd70   :  { %5252 = vmatpush1.bf16.msra.mxu0 %v7309_v36  ;;  %5284 = vmatpush1.bf16.msra.mxu1 %v7318_v15 }
 0xd71   :  { %5254 = vmatprep.subr.bf16.mxu0 %v7332_v7  ;;  %5286 = vmatprep.subr.bf16.mxu1 %v7343_v20 }
 0xd74   :  { %5256 = vmatpush1.bf16.msra.mxu0 %v7345_v58  ;;  %5288 = vmatpush1.bf16.msra.mxu1 %v7357_v29 }
 0xd75   :  { %5258 = vmatprep.subr.bf16.mxu0 %v7370_v46  ;;  %5290 = vmatprep.subr.bf16.mxu1 %v7372_v61 }
 0xd78   :  { %5260 = vmatpush1.bf16.msra.mxu0 %v7384_v13  ;;  %5292 = vmatpush1.bf16.msra.mxu1 %v7397_v1 }
 0xd79   :  { %5262 = vmatprep.subr.bf16.mxu0 %v7399_v6  ;;  %5294 = vmatprep.subr.bf16.mxu1 %v7410_v22 }
 0xd7c   :  { %5264 = vmatpush1.bf16.msra.mxu0 %v7422_v8  ;;  %5296 = vmatpush1.bf16.msra.mxu1 %v7426_v40 }
 0xd7d   :  { %5266 = vmatprep.subr.bf16.mxu0 %v7440_v5  ;;  %5298 = vmatprep.subr.bf16.mxu1 %v7451_v45 }
 0xd80   :  { %5268 = vmatpush1.bf16.msra.mxu0 %v7453_v23  ;;  %5300 = vmatpush1.bf16.msra.mxu1 %v7462_v41 }
 0xd81   :  { %5302 = vmatprep.subr.bf16.mxu0 %v7188_v2  ;;  %5334 = vmatprep.subr.bf16.mxu1 %v7199_v62 }
 0xe36   :  { %v3693_v30 = vpop.f32.mrb[26].mxu0  ;;  %v3764_v55 = vpop.f32.mrb[26].mxu1 }
 0xe37   :  { %v5407_v18 = vadd.f32 %v3693_v30, %v7520_v52  ;;  %v3695_v51 = vpop.f32.mrb[27].mxu0  ;;  %v3766_v50 = vpop.f32.mrb[27].mxu1  ;;  %v5423_v49 = vadd.f32 %v3764_v55, %v7530_v43 }
 0xe38   :  { %v5408_v44 = vadd.f32 %v3695_v51, %v7524_v26  ;;  %v5424_v32 = vadd.f32 %v3766_v50, %v7534_v31 }
 0xe39   :  { %v4204_v33 = vmul.f32 -1.442695, %v5407_v18  ;;  %v4206_v48 = vmul.f32 -1.442695, %v5423_v49 }
 0xe3a   :  { %v4205_v56 = vmul.f32 -1.442695, %v5408_v44 }
 0xe3b   :  { %5702 = vpow2.f32 %v4204_v33 }
 0xe3c   :  { %5704 = vpow2.f32 %v4205_v56 }
 0xe3d   :  { %5706 = vtanh.f32 %v5424_v32 }
 0xe3e   :  { %5708 = vpow2.f32 %v4206_v48 }
 0xe45   :  { %v5703_v2 = vpop.eup %5702 }
 0xe46   :  { %v3782_v4 = vadd.f32 1.0, %v5703_v2  ;;  %v5705_v62 = vpop.eup %5704 }
 0xe47   :  { %v3783_v21 = vadd.f32 1.0, %v5705_v62  ;;  %v5707_v34 = vpop.eup %5706 }
 0xe48   :  { %5710 = vrcp.f32 %v3782_v4  ;;  %v5709_v0 = vpop.eup %5708 }
 0xe49   :  { %5712 = vrcp.f32 %v3783_v21  ;;  %v3784_v57 = vadd.f32 1.0, %v5709_v0 }
 0xe4b   :  { %5714 = vrcp.f32 %v3784_v57 }
 0xe52   :  { %v5711_v9 = vpop.eup %5710 }
 0xe53   :  { %v3793_v35 = vmul.f32 %v5711_v9, %v5707_v34  ;;  %v5713_v17 = vpop.eup %5712 }
 0xe54   :  { %v3792_v38 = vmul.f32 %v5713_v17, %v7706_v24 }
 0xe55   :  { %v5715_v12 = vpop.eup %5714 }
 0xe56   :  { %v7748_v37 = vadd.f32 %v3793_v35, %v3792_v38 }
 0xe58   :  { %5716 = vtanh.f32 %v7748_v37 }
 0xe62   :  { %v5717_v39 = vpop.eup %5716 }
 0xe63   :  { %v3796_v59 = vmul.f32 %v5717_v39, %v5715_v12 }
 0xe65   :  { %3866 = vmatmul.mubr.f32.vlgmr.msra.gmra.mrb[28].mxu0 %v3796_v59  ;;  %3937 = vmatmul.mubr.f32.vlgmr.msra.gmra.mrb[28].mxu1 %v3796_v59 }
 0xe66   :  { %5304 = vmatpush1.bf16.msra.mxu0 %v7201_v14  ;;  %5336 = vmatpush1.bf16.msra.mxu1 %v7210_v27 }
 0xe67   :  { %5306 = vmatprep.subr.bf16.mxu0 %v7224_v53  ;;  %5338 = vmatprep.subr.bf16.mxu1 %v7235_v11 }
 0xe68   :  { %4039 = vmatprep.mubr.f32.mxu0 %v5750_v3  ;;  %4110 = vmatprep.mubr.f32.mxu1 %v5750_v3 }
 0xe6a   :  { %5308 = vmatpush1.bf16.msra.mxu0 %v7237_v25  ;;  %5340 = vmatpush1.bf16.msra.mxu1 %v7246_v63 }
 0xe6b   :  { %5310 = vmatprep.subr.bf16.mxu0 %v7260_v42  ;;  %5342 = vmatprep.subr.bf16.mxu1 %v7271_v10 }
 0xe6e   :  { %5312 = vmatpush1.bf16.msra.mxu0 %v7273_v19  ;;  %5344 = vmatpush1.bf16.msra.mxu1 %v7282_v54 }
 0xe6f   :  { %5314 = vmatprep.subr.bf16.mxu0 %v7296_v28  ;;  %5346 = vmatprep.subr.bf16.mxu1 %v7307_v16 }
 0xe72   :  { %5316 = vmatpush1.bf16.msra.mxu0 %v7309_v36  ;;  %5348 = vmatpush1.bf16.msra.mxu1 %v7318_v15 }
 0xe73   :  { %5318 = vmatprep.subr.bf16.mxu0 %v7332_v7  ;;  %5350 = vmatprep.subr.bf16.mxu1 %v7343_v20 }
 0xe76   :  { %5320 = vmatpush1.bf16.msra.mxu0 %v7345_v58  ;;  %5352 = vmatpush1.bf16.msra.mxu1 %v7357_v29 }
 0xe77   :  { %5322 = vmatprep.subr.bf16.mxu0 %v7370_v46  ;;  %5354 = vmatprep.subr.bf16.mxu1 %v7372_v61 }
 0xe7a   :  { %5324 = vmatpush1.bf16.msra.mxu0 %v7384_v13  ;;  %5356 = vmatpush1.bf16.msra.mxu1 %v7397_v1 }
 0xe7b   :  { %5326 = vmatprep.subr.bf16.mxu0 %v7399_v6  ;;  %5358 = vmatprep.subr.bf16.mxu1 %v7410_v22 }
 0xe7e   :  { %5328 = vmatpush1.bf16.msra.mxu0 %v7422_v8  ;;  %5360 = vmatpush1.bf16.msra.mxu1 %v7426_v40 }
 0xe7f   :  { %5330 = vmatprep.subr.bf16.mxu0 %v7440_v5  ;;  %5362 = vmatprep.subr.bf16.mxu1 %v7451_v45 }
 0xe82   :  { %5332 = vmatpush1.bf16.msra.mxu0 %v7453_v23  ;;  %5364 = vmatpush1.bf16.msra.mxu1 %v7462_v41 }
 0xf38   :  { %v3867_v3 = vpop.f32.mrb[28].mxu0  ;;  %v3938_v14 = vpop.f32.mrb[28].mxu1 }
 0xf39   :  { %v5409_v27 = vadd.f32 %v3867_v3, %v7520_v52  ;;  %v3869_v53 = vpop.f32.mrb[29].mxu0  ;;  %v3940_v11 = vpop.f32.mrb[29].mxu1  ;;  %v5425_v10 = vadd.f32 %v3938_v14, %v7530_v43 }
 0xf3a   :  { %v5410_v25 = vadd.f32 %v3869_v53, %v7524_v26  ;;  %v5426_v19 = vadd.f32 %v3940_v11, %v7534_v31 }
 0xf3b   :  { %v4207_v63 = vmul.f32 -1.442695, %v5409_v27  ;;  %v4209_v54 = vmul.f32 -1.442695, %v5425_v10 }
 0xf3c   :  { %v4208_v42 = vmul.f32 -1.442695, %v5410_v25 }
 0xf3d   :  { %5718 = vpow2.f32 %v4207_v63 }
 0xf3e   :  { %5720 = vpow2.f32 %v4208_v42 }
 0xf3f   :  { %5722 = vtanh.f32 %v5426_v19 }
 0xf40   :  { %5724 = vpow2.f32 %v4209_v54 }
 0xf47   :  { %v5719_v28 = vpop.eup %5718 }
 0xf48   :  { %v3956_v16 = vadd.f32 1.0, %v5719_v28  ;;  %v5721_v36 = vpop.eup %5720 }
 0xf49   :  { %v3957_v15 = vadd.f32 1.0, %v5721_v36  ;;  %v5723_v7 = vpop.eup %5722 }
 0xf4a   :  { %5726 = vrcp.f32 %v3956_v16  ;;  %v5725_v20 = vpop.eup %5724 }
 0xf4b   :  { %5728 = vrcp.f32 %v3957_v15  ;;  %v3958_v61 = vadd.f32 1.0, %v5725_v20 }
 0xf4d   :  { %5730 = vrcp.f32 %v3958_v61 }
 0xf54   :  { %v5727_v58 = vpop.eup %5726 }
 0xf55   :  { %v3967_v29 = vmul.f32 %v5727_v58, %v5723_v7  ;;  %v5729_v46 = vpop.eup %5728 }
 0xf56   :  { %v3966_v13 = vmul.f32 %v5729_v46, %v7748_v37 }
 0xf57   :  { %v5731_v6 = vpop.eup %5730 }
 0xf58   :  { %v3968_v1 = vadd.f32 %v3967_v29, %v3966_v13 }
 0xf5a   :  { %5732 = vtanh.f32 %v3968_v1 }
 0xf64   :  { %v5733_v22 = vpop.eup %5732 }
 0xf65   :  { %v3970_v8 = vmul.f32 %v5733_v22, %v5731_v6 }
 0xf67   :  { %4040 = vmatmul.mubr.f32.vlgmr.msra.gmra.mrb[30].mxu0 %v3970_v8  ;;  %4111 = vmatmul.mubr.f32.vlgmr.msra.gmra.mrb[30].mxu1 %v3970_v8 }
0x103a   :  { %v4041_v40 = vpop.f32.mrb[30].mxu0  ;;  %v4112_v5 = vpop.f32.mrb[30].mxu1 }
0x103b   :  { %v5411_v45 = vadd.f32 %v4041_v40, %v7520_v52  ;;  %v4043_v23 = vpop.f32.mrb[31].mxu0  ;;  %v4114_v41 = vpop.f32.mrb[31].mxu1  ;;  %v5427_v30 = vadd.f32 %v4112_v5, %v7530_v43 }
0x103c   :  { %v5412_v24 = vadd.f32 %v4043_v23, %v7524_v26  ;;  %v5428_v55 = vadd.f32 %v4114_v41, %v7534_v31 }
0x103d   :  { %v4210_v47 = vmul.f32 -1.442695, %v5411_v45  ;;  %v4212_v18 = vmul.f32 -1.442695, %v5427_v30 }
0x103e   :  { %v4211_v60 = vmul.f32 -1.442695, %v5412_v24 }
0x103f   :  { %5734 = vpow2.f32 %v4210_v47 }
0x1040   :  { %5736 = vpow2.f32 %v4211_v60 }
0x1041   :  { %5738 = vtanh.f32 %v5428_v55 }
0x1042   :  { %5740 = vpow2.f32 %v4212_v18 }
0x1049   :  { %v5735_v51 = vpop.eup %5734 }
0x104a   :  { %v4130_v50 = vadd.f32 1.0, %v5735_v51  ;;  %v5737_v44 = vpop.eup %5736 }
0x104b   :  { %v4131_v52 = vadd.f32 1.0, %v5737_v44  ;;  %v5739_v33 = vpop.eup %5738 }
0x104c   :  { %5742 = vrcp.f32 %v4130_v50  ;;  %v5741_v56 = vpop.eup %5740 }
0x104d   :  { %5744 = vrcp.f32 %v4131_v52  ;;  %v4132_v48 = vadd.f32 1.0, %v5741_v56 }
0x104f   :  { %5746 = vrcp.f32 %v4132_v48 }
0x1056   :  { %v5743_v26 = vpop.eup %5742 }
0x1057   :  { %v4141_v49 = vmul.f32 %v5743_v26, %v5739_v33  ;;  %v5745_v32 = vpop.eup %5744 }
0x1058   :  { %v4140_v2 = vmul.f32 %v5745_v32, %v3968_v1 }
0x1059   :  { %v5747_v43 = vpop.eup %5746 }
0x105a   :  { %v4142_v4 = vadd.f32 %v4141_v49, %v4140_v2 }
0x105c   :  { %5748 = vtanh.f32 %v4142_v4 }
0x1066   :  { %v5749_v31 = vpop.eup %5748 }
0x1067   :  { %v4144_v62 = vmul.f32 %v5749_v31, %v5747_v43 }
0x1069   :  { %4153 = vst [vmem:[%s7801_s7 + $0x8] sm:$0xff] %v4144_v62 }

</bundles_post_ra>
